<compile_context>
chip_gen: v7x
topology: tpu7x:2x2x1
jax: 0.10.0
libtpu: 0.0.40
codegen_flags: <defaults>
</compile_context>

<pallas_src>
import jax
import jax.numpy as jnp
from jax.experimental import pallas as pl
from jax.experimental.pallas import tpu as pltpu

K = 4            # all deconvs use 4x4 kernels
BN_EPS = 1e-5    # torch BatchNorm2d default eps
LANE = 128       # TPU lane width
TM_MAX = 512     # row-tile size (bf16 tiles comfortably fit v5e/v6e/v7x VMEM)

LAYER_CFG = [    # (stride, padding) per deconv layer
    (1, 0),      # deconv1: 1x1   -> 4x4
    (2, 1),      # deconv2: 4x4   -> 8x8
    (2, 1),      # deconv3: 8x8   -> 16x16
    (2, 1),      # deconv4: 16x16 -> 32x32
]


def _round_up(x, m):
    return ((x + m - 1) // m) * m


def _pick_tm(m, tm_max=TM_MAX):
    """Largest row tile <= tm_max that evenly divides m (multiple of 8 when tiled)."""
    if m <= tm_max:
        return m
    for t in range(tm_max, 0, -8):
        if m % t == 0:
            return t
    return m


# ---------------------------------------------------------------------------
# Pallas kernels (the hot path)
# ---------------------------------------------------------------------------
def _matmul_stats_kernel(a_ref, w_ref, c_ref, sum_ref, sq_ref):
    """One (tm, Cp) tile of C = A @ W (bf16 in, f32 acc) + BN statistic accumulation."""
    first = jnp.logical_and(pl.program_id(0) == 0, pl.program_id(1) == 0)

    @pl.when(first)
    def _init():
        sum_ref[...] = jnp.zeros_like(sum_ref)
        sq_ref[...] = jnp.zeros_like(sq_ref)

    acc = jnp.dot(a_ref[...], w_ref[...], preferred_element_type=jnp.float32)
    c_ref[...] = acc.astype(c_ref.dtype)
    # one-pass training-mode BN stats: per-channel sum and sum-of-squares (f32)
    sum_ref[...] += jnp.sum(acc, axis=0, keepdims=True)
    sq_ref[...] += jnp.sum(acc * acc, axis=0, keepdims=True)


def _bn_relu_kernel(c_ref, scale_ref, shift_ref, x_ref):
    c = c_ref[...].astype(jnp.float32)
    y = c * scale_ref[...] + shift_ref[...]
    x_ref[...] = jnp.maximum(y, 0.0).astype(x_ref.dtype)


def _matmul_bias_tanh_kernel(a_ref, w_ref, b_ref, o_ref):
    acc = jnp.dot(a_ref[...], w_ref[...], preferred_element_type=jnp.float32)
    cout = o_ref.shape[-1]                   # real channels (=1); W is lane-padded
    o_ref[...] = jnp.tanh(acc[:, :cout] + b_ref[0, 0])


# ---------------------------------------------------------------------------
# pallas_call wrappers
# ---------------------------------------------------------------------------
def _deconv_matmul_stats(a, w):
    """a: (P, M, Kc) bf16, w: (P, Kc, Cp) bf16 -> (C, sum, sumsq)."""
    p_n, m, kc = a.shape
    cp = w.shape[-1]
    tm = _pick_tm(m)
    return pl.pallas_call(
        _matmul_stats_kernel,
        out_shape=(jax.ShapeDtypeStruct((p_n, m, cp), jnp.bfloat16),
                   jax.ShapeDtypeStruct((1, cp), jnp.float32),
                   jax.ShapeDtypeStruct((1, cp), jnp.float32)),
        grid_spec=pltpu.PrefetchScalarGridSpec(
            num_scalar_prefetch=0,
            grid=(p_n, m // tm),
            in_specs=[
                pl.BlockSpec((None, tm, kc), lambda p, i: (p, i, 0)),
                pl.BlockSpec((None, kc, cp), lambda p, i: (p, 0, 0)),
            ],
            out_specs=[
                pl.BlockSpec((None, tm, cp), lambda p, i: (p, i, 0)),
                pl.BlockSpec((1, cp), lambda p, i: (0, 0)),
                pl.BlockSpec((1, cp), lambda p, i: (0, 0)),
            ]),
        compiler_params=pltpu.CompilerParams(
            # the stat blocks are revisited/accumulated across both axes
            dimension_semantics=("arbitrary", "arbitrary")),
    )(a, w)


def _bn_relu(c2, scale, shift):
    m, cp = c2.shape
    tm = _pick_tm(m)
    return pl.pallas_call(
        _bn_relu_kernel,
        out_shape=jax.ShapeDtypeStruct((m, cp), jnp.bfloat16),
        grid_spec=pltpu.PrefetchScalarGridSpec(
            num_scalar_prefetch=0,
            grid=(m // tm,),
            in_specs=[
                pl.BlockSpec((tm, cp), lambda i: (i, 0)),
                pl.BlockSpec((1, cp), lambda i: (0, 0)),
                pl.BlockSpec((1, cp), lambda i: (0, 0)),
            ],
            out_specs=pl.BlockSpec((tm, cp), lambda i: (i, 0))),
        compiler_params=pltpu.CompilerParams(
            dimension_semantics=("parallel",)),        # megacore-shardable on v7x
    )(c2, scale, shift)


def _deconv_tanh(a, w, b):
    p_n, m, kc = a.shape
    cp = w.shape[-1]
    tm = _pick_tm(m)
    return pl.pallas_call(
        _matmul_bias_tanh_kernel,
        out_shape=jax.ShapeDtypeStruct((p_n, m, 1), jnp.float32),
        grid_spec=pltpu.PrefetchScalarGridSpec(
            num_scalar_prefetch=0,
            grid=(p_n, m // tm),
            in_specs=[
                pl.BlockSpec((None, tm, kc), lambda p, i: (p, i, 0)),
                pl.BlockSpec((None, kc, cp), lambda p, i: (p, 0, 0)),
                pl.BlockSpec(memory_space=pltpu.MemorySpace.SMEM),   # scalar bias
            ],
            out_specs=pl.BlockSpec((None, tm, 1), lambda p, i: (p, i, 0))),
        compiler_params=pltpu.CompilerParams(
            dimension_semantics=("parallel", "parallel")),
    )(a, w, b)


# ---------------------------------------------------------------------------
# im2col glue (XLA): per-parity patch matrices, no zero-dilation anywhere
# ---------------------------------------------------------------------------
def _im2col_stride1(x):
    """stride 1, pad 0: flipped-kernel im2col.  (N,h,w,C) -> ((1, N*ho*wo, 16C), (n,ho,wo))."""
    n, h, w, c = x.shape
    ho, wo = h + K - 1, w + K - 1
    xp = jnp.pad(x, ((0, 0), (K - 1, K - 1), (K - 1, K - 1), (0, 0)))
    cols = [xp[:, a:a + ho, b:b + wo, :] for a in range(K) for b in range(K)]
    a_mat = jnp.concatenate(cols, axis=-1).reshape(n * ho * wo, K * K * c)
    return a_mat[None], (n, ho, wo)


def _im2col_stride2(x):
    """stride 2, pad 1: sub-pixel decomposition.  (N,h,w,C) -> ((4, N*h*w, 4C), (n,h,w)).
    Parity (r, s) of the output pixel (2q+r, 2p+s) only touches the 2x2 input window
    starting at padded position (q+r, p+s); the matching kernel tap is (3-2a-r, 3-2b-s)."""
    n, h, w, c = x.shape
    xp = jnp.pad(x, ((0, 0), (1, 1), (1, 1), (0, 0)))
    mats = []
    for r in range(2):
        for s in range(2):
            cols = [xp[:, r + a:r + a + h, s + b:s + b + w, :]
                    for a in range(2) for b in range(2)]
            mats.append(jnp.concatenate(cols, axis=-1).reshape(n * h * w, 4 * c))
    return jnp.stack(mats, axis=0), (n, h, w)


def _interleave_parities(y, n, h, w):
    """(4, N*h*w, C) per-parity outputs -> (N, 2h, 2w, C)."""
    c = y.shape[-1]
    y = y.reshape(2, 2, n, h, w, c)            # (r, s, n, q, p, c)
    y = jnp.transpose(y, (2, 3, 0, 4, 1, 5))   # (n, q, r, p, s, c)
    return y.reshape(n, 2 * h, 2 * w, c)


# ---------------------------------------------------------------------------
# Weight conversion (hoisted out of the forward) and parameters
# ---------------------------------------------------------------------------
def _weight_stride1(wt):
    """torch (Cin, Cout, 4, 4) -> (1, 16*Cin, Cout) matmul weight (flipped kernel)."""
    mats = [wt[:, :, K - 1 - a, K - 1 - b] for a in range(K) for b in range(K)]
    return jnp.concatenate(mats, axis=0)[None]


def _weight_stride2(wt):
    """torch (Cin, Cout, 4, 4) -> (4, 4*Cin, Cout): per-output-parity tap matrices."""
    out = []
    for r in range(2):
        for s in range(2):
            mats = [wt[:, :, 3 - 2 * a - r, 3 - 2 * b - s]
                    for a in range(2) for b in range(2)]
            out.append(jnp.concatenate(mats, axis=0))
    return jnp.stack(out, axis=0)


def init_params(key, n_z=16, d=8):
    """Torch-layout parameters (deterministic, DCGAN-style init)."""
    chans = [(n_z, d * 8), (d * 8, d * 4), (d * 4, d * 2), (d * 2, 1)]
    keys = jax.random.split(key, 16)
    params, ki = {}, 0
    for i, (cin, cout) in enumerate(chans, start=1):
        params[f"w{i}"] = 0.02 * jax.random.normal(keys[ki], (cin, cout, K, K), jnp.float32); ki += 1
        params[f"b{i}"] = 0.02 * jax.random.normal(keys[ki], (cout,), jnp.float32); ki += 1
        if i < 4:
            params[f"gamma{i}"] = 1.0 + 0.05 * jax.random.normal(keys[ki], (cout,), jnp.float32); ki += 1
            params[f"beta{i}"] = 0.05 * jax.random.normal(keys[ki], (cout,), jnp.float32); ki += 1
    return params


def prepare_params(params):
    """Run once outside the forward: matmul-form weights, lane padding, bf16 cast."""
    prep = {}
    cin_pad_prev = None
    for i, (stride, _pad) in enumerate(LAYER_CFG, start=1):
        wt = params[f"w{i}"].astype(jnp.float32)
        cin, cout = wt.shape[0], wt.shape[1]
        if i > 1:  # previous layer's activation carries lane-padded (all-zero) channels
            wt = jnp.pad(wt, ((0, cin_pad_prev - cin), (0, 0), (0, 0), (0, 0)))
        wm = _weight_stride1(wt) if stride == 1 else _weight_stride2(wt)
        if i < 4:
            cout_pad = _round_up(cout, LANE)
            wm = jnp.pad(wm, ((0, 0), (0, 0), (0, cout_pad - cout)))
            # ConvTranspose2d bias of layers 1-3 is dropped: cancelled by the
            # training-mode BatchNorm mean subtraction.
            prep[f"gamma{i}"] = jnp.pad(params[f"gamma{i}"], (0, cout_pad - cout)).astype(jnp.float32)
            prep[f"beta{i}"] = jnp.pad(params[f"beta{i}"], (0, cout_pad - cout)).astype(jnp.float32)
            cin_pad_prev = cout_pad
        else:
            # final layer: pad Cout (=1) to 128 lanes for the MXU; only column 0 is stored.
            wm = jnp.pad(wm, ((0, 0), (0, 0), (0, LANE - cout)))
            prep["b4"] = params["b4"].reshape(1, 1).astype(jnp.float32)
        prep[f"w{i}"] = wm.astype(jnp.bfloat16)
    return prep


# ---------------------------------------------------------------------------
# Forward pass
# ---------------------------------------------------------------------------
def _bn_scale_shift(s, ss, gamma, beta, m_total):
    """Fold training-mode BN (biased var) into per-channel scale/shift (tiny XLA glue)."""
    mean = s / m_total                                        # (1, Cp)
    var = jnp.maximum(ss / m_total - mean * mean, 0.0)
    scale = gamma[None, :] * jax.lax.rsqrt(var + BN_EPS)
    shift = beta[None, :] - mean * scale
    return scale, shift


def generator_forward(prep, z_nchw):
    x = jnp.transpose(z_nchw, (0, 2, 3, 1)).astype(jnp.bfloat16)   # NCHW -> NHWC

    for i, (stride, _pad) in enumerate(LAYER_CFG, start=1):
        if stride == 1:
            a, (n, h, w) = _im2col_stride1(x)        # (h, w) is already the output spatial
        else:
            a, (n, h, w) = _im2col_stride2(x)        # output spatial is (2h, 2w)

        if i < 4:
            c, s, ss = _deconv_matmul_stats(a, prep[f"w{i}"])
            m_total = a.shape[0] * a.shape[1]        # = N * Ho * Wo
            scale, shift = _bn_scale_shift(s, ss, prep[f"gamma{i}"], prep[f"beta{i}"], m_total)
            cp = c.shape[-1]
            y = _bn_relu(c.reshape(-1, cp), scale, shift)
            if stride == 1:
                x = y.reshape(n, h, w, cp)
            else:
                x = _interleave_parities(y.reshape(4, n * h * w, cp), n, h, w)
        else:
            y = _deconv_tanh(a, prep["w4"], prep["b4"])            # (4, N*h*w, 1) f32
            x = _interleave_parities(y, n, h, w)                   # (N, 2h, 2w, 1)

    return jnp.transpose(x, (0, 3, 1, 2))                          # NHWC -> NCHW


# ---------------------------------------------------------------------------
# Pure-JAX f32 reference (for correctness validation)
# ---------------------------------------------------------------------------
def reference_forward(params, z_nchw):
    x = jnp.transpose(z_nchw, (0, 2, 3, 1)).astype(jnp.float32)
    for i, (stride, pad) in enumerate(LAYER_CFG, start=1):
        wt = params[f"w{i}"].astype(jnp.float32)
        kern = jnp.transpose(wt[:, :, ::-1, ::-1], (2, 3, 0, 1))   # (K, K, Cin, Cout)
        pp = K - 1 - pad
        x = jax.lax.conv_general_dilated(
            x, kern, window_strides=(1, 1), padding=[(pp, pp), (pp, pp)],
            lhs_dilation=(stride, stride),
            dimension_numbers=("NHWC", "HWIO", "NHWC"),
            precision=jax.lax.Precision.HIGHEST)
        x = x + params[f"b{i}"]
        if i < 4:
            mean = jnp.mean(x, axis=(0, 1, 2), keepdims=True)
            var = jnp.mean(jnp.square(x - mean), axis=(0, 1, 2), keepdims=True)
            x = (x - mean) * jax.lax.rsqrt(var + BN_EPS) * params[f"gamma{i}"] + params[f"beta{i}"]
            x = jnp.maximum(x, 0.0)
        else:
            x = jnp.tanh(x)
    return jnp.transpose(x, (0, 3, 1, 2))


if __name__ == "__main__":
    key = jax.random.PRNGKey(0)
    pkey, zkey = jax.random.split(key)
    n_z, d, batch = 16, 8, 2                       # small config (original: n_z=100, d=128)
    params = init_params(pkey, n_z=n_z, d=d)
    prep = prepare_params(params)                  # weight conversion hoisted out of forward
    z = jax.random.normal(zkey, (batch, n_z, 1, 1), jnp.float32)   # PyTorch NCHW input

    out = jax.block_until_ready(jax.jit(generator_forward)(prep, z))

    assert out.shape == (batch, 1, 32, 32), out.shape
    assert bool(jnp.all(jnp.isfinite(out)))
    assert bool(jnp.all(jnp.abs(out) <= 1.0 + 1e-6))               # tanh range

    ref = jax.block_until_ready(jax.jit(reference_forward)(params, z))
    max_err = float(jnp.max(jnp.abs(out - ref)))
    assert max_err < 0.1, f"max |pallas - reference| = {max_err}"

    print("KERNEL_OK")
</pallas_src>

<mosaic_0001>
module attributes {stable_mosaic.version = 11 : i64} {
  func.func @_bn_relu_kernel(%arg0: i32, %arg1: memref<32x128xbf16, #tpu.memory_space<vmem>>, %arg2: memref<1x128xf32, #tpu.memory_space<vmem>>, %arg3: memref<1x128xf32, #tpu.memory_space<vmem>>, %arg4: memref<32x128xbf16, #tpu.memory_space<vmem>>) attributes {dimension_semantics = [#tpu.dimension_semantics<parallel>], iteration_bounds = array<i64: 1>, scalar_prefetch = 0 : i64, scratch_operands = 0 : i64, tpu.core_type = #tpu.core_type<tc>, window_params = [{transform_indices = @transform_0, window_bounds = array<i64: 32, 128>}, {pipeline_mode = #tpu.pipeline_mode<synchronous>, transform_indices = @transform_1, window_bounds = array<i64: 1, 128>}, {pipeline_mode = #tpu.pipeline_mode<synchronous>, transform_indices = @transform_2, window_bounds = array<i64: 1, 128>}, {transform_indices = @transform_3, window_bounds = array<i64: 32, 128>}]} {
    %c0 = arith.constant 0 : index
    %c0_0 = arith.constant 0 : index
    %0 = vector.load %arg1[%c0, %c0_0] : memref<32x128xbf16, #tpu.memory_space<vmem>>, vector<32x128xbf16>
    %1 = arith.extf %0 : vector<32x128xbf16> to vector<32x128xf32>
    %c0_1 = arith.constant 0 : index
    %c0_2 = arith.constant 0 : index
    %2 = vector.load %arg2[%c0_1, %c0_2] : memref<1x128xf32, #tpu.memory_space<vmem>>, vector<1x128xf32>
    %3 = vector.broadcast %2 : vector<1x128xf32> to vector<32x128xf32>
    %4 = arith.mulf %1, %3 : vector<32x128xf32>
    %c0_3 = arith.constant 0 : index
    %c0_4 = arith.constant 0 : index
    %5 = vector.load %arg3[%c0_3, %c0_4] : memref<1x128xf32, #tpu.memory_space<vmem>>, vector<1x128xf32>
    %6 = vector.broadcast %5 : vector<1x128xf32> to vector<32x128xf32>
    %7 = arith.addf %4, %6 : vector<32x128xf32>
    %cst = arith.constant 0.000000e+00 : f32
    %8 = vector.broadcast %cst : f32 to vector<32x128xf32>
    %9 = arith.maximumf %7, %8 : vector<32x128xf32>
    %10 = arith.truncf %9 : vector<32x128xf32> to vector<32x128xbf16>
    %c0_5 = arith.constant 0 : index
    %c0_6 = arith.constant 0 : index
    %11 = vector.load %arg4[%c0_5, %c0_6] : memref<32x128xbf16, #tpu.memory_space<vmem>>, vector<32x128xbf16>
    tpu.vector_store %arg4[%c0_5, %c0_6], %10 {strides = array<i32>} : memref<32x128xbf16, #tpu.memory_space<vmem>>, vector<32x128xbf16>,
    return
  }
  func.func @transform_0(%arg0: i32) -> (i32, i32) {
    %c0_i32 = arith.constant 0 : i32
    %c0_i32_0 = arith.constant 0 : i32
    return %arg0, %c0_i32 : i32, i32
  }
  func.func @transform_1(%arg0: i32) -> (i32, i32) {
    %c0_i32 = arith.constant 0 : i32
    %c0_i32_0 = arith.constant 0 : i32
    %c0_i32_1 = arith.constant 0 : i32
    return %c0_i32, %c0_i32_0 : i32, i32
  }
  func.func @transform_2(%arg0: i32) -> (i32, i32) {
    %c0_i32 = arith.constant 0 : i32
    %c0_i32_0 = arith.constant 0 : i32
    %c0_i32_1 = arith.constant 0 : i32
    return %c0_i32, %c0_i32_0 : i32, i32
  }
  func.func @transform_3(%arg0: i32) -> (i32, i32) {
    %c0_i32 = arith.constant 0 : i32
    %c0_i32_0 = arith.constant 0 : i32
    return %arg0, %c0_i32 : i32, i32
  }
}

module attributes {stable_mosaic.version = 11 : i64} {
  func.func @_matmul_stats_kernel(%arg0: i32, %arg1: i32, %arg2: memref<1x32x256xbf16, #tpu.memory_space<vmem>>, %arg3: memref<1x256x128xbf16, #tpu.memory_space<vmem>>, %arg4: memref<1x32x128xbf16, #tpu.memory_space<vmem>>, %arg5: memref<1x128xf32, #tpu.memory_space<vmem>>, %arg6: memref<1x128xf32, #tpu.memory_space<vmem>>) attributes {dimension_semantics = [#tpu.dimension_semantics<arbitrary>, #tpu.dimension_semantics<arbitrary>], iteration_bounds = array<i64: 1, 1>, scalar_prefetch = 0 : i64, scratch_operands = 0 : i64, tpu.core_type = #tpu.core_type<tc>, window_params = [{transform_indices = @transform_0, window_bounds = array<i64: 1, 32, 256>}, {transform_indices = @transform_1, window_bounds = array<i64: 1, 256, 128>}, {transform_indices = @transform_2, window_bounds = array<i64: 1, 32, 128>}, {pipeline_mode = #tpu.pipeline_mode<synchronous>, transform_indices = @transform_3, window_bounds = array<i64: 1, 128>}, {pipeline_mode = #tpu.pipeline_mode<synchronous>, transform_indices = @transform_4, window_bounds = array<i64: 1, 128>}]} {
    %c0_i32 = arith.constant 0 : i32
    %0 = arith.cmpi eq, %arg0, %c0_i32 : i32
    %c0_i32_0 = arith.constant 0 : i32
    %1 = arith.cmpi eq, %arg1, %c0_i32_0 : i32
    %2 = arith.andi %0, %1 : i1
    %3 = arith.extui %2 : i1 to i32
    %c0_i32_1 = arith.constant 0 : i32
    %4 = arith.cmpi ne, %3, %c0_i32_1 : i32
    scf.if %4 {
      %cst_20 = arith.constant 0.000000e+00 : f32
      %25 = vector.broadcast %cst_20 : f32 to vector<1x128xf32>
      %c0_21 = arith.constant 0 : index
      %c0_22 = arith.constant 0 : index
      %26 = vector.load %arg5[%c0_21, %c0_22] : memref<1x128xf32, #tpu.memory_space<vmem>>, vector<1x128xf32>
      tpu.vector_store %arg5[%c0_21, %c0_22], %25 {strides = array<i32>} : memref<1x128xf32, #tpu.memory_space<vmem>>, vector<1x128xf32>,
      %cst_23 = arith.constant 0.000000e+00 : f32
      %27 = vector.broadcast %cst_23 : f32 to vector<1x128xf32>
      %c0_24 = arith.constant 0 : index
      %c0_25 = arith.constant 0 : index
      %28 = vector.load %arg6[%c0_24, %c0_25] : memref<1x128xf32, #tpu.memory_space<vmem>>, vector<1x128xf32>
      tpu.vector_store %arg6[%c0_24, %c0_25], %27 {strides = array<i32>} : memref<1x128xf32, #tpu.memory_space<vmem>>, vector<1x128xf32>,
    } else {
    }
    %c0 = arith.constant 0 : index
    %c0_2 = arith.constant 0 : index
    %c0_3 = arith.constant 0 : index
    %5 = vector.load %arg2[%c0, %c0_2, %c0_3] : memref<1x32x256xbf16, #tpu.memory_space<vmem>>, vector<1x32x256xbf16>
    %6 = vector.shape_cast %5 : vector<1x32x256xbf16> to vector<32x256xbf16>
    %c0_4 = arith.constant 0 : index
    %c0_5 = arith.constant 0 : index
    %c0_6 = arith.constant 0 : index
    %7 = vector.load %arg3[%c0_4, %c0_5, %c0_6] : memref<1x256x128xbf16, #tpu.memory_space<vmem>>, vector<1x256x128xbf16>
    %8 = vector.shape_cast %7 : vector<1x256x128xbf16> to vector<256x128xbf16>
    %cst = arith.constant dense<0.000000e+00> : vector<32x128xf32>
    %9 = tpu.matmul %6, %8, %cst {dimension_numbers = #tpu.dot_dimension_numbers<[1], [0], [0], [1], [0, 0, 1, 1], [], []>} : vector<32x256xbf16>, vector<256x128xbf16>, vector<32x128xf32> -> vector<32x128xf32>
    %10 = arith.truncf %9 : vector<32x128xf32> to vector<32x128xbf16>
    %c0_7 = arith.constant 0 : index
    %c0_8 = arith.constant 0 : index
    %c0_9 = arith.constant 0 : index
    %11 = vector.load %arg4[%c0_7, %c0_8, %c0_9] : memref<1x32x128xbf16, #tpu.memory_space<vmem>>, vector<1x32x128xbf16>
    %12 = vector.shape_cast %11 : vector<1x32x128xbf16> to vector<32x128xbf16>
    %13 = vector.shape_cast %10 : vector<32x128xbf16> to vector<1x32x128xbf16>
    tpu.vector_store %arg4[%c0_7, %c0_8, %c0_9], %13 {strides = array<i32>} : memref<1x32x128xbf16, #tpu.memory_space<vmem>>, vector<1x32x128xbf16>,
    %c0_10 = arith.constant 0 : index
    %c0_11 = arith.constant 0 : index
    %14 = vector.load %arg5[%c0_10, %c0_11] : memref<1x128xf32, #tpu.memory_space<vmem>>, vector<1x128xf32>
    %cst_12 = arith.constant dense<0.000000e+00> : vector<128xf32>
    %15 = vector.multi_reduction <add>, %9, %cst_12 [0] : vector<32x128xf32> to vector<128xf32>
    %16 = vector.shape_cast %15 : vector<128xf32> to vector<1x128xf32>
    %17 = arith.addf %14, %16 : vector<1x128xf32>
    %c0_13 = arith.constant 0 : index
    %c0_14 = arith.constant 0 : index
    %18 = vector.load %arg5[%c0_13, %c0_14] : memref<1x128xf32, #tpu.memory_space<vmem>>, vector<1x128xf32>
    tpu.vector_store %arg5[%c0_13, %c0_14], %17 {strides = array<i32>} : memref<1x128xf32, #tpu.memory_space<vmem>>, vector<1x128xf32>,
    %c0_15 = arith.constant 0 : index
    %c0_16 = arith.constant 0 : index
    %19 = vector.load %arg6[%c0_15, %c0_16] : memref<1x128xf32, #tpu.memory_space<vmem>>, vector<1x128xf32>
    %20 = arith.mulf %9, %9 : vector<32x128xf32>
    %cst_17 = arith.constant dense<0.000000e+00> : vector<128xf32>
    %21 = vector.multi_reduction <add>, %20, %cst_17 [0] : vector<32x128xf32> to vector<128xf32>
    %22 = vector.shape_cast %21 : vector<128xf32> to vector<1x128xf32>
    %23 = arith.addf %19, %22 : vector<1x128xf32>
    %c0_18 = arith.constant 0 : index
    %c0_19 = arith.constant 0 : index
    %24 = vector.load %arg6[%c0_18, %c0_19] : memref<1x128xf32, #tpu.memory_space<vmem>>, vector<1x128xf32>
    tpu.vector_store %arg6[%c0_18, %c0_19], %23 {strides = array<i32>} : memref<1x128xf32, #tpu.memory_space<vmem>>, vector<1x128xf32>,
    return
  }
  func.func @transform_0(%arg0: i32, %arg1: i32) -> (i32, i32, i32) {
    %c0_i32 = arith.constant 0 : i32
    %c0_i32_0 = arith.constant 0 : i32
    return %arg0, %arg1, %c0_i32 : i32, i32, i32
  }
  func.func @transform_1(%arg0: i32, %arg1: i32) -> (i32, i32, i32) {
    %c0_i32 = arith.constant 0 : i32
    %c0_i32_0 = arith.constant 0 : i32
    %c0_i32_1 = arith.constant 0 : i32
    return %arg0, %c0_i32, %c0_i32_0 : i32, i32, i32
  }
  func.func @transform_2(%arg0: i32, %arg1: i32) -> (i32, i32, i32) {
    %c0_i32 = arith.constant 0 : i32
    %c0_i32_0 = arith.constant 0 : i32
    return %arg0, %arg1, %c0_i32 : i32, i32, i32
  }
  func.func @transform_3(%arg0: i32, %arg1: i32) -> (i32, i32) {
    %c0_i32 = arith.constant 0 : i32
    %c0_i32_0 = arith.constant 0 : i32
    %c0_i32_1 = arith.constant 0 : i32
    return %c0_i32, %c0_i32_0 : i32, i32
  }
  func.func @transform_4(%arg0: i32, %arg1: i32) -> (i32, i32) {
    %c0_i32 = arith.constant 0 : i32
    %c0_i32_0 = arith.constant 0 : i32
    %c0_i32_1 = arith.constant 0 : i32
    return %c0_i32, %c0_i32_0 : i32, i32
  }
}

module attributes {stable_mosaic.version = 11 : i64} {
  func.func @_bn_relu_kernel(%arg0: i32, %arg1: memref<128x128xbf16, #tpu.memory_space<vmem>>, %arg2: memref<1x128xf32, #tpu.memory_space<vmem>>, %arg3: memref<1x128xf32, #tpu.memory_space<vmem>>, %arg4: memref<128x128xbf16, #tpu.memory_space<vmem>>) attributes {dimension_semantics = [#tpu.dimension_semantics<parallel>], iteration_bounds = array<i64: 1>, scalar_prefetch = 0 : i64, scratch_operands = 0 : i64, tpu.core_type = #tpu.core_type<tc>, window_params = [{transform_indices = @transform_0, window_bounds = array<i64: 128, 128>}, {pipeline_mode = #tpu.pipeline_mode<synchronous>, transform_indices = @transform_1, window_bounds = array<i64: 1, 128>}, {pipeline_mode = #tpu.pipeline_mode<synchronous>, transform_indices = @transform_2, window_bounds = array<i64: 1, 128>}, {transform_indices = @transform_3, window_bounds = array<i64: 128, 128>}]} {
    %c0 = arith.constant 0 : index
    %c0_0 = arith.constant 0 : index
    %0 = vector.load %arg1[%c0, %c0_0] : memref<128x128xbf16, #tpu.memory_space<vmem>>, vector<128x128xbf16>
    %1 = arith.extf %0 : vector<128x128xbf16> to vector<128x128xf32>
    %c0_1 = arith.constant 0 : index
    %c0_2 = arith.constant 0 : index
    %2 = vector.load %arg2[%c0_1, %c0_2] : memref<1x128xf32, #tpu.memory_space<vmem>>, vector<1x128xf32>
    %3 = vector.broadcast %2 : vector<1x128xf32> to vector<128x128xf32>
    %4 = arith.mulf %1, %3 : vector<128x128xf32>
    %c0_3 = arith.constant 0 : index
    %c0_4 = arith.constant 0 : index
    %5 = vector.load %arg3[%c0_3, %c0_4] : memref<1x128xf32, #tpu.memory_space<vmem>>, vector<1x128xf32>
    %6 = vector.broadcast %5 : vector<1x128xf32> to vector<128x128xf32>
    %7 = arith.addf %4, %6 : vector<128x128xf32>
    %cst = arith.constant 0.000000e+00 : f32
    %8 = vector.broadcast %cst : f32 to vector<128x128xf32>
    %9 = arith.maximumf %7, %8 : vector<128x128xf32>
    %10 = arith.truncf %9 : vector<128x128xf32> to vector<128x128xbf16>
    %c0_5 = arith.constant 0 : index
    %c0_6 = arith.constant 0 : index
    %11 = vector.load %arg4[%c0_5, %c0_6] : memref<128x128xbf16, #tpu.memory_space<vmem>>, vector<128x128xbf16>
    tpu.vector_store %arg4[%c0_5, %c0_6], %10 {strides = array<i32>} : memref<128x128xbf16, #tpu.memory_space<vmem>>, vector<128x128xbf16>,
    return
  }
  func.func @transform_0(%arg0: i32) -> (i32, i32) {
    %c0_i32 = arith.constant 0 : i32
    %c0_i32_0 = arith.constant 0 : i32
    return %arg0, %c0_i32 : i32, i32
  }
  func.func @transform_1(%arg0: i32) -> (i32, i32) {
    %c0_i32 = arith.constant 0 : i32
    %c0_i32_0 = arith.constant 0 : i32
    %c0_i32_1 = arith.constant 0 : i32
    return %c0_i32, %c0_i32_0 : i32, i32
  }
  func.func @transform_2(%arg0: i32) -> (i32, i32) {
    %c0_i32 = arith.constant 0 : i32
    %c0_i32_0 = arith.constant 0 : i32
    %c0_i32_1 = arith.constant 0 : i32
    return %c0_i32, %c0_i32_0 : i32, i32
  }
  func.func @transform_3(%arg0: i32) -> (i32, i32) {
    %c0_i32 = arith.constant 0 : i32
    %c0_i32_0 = arith.constant 0 : i32
    return %arg0, %c0_i32 : i32, i32
  }
}

module attributes {stable_mosaic.version = 11 : i64} {
  func.func @_matmul_stats_kernel(%arg0: i32, %arg1: i32, %arg2: memref<1x32x512xbf16, #tpu.memory_space<vmem>>, %arg3: memref<1x512x128xbf16, #tpu.memory_space<vmem>>, %arg4: memref<1x32x128xbf16, #tpu.memory_space<vmem>>, %arg5: memref<1x128xf32, #tpu.memory_space<vmem>>, %arg6: memref<1x128xf32, #tpu.memory_space<vmem>>) attributes {dimension_semantics = [#tpu.dimension_semantics<arbitrary>, #tpu.dimension_semantics<arbitrary>], iteration_bounds = array<i64: 4, 1>, scalar_prefetch = 0 : i64, scratch_operands = 0 : i64, tpu.core_type = #tpu.core_type<tc>, window_params = [{transform_indices = @transform_0, window_bounds = array<i64: 1, 32, 512>}, {transform_indices = @transform_1, window_bounds = array<i64: 1, 512, 128>}, {transform_indices = @transform_2, window_bounds = array<i64: 1, 32, 128>}, {pipeline_mode = #tpu.pipeline_mode<synchronous>, transform_indices = @transform_3, window_bounds = array<i64: 1, 128>}, {pipeline_mode = #tpu.pipeline_mode<synchronous>, transform_indices = @transform_4, window_bounds = array<i64: 1, 128>}]} {
    %c0_i32 = arith.constant 0 : i32
    %0 = arith.cmpi eq, %arg0, %c0_i32 : i32
    %c0_i32_0 = arith.constant 0 : i32
    %1 = arith.cmpi eq, %arg1, %c0_i32_0 : i32
    %2 = arith.andi %0, %1 : i1
    %3 = arith.extui %2 : i1 to i32
    %c0_i32_1 = arith.constant 0 : i32
    %4 = arith.cmpi ne, %3, %c0_i32_1 : i32
    scf.if %4 {
      %cst_20 = arith.constant 0.000000e+00 : f32
      %25 = vector.broadcast %cst_20 : f32 to vector<1x128xf32>
      %c0_21 = arith.constant 0 : index
      %c0_22 = arith.constant 0 : index
      %26 = vector.load %arg5[%c0_21, %c0_22] : memref<1x128xf32, #tpu.memory_space<vmem>>, vector<1x128xf32>
      tpu.vector_store %arg5[%c0_21, %c0_22], %25 {strides = array<i32>} : memref<1x128xf32, #tpu.memory_space<vmem>>, vector<1x128xf32>,
      %cst_23 = arith.constant 0.000000e+00 : f32
      %27 = vector.broadcast %cst_23 : f32 to vector<1x128xf32>
      %c0_24 = arith.constant 0 : index
      %c0_25 = arith.constant 0 : index
      %28 = vector.load %arg6[%c0_24, %c0_25] : memref<1x128xf32, #tpu.memory_space<vmem>>, vector<1x128xf32>
      tpu.vector_store %arg6[%c0_24, %c0_25], %27 {strides = array<i32>} : memref<1x128xf32, #tpu.memory_space<vmem>>, vector<1x128xf32>,
    } else {
    }
    %c0 = arith.constant 0 : index
    %c0_2 = arith.constant 0 : index
    %c0_3 = arith.constant 0 : index
    %5 = vector.load %arg2[%c0, %c0_2, %c0_3] : memref<1x32x512xbf16, #tpu.memory_space<vmem>>, vector<1x32x512xbf16>
    %6 = vector.shape_cast %5 : vector<1x32x512xbf16> to vector<32x512xbf16>
    %c0_4 = arith.constant 0 : index
    %c0_5 = arith.constant 0 : index
    %c0_6 = arith.constant 0 : index
    %7 = vector.load %arg3[%c0_4, %c0_5, %c0_6] : memref<1x512x128xbf16, #tpu.memory_space<vmem>>, vector<1x512x128xbf16>
    %8 = vector.shape_cast %7 : vector<1x512x128xbf16> to vector<512x128xbf16>
    %cst = arith.constant dense<0.000000e+00> : vector<32x128xf32>
    %9 = tpu.matmul %6, %8, %cst {dimension_numbers = #tpu.dot_dimension_numbers<[1], [0], [0], [1], [0, 0, 1, 1], [], []>} : vector<32x512xbf16>, vector<512x128xbf16>, vector<32x128xf32> -> vector<32x128xf32>
    %10 = arith.truncf %9 : vector<32x128xf32> to vector<32x128xbf16>
    %c0_7 = arith.constant 0 : index
    %c0_8 = arith.constant 0 : index
    %c0_9 = arith.constant 0 : index
    %11 = vector.load %arg4[%c0_7, %c0_8, %c0_9] : memref<1x32x128xbf16, #tpu.memory_space<vmem>>, vector<1x32x128xbf16>
    %12 = vector.shape_cast %11 : vector<1x32x128xbf16> to vector<32x128xbf16>
    %13 = vector.shape_cast %10 : vector<32x128xbf16> to vector<1x32x128xbf16>
    tpu.vector_store %arg4[%c0_7, %c0_8, %c0_9], %13 {strides = array<i32>} : memref<1x32x128xbf16, #tpu.memory_space<vmem>>, vector<1x32x128xbf16>,
    %c0_10 = arith.constant 0 : index
    %c0_11 = arith.constant 0 : index
    %14 = vector.load %arg5[%c0_10, %c0_11] : memref<1x128xf32, #tpu.memory_space<vmem>>, vector<1x128xf32>
    %cst_12 = arith.constant dense<0.000000e+00> : vector<128xf32>
    %15 = vector.multi_reduction <add>, %9, %cst_12 [0] : vector<32x128xf32> to vector<128xf32>
    %16 = vector.shape_cast %15 : vector<128xf32> to vector<1x128xf32>
    %17 = arith.addf %14, %16 : vector<1x128xf32>
    %c0_13 = arith.constant 0 : index
    %c0_14 = arith.constant 0 : index
    %18 = vector.load %arg5[%c0_13, %c0_14] : memref<1x128xf32, #tpu.memory_space<vmem>>, vector<1x128xf32>
    tpu.vector_store %arg5[%c0_13, %c0_14], %17 {strides = array<i32>} : memref<1x128xf32, #tpu.memory_space<vmem>>, vector<1x128xf32>,
    %c0_15 = arith.constant 0 : index
    %c0_16 = arith.constant 0 : index
    %19 = vector.load %arg6[%c0_15, %c0_16] : memref<1x128xf32, #tpu.memory_space<vmem>>, vector<1x128xf32>
    %20 = arith.mulf %9, %9 : vector<32x128xf32>
    %cst_17 = arith.constant dense<0.000000e+00> : vector<128xf32>
    %21 = vector.multi_reduction <add>, %20, %cst_17 [0] : vector<32x128xf32> to vector<128xf32>
    %22 = vector.shape_cast %21 : vector<128xf32> to vector<1x128xf32>
    %23 = arith.addf %19, %22 : vector<1x128xf32>
    %c0_18 = arith.constant 0 : index
    %c0_19 = arith.constant 0 : index
    %24 = vector.load %arg6[%c0_18, %c0_19] : memref<1x128xf32, #tpu.memory_space<vmem>>, vector<1x128xf32>
    tpu.vector_store %arg6[%c0_18, %c0_19], %23 {strides = array<i32>} : memref<1x128xf32, #tpu.memory_space<vmem>>, vector<1x128xf32>,
    return
  }
  func.func @transform_0(%arg0: i32, %arg1: i32) -> (i32, i32, i32) {
    %c0_i32 = arith.constant 0 : i32
    %c0_i32_0 = arith.constant 0 : i32
    return %arg0, %arg1, %c0_i32 : i32, i32, i32
  }
  func.func @transform_1(%arg0: i32, %arg1: i32) -> (i32, i32, i32) {
    %c0_i32 = arith.constant 0 : i32
    %c0_i32_0 = arith.constant 0 : i32
    %c0_i32_1 = arith.constant 0 : i32
    return %arg0, %c0_i32, %c0_i32_0 : i32, i32, i32
  }
  func.func @transform_2(%arg0: i32, %arg1: i32) -> (i32, i32, i32) {
    %c0_i32 = arith.constant 0 : i32
    %c0_i32_0 = arith.constant 0 : i32
    return %arg0, %arg1, %c0_i32 : i32, i32, i32
  }
  func.func @transform_3(%arg0: i32, %arg1: i32) -> (i32, i32) {
    %c0_i32 = arith.constant 0 : i32
    %c0_i32_0 = arith.constant 0 : i32
    %c0_i32_1 = arith.constant 0 : i32
    return %c0_i32, %c0_i32_0 : i32, i32
  }
  func.func @transform_4(%arg0: i32, %arg1: i32) -> (i32, i32) {
    %c0_i32 = arith.constant 0 : i32
    %c0_i32_0 = arith.constant 0 : i32
    %c0_i32_1 = arith.constant 0 : i32
    return %c0_i32, %c0_i32_0 : i32, i32
  }
}

module attributes {stable_mosaic.version = 11 : i64} {
  func.func @_matmul_stats_kernel(%arg0: i32, %arg1: i32, %arg2: memref<1x128x512xbf16, #tpu.memory_space<vmem>>, %arg3: memref<1x512x128xbf16, #tpu.memory_space<vmem>>, %arg4: memref<1x128x128xbf16, #tpu.memory_space<vmem>>, %arg5: memref<1x128xf32, #tpu.memory_space<vmem>>, %arg6: memref<1x128xf32, #tpu.memory_space<vmem>>) attributes {dimension_semantics = [#tpu.dimension_semantics<arbitrary>, #tpu.dimension_semantics<arbitrary>], iteration_bounds = array<i64: 4, 1>, scalar_prefetch = 0 : i64, scratch_operands = 0 : i64, tpu.core_type = #tpu.core_type<tc>, window_params = [{transform_indices = @transform_0, window_bounds = array<i64: 1, 128, 512>}, {transform_indices = @transform_1, window_bounds = array<i64: 1, 512, 128>}, {transform_indices = @transform_2, window_bounds = array<i64: 1, 128, 128>}, {pipeline_mode = #tpu.pipeline_mode<synchronous>, transform_indices = @transform_3, window_bounds = array<i64: 1, 128>}, {pipeline_mode = #tpu.pipeline_mode<synchronous>, transform_indices = @transform_4, window_bounds = array<i64: 1, 128>}]} {
    %c0_i32 = arith.constant 0 : i32
    %0 = arith.cmpi eq, %arg0, %c0_i32 : i32
    %c0_i32_0 = arith.constant 0 : i32
    %1 = arith.cmpi eq, %arg1, %c0_i32_0 : i32
    %2 = arith.andi %0, %1 : i1
    %3 = arith.extui %2 : i1 to i32
    %c0_i32_1 = arith.constant 0 : i32
    %4 = arith.cmpi ne, %3, %c0_i32_1 : i32
    scf.if %4 {
      %cst_20 = arith.constant 0.000000e+00 : f32
      %25 = vector.broadcast %cst_20 : f32 to vector<1x128xf32>
      %c0_21 = arith.constant 0 : index
      %c0_22 = arith.constant 0 : index
      %26 = vector.load %arg5[%c0_21, %c0_22] : memref<1x128xf32, #tpu.memory_space<vmem>>, vector<1x128xf32>
      tpu.vector_store %arg5[%c0_21, %c0_22], %25 {strides = array<i32>} : memref<1x128xf32, #tpu.memory_space<vmem>>, vector<1x128xf32>,
      %cst_23 = arith.constant 0.000000e+00 : f32
      %27 = vector.broadcast %cst_23 : f32 to vector<1x128xf32>
      %c0_24 = arith.constant 0 : index
      %c0_25 = arith.constant 0 : index
      %28 = vector.load %arg6[%c0_24, %c0_25] : memref<1x128xf32, #tpu.memory_space<vmem>>, vector<1x128xf32>
      tpu.vector_store %arg6[%c0_24, %c0_25], %27 {strides = array<i32>} : memref<1x128xf32, #tpu.memory_space<vmem>>, vector<1x128xf32>,
    } else {
    }
    %c0 = arith.constant 0 : index
    %c0_2 = arith.constant 0 : index
    %c0_3 = arith.constant 0 : index
    %5 = vector.load %arg2[%c0, %c0_2, %c0_3] : memref<1x128x512xbf16, #tpu.memory_space<vmem>>, vector<1x128x512xbf16>
    %6 = vector.shape_cast %5 : vector<1x128x512xbf16> to vector<128x512xbf16>
    %c0_4 = arith.constant 0 : index
    %c0_5 = arith.constant 0 : index
    %c0_6 = arith.constant 0 : index
    %7 = vector.load %arg3[%c0_4, %c0_5, %c0_6] : memref<1x512x128xbf16, #tpu.memory_space<vmem>>, vector<1x512x128xbf16>
    %8 = vector.shape_cast %7 : vector<1x512x128xbf16> to vector<512x128xbf16>
    %cst = arith.constant dense<0.000000e+00> : vector<128x128xf32>
    %9 = tpu.matmul %6, %8, %cst {dimension_numbers = #tpu.dot_dimension_numbers<[1], [0], [0], [1], [0, 0, 1, 1], [], []>} : vector<128x512xbf16>, vector<512x128xbf16>, vector<128x128xf32> -> vector<128x128xf32>
    %10 = arith.truncf %9 : vector<128x128xf32> to vector<128x128xbf16>
    %c0_7 = arith.constant 0 : index
    %c0_8 = arith.constant 0 : index
    %c0_9 = arith.constant 0 : index
    %11 = vector.load %arg4[%c0_7, %c0_8, %c0_9] : memref<1x128x128xbf16, #tpu.memory_space<vmem>>, vector<1x128x128xbf16>
    %12 = vector.shape_cast %11 : vector<1x128x128xbf16> to vector<128x128xbf16>
    %13 = vector.shape_cast %10 : vector<128x128xbf16> to vector<1x128x128xbf16>
    tpu.vector_store %arg4[%c0_7, %c0_8, %c0_9], %13 {strides = array<i32>} : memref<1x128x128xbf16, #tpu.memory_space<vmem>>, vector<1x128x128xbf16>,
    %c0_10 = arith.constant 0 : index
    %c0_11 = arith.constant 0 : index
    %14 = vector.load %arg5[%c0_10, %c0_11] : memref<1x128xf32, #tpu.memory_space<vmem>>, vector<1x128xf32>
    %cst_12 = arith.constant dense<0.000000e+00> : vector<128xf32>
    %15 = vector.multi_reduction <add>, %9, %cst_12 [0] : vector<128x128xf32> to vector<128xf32>
    %16 = vector.shape_cast %15 : vector<128xf32> to vector<1x128xf32>
    %17 = arith.addf %14, %16 : vector<1x128xf32>
    %c0_13 = arith.constant 0 : index
    %c0_14 = arith.constant 0 : index
    %18 = vector.load %arg5[%c0_13, %c0_14] : memref<1x128xf32, #tpu.memory_space<vmem>>, vector<1x128xf32>
    tpu.vector_store %arg5[%c0_13, %c0_14], %17 {strides = array<i32>} : memref<1x128xf32, #tpu.memory_space<vmem>>, vector<1x128xf32>,
    %c0_15 = arith.constant 0 : index
    %c0_16 = arith.constant 0 : index
    %19 = vector.load %arg6[%c0_15, %c0_16] : memref<1x128xf32, #tpu.memory_space<vmem>>, vector<1x128xf32>
    %20 = arith.mulf %9, %9 : vector<128x128xf32>
    %cst_17 = arith.constant dense<0.000000e+00> : vector<128xf32>
    %21 = vector.multi_reduction <add>, %20, %cst_17 [0] : vector<128x128xf32> to vector<128xf32>
    %22 = vector.shape_cast %21 : vector<128xf32> to vector<1x128xf32>
    %23 = arith.addf %19, %22 : vector<1x128xf32>
    %c0_18 = arith.constant 0 : index
    %c0_19 = arith.constant 0 : index
    %24 = vector.load %arg6[%c0_18, %c0_19] : memref<1x128xf32, #tpu.memory_space<vmem>>, vector<1x128xf32>
    tpu.vector_store %arg6[%c0_18, %c0_19], %23 {strides = array<i32>} : memref<1x128xf32, #tpu.memory_space<vmem>>, vector<1x128xf32>,
    return
  }
  func.func @transform_0(%arg0: i32, %arg1: i32) -> (i32, i32, i32) {
    %c0_i32 = arith.constant 0 : i32
    %c0_i32_0 = arith.constant 0 : i32
    return %arg0, %arg1, %c0_i32 : i32, i32, i32
  }
  func.func @transform_1(%arg0: i32, %arg1: i32) -> (i32, i32, i32) {
    %c0_i32 = arith.constant 0 : i32
    %c0_i32_0 = arith.constant 0 : i32
    %c0_i32_1 = arith.constant 0 : i32
    return %arg0, %c0_i32, %c0_i32_0 : i32, i32, i32
  }
  func.func @transform_2(%arg0: i32, %arg1: i32) -> (i32, i32, i32) {
    %c0_i32 = arith.constant 0 : i32
    %c0_i32_0 = arith.constant 0 : i32
    return %arg0, %arg1, %c0_i32 : i32, i32, i32
  }
  func.func @transform_3(%arg0: i32, %arg1: i32) -> (i32, i32) {
    %c0_i32 = arith.constant 0 : i32
    %c0_i32_0 = arith.constant 0 : i32
    %c0_i32_1 = arith.constant 0 : i32
    return %c0_i32, %c0_i32_0 : i32, i32
  }
  func.func @transform_4(%arg0: i32, %arg1: i32) -> (i32, i32) {
    %c0_i32 = arith.constant 0 : i32
    %c0_i32_0 = arith.constant 0 : i32
    %c0_i32_1 = arith.constant 0 : i32
    return %c0_i32, %c0_i32_0 : i32, i32
  }
}

module attributes {stable_mosaic.version = 11 : i64} {
  func.func @_bn_relu_kernel(%arg0: i32, %arg1: memref<512x128xbf16, #tpu.memory_space<vmem>>, %arg2: memref<1x128xf32, #tpu.memory_space<vmem>>, %arg3: memref<1x128xf32, #tpu.memory_space<vmem>>, %arg4: memref<512x128xbf16, #tpu.memory_space<vmem>>) attributes {dimension_semantics = [#tpu.dimension_semantics<parallel>], iteration_bounds = array<i64: 1>, scalar_prefetch = 0 : i64, scratch_operands = 0 : i64, tpu.core_type = #tpu.core_type<tc>, window_params = [{transform_indices = @transform_0, window_bounds = array<i64: 512, 128>}, {pipeline_mode = #tpu.pipeline_mode<synchronous>, transform_indices = @transform_1, window_bounds = array<i64: 1, 128>}, {pipeline_mode = #tpu.pipeline_mode<synchronous>, transform_indices = @transform_2, window_bounds = array<i64: 1, 128>}, {transform_indices = @transform_3, window_bounds = array<i64: 512, 128>}]} {
    %c0 = arith.constant 0 : index
    %c0_0 = arith.constant 0 : index
    %0 = vector.load %arg1[%c0, %c0_0] : memref<512x128xbf16, #tpu.memory_space<vmem>>, vector<512x128xbf16>
    %1 = arith.extf %0 : vector<512x128xbf16> to vector<512x128xf32>
    %c0_1 = arith.constant 0 : index
    %c0_2 = arith.constant 0 : index
    %2 = vector.load %arg2[%c0_1, %c0_2] : memref<1x128xf32, #tpu.memory_space<vmem>>, vector<1x128xf32>
    %3 = vector.broadcast %2 : vector<1x128xf32> to vector<512x128xf32>
    %4 = arith.mulf %1, %3 : vector<512x128xf32>
    %c0_3 = arith.constant 0 : index
    %c0_4 = arith.constant 0 : index
    %5 = vector.load %arg3[%c0_3, %c0_4] : memref<1x128xf32, #tpu.memory_space<vmem>>, vector<1x128xf32>
    %6 = vector.broadcast %5 : vector<1x128xf32> to vector<512x128xf32>
    %7 = arith.addf %4, %6 : vector<512x128xf32>
    %cst = arith.constant 0.000000e+00 : f32
    %8 = vector.broadcast %cst : f32 to vector<512x128xf32>
    %9 = arith.maximumf %7, %8 : vector<512x128xf32>
    %10 = arith.truncf %9 : vector<512x128xf32> to vector<512x128xbf16>
    %c0_5 = arith.constant 0 : index
    %c0_6 = arith.constant 0 : index
    %11 = vector.load %arg4[%c0_5, %c0_6] : memref<512x128xbf16, #tpu.memory_space<vmem>>, vector<512x128xbf16>
    tpu.vector_store %arg4[%c0_5, %c0_6], %10 {strides = array<i32>} : memref<512x128xbf16, #tpu.memory_space<vmem>>, vector<512x128xbf16>,
    return
  }
  func.func @transform_0(%arg0: i32) -> (i32, i32) {
    %c0_i32 = arith.constant 0 : i32
    %c0_i32_0 = arith.constant 0 : i32
    return %arg0, %c0_i32 : i32, i32
  }
  func.func @transform_1(%arg0: i32) -> (i32, i32) {
    %c0_i32 = arith.constant 0 : i32
    %c0_i32_0 = arith.constant 0 : i32
    %c0_i32_1 = arith.constant 0 : i32
    return %c0_i32, %c0_i32_0 : i32, i32
  }
  func.func @transform_2(%arg0: i32) -> (i32, i32) {
    %c0_i32 = arith.constant 0 : i32
    %c0_i32_0 = arith.constant 0 : i32
    %c0_i32_1 = arith.constant 0 : i32
    return %c0_i32, %c0_i32_0 : i32, i32
  }
  func.func @transform_3(%arg0: i32) -> (i32, i32) {
    %c0_i32 = arith.constant 0 : i32
    %c0_i32_0 = arith.constant 0 : i32
    return %arg0, %c0_i32 : i32, i32
  }
}

module attributes {stable_mosaic.version = 11 : i64} {
  func.func @_matmul_bias_tanh_kernel(%arg0: i32, %arg1: i32, %arg2: memref<1x512x512xbf16, #tpu.memory_space<vmem>>, %arg3: memref<1x512x128xbf16, #tpu.memory_space<vmem>>, %arg4: memref<1x1xf32, #tpu.memory_space<smem>>, %arg5: memref<1x512x1xf32, #tpu.memory_space<vmem>>) attributes {dimension_semantics = [#tpu.dimension_semantics<parallel>, #tpu.dimension_semantics<parallel>], iteration_bounds = array<i64: 4, 1>, scalar_prefetch = 0 : i64, scratch_operands = 0 : i64, tpu.core_type = #tpu.core_type<tc>, window_params = [{transform_indices = @transform_0, window_bounds = array<i64: 1, 512, 512>}, {transform_indices = @transform_1, window_bounds = array<i64: 1, 512, 128>}, {transform_indices = @transform_2, window_bounds = array<i64: 1, 1>}, {transform_indices = @transform_3, window_bounds = array<i64: 1, 512, 1>}]} {
    %c0 = arith.constant 0 : index
    %c0_0 = arith.constant 0 : index
    %c0_1 = arith.constant 0 : index
    %0 = vector.load %arg2[%c0, %c0_0, %c0_1] : memref<1x512x512xbf16, #tpu.memory_space<vmem>>, vector<1x512x512xbf16>
    %1 = vector.shape_cast %0 : vector<1x512x512xbf16> to vector<512x512xbf16>
    %c0_2 = arith.constant 0 : index
    %c0_3 = arith.constant 0 : index
    %c0_4 = arith.constant 0 : index
    %2 = vector.load %arg3[%c0_2, %c0_3, %c0_4] : memref<1x512x128xbf16, #tpu.memory_space<vmem>>, vector<1x512x128xbf16>
    %3 = vector.shape_cast %2 : vector<1x512x128xbf16> to vector<512x128xbf16>
    %cst = arith.constant dense<0.000000e+00> : vector<512x128xf32>
    %4 = tpu.matmul %1, %3, %cst {dimension_numbers = #tpu.dot_dimension_numbers<[1], [0], [0], [1], [0, 0, 1, 1], [], []>} : vector<512x512xbf16>, vector<512x128xbf16>, vector<512x128xf32> -> vector<512x128xf32>
    %5 = vector.extract_strided_slice %4 {offsets = [0, 0], sizes = [512, 1], strides = [1, 1]} : vector<512x128xf32> to vector<512x1xf32>
    %c0_5 = arith.constant 0 : index
    %c0_6 = arith.constant 0 : index
    %6 = memref.load %arg4[%c0_5, %c0_6] : memref<1x1xf32, #tpu.memory_space<smem>>
    %7 = vector.broadcast %6 : f32 to vector<512x1xf32>
    %8 = arith.addf %5, %7 : vector<512x1xf32>
    %9 = math.tanh %8 : vector<512x1xf32>
    %c0_7 = arith.constant 0 : index
    %c0_8 = arith.constant 0 : index
    %c0_9 = arith.constant 0 : index
    %10 = vector.load %arg5[%c0_7, %c0_8, %c0_9] : memref<1x512x1xf32, #tpu.memory_space<vmem>>, vector<1x512x1xf32>
    %11 = vector.shape_cast %10 : vector<1x512x1xf32> to vector<512x1xf32>
    %12 = vector.shape_cast %9 : vector<512x1xf32> to vector<1x512x1xf32>
    tpu.vector_store %arg5[%c0_7, %c0_8, %c0_9], %12 {strides = array<i32>} : memref<1x512x1xf32, #tpu.memory_space<vmem>>, vector<1x512x1xf32>,
    return
  }
  func.func @transform_0(%arg0: i32, %arg1: i32) -> (i32, i32, i32) {
    %c0_i32 = arith.constant 0 : i32
    %c0_i32_0 = arith.constant 0 : i32
    return %arg0, %arg1, %c0_i32 : i32, i32, i32
  }
  func.func @transform_1(%arg0: i32, %arg1: i32) -> (i32, i32, i32) {
    %c0_i32 = arith.constant 0 : i32
    %c0_i32_0 = arith.constant 0 : i32
    %c0_i32_1 = arith.constant 0 : i32
    return %arg0, %c0_i32, %c0_i32_0 : i32, i32, i32
  }
  func.func @transform_2(%arg0: i32, %arg1: i32) -> (i32, i32) {
    %c0_i32 = arith.constant 0 : i32
    %c0_i32_0 = arith.constant 0 : i32
    %c0_i32_1 = arith.constant 0 : i32
    return %c0_i32, %c0_i32_0 : i32, i32
  }
  func.func @transform_3(%arg0: i32, %arg1: i32) -> (i32, i32, i32) {
    %c0_i32 = arith.constant 0 : i32
    %c0_i32_0 = arith.constant 0 : i32
    return %arg0, %arg1, %c0_i32 : i32, i32, i32
  }
}

</mosaic_0001>

<bundles_post_ra>
// kernel: generator_forward.8
= control target key start
LH: loop header
LB: loop body
LE: loop exit
PB: predicated region body
PF: predicated region fallthrough
CT: control target
= control target key end

     0   :  { %s140_s0 = inlined_call_operand.vmem [shape: bf16[32,128], index: 0, kind: input, shape index: {}]   ;;  %s141_s1 = inlined_call_operand.vmem [shape: f32[1,128], index: 1, kind: input, shape index: {}]   ;;  %s142_s2 = inlined_call_operand.vmem [shape: f32[1,128], index: 2, kind: input, shape index: {}]   ;;  %s143_s3 = inlined_call_operand.vmem [shape: bf16[32,128], index: 3, kind: output, shape index: {}]  }
   0x1   :  { %v83_v0 = vld [vmem:[%s140_s0] sm:$0xff]   ;;  %v100_v4 = vld [vmem:[%s140_s0 + $0x8] sm:$0xff]  }
   0x2   :  { %v72_v1 = vld [vmem:[%s141_s1] ss:$0 sm:$0xff]  ;;  %v84_v2 = vunpack.c.l.bf16 %v83_v0  ;;  %v85_v3 = vunpack.c.h.bf16 %v83_v0  ;;  %v88_v6 = vunpack.c.l.bf16 %v100_v4  ;;  %v89_v7 = vunpack.c.h.bf16 %v100_v4 }
   0x3   :  { %v73_v5 = vld [vmem:[%s142_s2] ss:$0 sm:$0xff] }
   0x4   :  { %v29_v8 = vmul.f32 %v84_v2, %v72_v1  ;;  %v30_v9 = vmul.f32 %v85_v3, %v72_v1  ;;  %v31_v10 = vmul.f32 %v88_v6, %v72_v1  ;;  %v32_v11 = vmul.f32 %v89_v7, %v72_v1 }
   0x6   :  { %v40_v12 = vadd.f32 %v73_v5, %v29_v8  ;;  %v41_v13 = vadd.f32 %v73_v5, %v30_v9  ;;  %v42_v14 = vadd.f32 %v73_v5, %v31_v10  ;;  %v43_v15 = vadd.f32 %v73_v5, %v32_v11 }
   0x8   :  { %v44_v16 = vmax.f32 %v40_v12, 0.0  ;;  %v45_v17 = vmax.f32 %v41_v13, 0.0  ;;  %v46_v18 = vmax.f32 %v42_v14, 0.0  ;;  %v47_v19 = vmax.f32 %v43_v15, 0.0 }
   0xa   :  { %v93_v20 = vpack.c.bf16 %v45_v17, %v44_v16  ;;  %v98_v21 = vpack.c.bf16 %v47_v19, %v46_v18 }
   0xc   :  { %94 = vst [vmem:[%s143_s3] sm:$0xff] %v93_v20   ;;  %101 = vst [vmem:[%s143_s3 + $0x8] sm:$0xff] %v98_v21  }

// kernel: generator_forward.7
= control target key start
LH: loop header
LB: loop body
LE: loop exit
PB: predicated region body
PF: predicated region fallthrough
CT: control target
= control target key end

     0   :  { %10 = vsyncpa [#allocation3], 0  ;;  %s432_s15 = smov [#allocation2]   ;;  %s509_s0 = inlined_call_operand.vmem [shape: bf16[1,32,256], index: 0, kind: input, shape index: {}]   ;;  %s510_s1 = inlined_call_operand.hbm [shape: bf16[1,256,128], index: 1, kind: input, shape index: {}]   ;;  %s511_s2 = inlined_call_operand.vmem [shape: bf16[1,32,128], index: 2, kind: output, shape index: {0}]   ;;  %s512_s3 = inlined_call_operand.vmem [shape: f32[1,128], index: 3, kind: output, shape index: {1}]   ;;  %s513_s4 = inlined_call_operand.vmem [shape: f32[1,128], index: 4, kind: output, shape index: {2}]  }
   0x1   :  { %s18_s16 = sshll.u32 %s432_s15, 4  ;;  %s408_s19 = scalar_lea.hbm %s510_s1, 2048  ;;  %s19_s16 = int_to_ptr.vmem [resolvable:$true] %s18_s16 }
   0x2   :  { %p409_p0 = scmp.ne.s32.totalorder %s510_s1, %s408_s19  ;;  %p412_p1 = scmp.lt.u32.totalorder %s408_s19, %s510_s1 }
   0x4   :  { %p414_p2 = pnand %p412_p1, %p409_p0 }
   0x6   :  { %417 = shalt.err (!%p414_p2)
}
   0x7   :  { %s418_s24 = scalar_lea.vmem %s19_s16, 2048  ;;  %p423_p4 = scmp.lt.s32.totalorder %s19_s16, %s19_s16 }
   0x8   :  { %p419_p3 = scmp.ne.s32.totalorder %s19_s16, %s418_s24  ;;  %p424_p5 = scmp.lt.s32.totalorder %s418_s24, %s418_s24 }
   0xa   :  { %p425_p6 = por %p424_p5, %p423_p4 }
   0xc   :  { %p426_p7 = pnand %p425_p6, %p419_p3 }
   0xe   :  { %429 = shalt.err (!%p426_p7)
}
   0xf   :  { %s433_s25 = smov 64   ;;  %s434_s26 = smov 4  }
  0x10   :  { %24 = dma.hbm_to_vmem [thread:$0]  %s510_s1, 2048, %s19_s16, [#allocation3], %s433_s25, %s433_s25, %s434_s26  }
  0x11   :  { %430 = dma.done.wait [#allocation3], 2048  }
  0x12   :  { %431 = vsyncadd [#allocation3], 4294965248  ;;  %v386_v0 = vld [vmem:[#allocation2 + $0x40] sm:$0xff]   ;;  %v388_v2 = vld [vmem:[#allocation2 + $0x48] sm:$0xff]   ;;  %v435_v20 = vmov 0.0  }
  0x13   :  { %v387_v1 = vld [vmem:[#allocation2] sm:$0xff]   ;;  %338 = vmatprep.subr.bf16.mxu0 %v386_v0  ;;  %366 = vmatprep.subr.bf16.mxu1 %v386_v0  ;;  %v389_v3 = vld [vmem:[#allocation2 + $0x8] sm:$0xff]   ;;  %v390_v4 = vld [vmem:[#allocation2 + $0x50] sm:$0xff]   ;;  %35 = vst [vmem:[%s512_s3] sm:$0x1] %v435_v20 }
  0x14   :  { %339 = vmatpush3.bf16.msra.mxu0 %v387_v1  ;;  %374 = vmatpush3.bf16.msra.mxu1 %v387_v1  ;;  %v391_v5 = vld [vmem:[#allocation2 + $0x10] sm:$0xff]   ;;  %v392_v6 = vld [vmem:[#allocation2 + $0x58] sm:$0xff]   ;;  %v394_v8 = vld [vmem:[#allocation2 + $0x60] sm:$0xff]   ;;  %36 = vst [vmem:[%s513_s4] sm:$0x1] %v435_v20 }
  0x15   :  { %340 = vmatprep.subr.bf16.mxu0 %v388_v2  ;;  %367 = vmatprep.subr.bf16.mxu1 %v388_v2  ;;  %v393_v7 = vld [vmem:[#allocation2 + $0x18] sm:$0xff]   ;;  %v395_v9 = vld [vmem:[#allocation2 + $0x20] sm:$0xff]   ;;  %v396_v10 = vld [vmem:[#allocation2 + $0x68] sm:$0xff]  }
  0x16   :  { %v404_v11 = vld [vmem:[%s509_s0 + $0x4] ss:$8 sps:$4 sm:$0xff]   ;;  %v407_v12 = vld [vmem:[%s509_s0 + $0x14] ss:$8 sps:$4 sm:$0xff]   ;;  %v402_v18 = vld [vmem:[%s509_s0] ss:$8 sps:$4 sm:$0xff]  }
  0x17   :  { %v397_v13 = vld [vmem:[#allocation2 + $0x28] sm:$0xff]   ;;  %v398_v14 = vld [vmem:[#allocation2 + $0x70] sm:$0xff]   ;;  %221 = vmatprep.mubr.bf16.mxu0 %v404_v11  ;;  %229 = vmatprep.mubr.bf16.mxu1 %v407_v12  ;;  %v400_v16 = vld [vmem:[#allocation2 + $0x78] sm:$0xff]  }
  0x18   :  { %341 = vmatpush3.bf16.msra.mxu0 %v389_v3  ;;  %375 = vmatpush3.bf16.msra.mxu1 %v389_v3  ;;  %v399_v15 = vld [vmem:[#allocation2 + $0x30] sm:$0xff]   ;;  %v401_v17 = vld [vmem:[#allocation2 + $0x38] sm:$0xff]  }
  0x19   :  { %342 = vmatprep.subr.bf16.mxu0 %v390_v4  ;;  %368 = vmatprep.subr.bf16.mxu1 %v390_v4  ;;  %v405_v19 = vld [vmem:[%s509_s0 + $0x10] ss:$8 sps:$4 sm:$0xff]  }
  0x1a   :  { %v258_v54 = vld [vmem:[%s512_s3] sm:$0x1] }
  0x1b   :  { %v270_v57 = vld [vmem:[%s513_s4] sm:$0x1] }
  0x1c   :  { %343 = vmatpush3.bf16.msra.mxu0 %v391_v5  ;;  %376 = vmatpush3.bf16.msra.mxu1 %v391_v5 }
  0x1d   :  { %344 = vmatprep.subr.bf16.mxu0 %v392_v6  ;;  %369 = vmatprep.subr.bf16.mxu1 %v392_v6 }
  0x20   :  { %345 = vmatpush3.bf16.msra.mxu0 %v393_v7  ;;  %377 = vmatpush3.bf16.msra.mxu1 %v393_v7 }
  0x21   :  { %346 = vmatprep.subr.bf16.mxu0 %v394_v8  ;;  %370 = vmatprep.subr.bf16.mxu1 %v394_v8 }
  0x24   :  { %347 = vmatpush3.bf16.msra.mxu0 %v395_v9  ;;  %378 = vmatpush3.bf16.msra.mxu1 %v395_v9 }
  0x25   :  { %348 = vmatprep.subr.bf16.mxu0 %v396_v10  ;;  %371 = vmatprep.subr.bf16.mxu1 %v396_v10 }
  0x28   :  { %349 = vmatpush3.bf16.msra.mxu0 %v397_v13  ;;  %379 = vmatpush3.bf16.msra.mxu1 %v397_v13 }
  0x29   :  { %350 = vmatprep.subr.bf16.mxu0 %v398_v14  ;;  %372 = vmatprep.subr.bf16.mxu1 %v398_v14 }
  0x2c   :  { %351 = vmatpush3.bf16.msra.mxu0 %v399_v15  ;;  %380 = vmatpush3.bf16.msra.mxu1 %v399_v15 }
  0x2d   :  { %352 = vmatprep.subr.bf16.mxu0 %v400_v16  ;;  %373 = vmatprep.subr.bf16.mxu1 %v400_v16 }
  0x30   :  { %353 = vmatpush3.bf16.msra.mxu0 %v401_v17  ;;  %381 = vmatpush3.bf16.msra.mxu1 %v401_v17 }
  0x33   :  { %222 = vmatmul.mubr.bf16.vlgmr.msra.gmra.mrb[0].mxu0 %v402_v18  ;;  %230 = vmatmul.mubr.bf16.vlgmr.msra.gmra.mrb[0].mxu1 %v405_v19 }
 0x106   :  { %v354_v21 = vpop.f32.mrb[0].mxu0  ;;  %v360_v22 = vpop.f32.mrb[0].mxu1 }
 0x107   :  { %v355_v23 = vpop.f32.mrb[1].mxu0  ;;  %v361_v24 = vpop.f32.mrb[1].mxu1 }
 0x108   :  { %v356_v25 = vadd.f32 %v355_v23, %v354_v21  ;;  %v357_v26 = vpop.f32.mrb[2].mxu0  ;;  %v362_v27 = vadd.f32 %v361_v24, %v360_v22  ;;  %v363_v28 = vpop.f32.mrb[2].mxu1 }
 0x109   :  { %v358_v29 = vpop.f32.mrb[3].mxu0  ;;  %v364_v30 = vpop.f32.mrb[3].mxu1 }
 0x10a   :  { %v359_v31 = vadd.f32 %v358_v29, %v357_v26  ;;  %v365_v32 = vadd.f32 %v364_v30, %v363_v28  ;;  %v271_v33 = vmul.f32 %v356_v25, %v356_v25  ;;  %v273_v34 = vmul.f32 %v362_v27, %v362_v27 }
 0x10c   :  { %v330_v35 = vpack.c.bf16 %v359_v31, %v356_v25  ;;  %v259_v36 = vadd.f32 %v359_v31, %v356_v25  ;;  %v272_v37 = vmul.f32 %v359_v31, %v359_v31  ;;  %v335_v38 = vpack.c.bf16 %v365_v32, %v362_v27 }
 0x10d   :  { %v274_v42 = vmul.f32 %v365_v32, %v365_v32 }
 0x10e   :  { %331 = vst [vmem:[%s511_s2] sm:$0xff] %v330_v35   ;;  %v275_v39 = vadd.f32 %v272_v37, %v271_v33  ;;  %337 = vst [vmem:[%s511_s2 + $0x8] sm:$0xff] %v335_v38   ;;  %v260_v40 = vadd.f32 %v362_v27, %v259_v36 }
 0x110   :  { %v261_v41 = vadd.f32 %v365_v32, %v260_v40  ;;  %v276_v43 = vadd.f32 %v275_v39, %v273_v34 }
 0x112   :  { %v262_v44 = vrot.slane %v261_v41, 4  ;;  %v277_v45 = vadd.f32 %v276_v43, %v274_v42 }
 0x114   :  { %v263_v46 = vadd.f32 %v262_v44, %v261_v41  ;;  %v278_v47 = vrot.slane %v277_v45, 4 }
 0x116   :  { %v264_v48 = vrot.slane %v263_v46, 2  ;;  %v279_v49 = vadd.f32 %v278_v47, %v277_v45 }
 0x118   :  { %v265_v50 = vadd.f32 %v264_v48, %v263_v46  ;;  %v280_v51 = vrot.slane %v279_v49, 2 }
 0x11a   :  { %v266_v52 = vrot.slane %v265_v50, 1  ;;  %v281_v53 = vadd.f32 %v280_v51, %v279_v49 }
 0x11c   :  { %v267_v55 = vadd.f32 %v266_v52, %v265_v50  ;;  %v282_v56 = vrot.slane %v281_v53, 1 }
 0x11e   :  { %v268_v58 = vadd.f32 %v267_v55, %v258_v54  ;;  %v283_v59 = vadd.f32 %v282_v56, %v281_v53 }
 0x120   :  { %269 = vst [vmem:[%s512_s3] sm:$0x1] %v268_v58  ;;  %v284_v60 = vadd.f32 %v283_v59, %v270_v57 }
 0x122   :  { %285 = vst [vmem:[%s513_s4] sm:$0x1] %v284_v60 }
 0x123   :  { %298 = vsyncpa [#allocation3], 1 }

// kernel: generator_forward.10
= control target key start
LH: loop header
LB: loop body
LE: loop exit
PB: predicated region body
PF: predicated region fallthrough
CT: control target
= control target key end

     0   :  { %s422_s0 = inlined_call_operand.vmem [shape: bf16[128,128], index: 0, kind: input, shape index: {}]   ;;  %s423_s1 = inlined_call_operand.vmem [shape: f32[1,128], index: 1, kind: input, shape index: {}]   ;;  %s424_s2 = inlined_call_operand.vmem [shape: f32[1,128], index: 2, kind: input, shape index: {}]   ;;  %s425_s3 = inlined_call_operand.vmem [shape: bf16[128,128], index: 3, kind: output, shape index: {}]  }
   0x1   :  { %v227_v0 = vld [vmem:[%s422_s0] sm:$0xff]   ;;  %v298_v4 = vld [vmem:[%s422_s0 + $0x8] sm:$0xff]   ;;  %v299_v5 = vld [vmem:[%s422_s0 + $0x10] sm:$0xff]  }
   0x2   :  { %v338_v1 = vld [vmem:[%s423_s1] ss:$0 sm:$0xff]  ;;  %v228_v2 = vunpack.c.l.bf16 %v227_v0  ;;  %v229_v3 = vunpack.c.h.bf16 %v227_v0  ;;  %v300_v6 = vld [vmem:[%s422_s0 + $0x18] sm:$0xff]   ;;  %v232_v8 = vunpack.c.l.bf16 %v298_v4  ;;  %v233_v9 = vunpack.c.h.bf16 %v298_v4  ;;  %v302_v33 = vld [vmem:[%s422_s0 + $0x28] sm:$0xff]  }
   0x3   :  { %v352_v7 = vld [vmem:[%s424_s2] ss:$0 sm:$0xff]  ;;  %v236_v10 = vunpack.c.l.bf16 %v299_v5  ;;  %v237_v11 = vunpack.c.h.bf16 %v299_v5  ;;  %v240_v14 = vunpack.c.l.bf16 %v300_v6  ;;  %v241_v15 = vunpack.c.h.bf16 %v300_v6  ;;  %v303_v38 = vld [vmem:[%s422_s0 + $0x30] sm:$0xff]   ;;  %v304_v43 = vld [vmem:[%s422_s0 + $0x38] sm:$0xff]  }
   0x4   :  { %v53_v12 = vmul.f32 %v228_v2, %v338_v1  ;;  %v54_v13 = vmul.f32 %v229_v3, %v338_v1  ;;  %v55_v16 = vmul.f32 %v232_v8, %v338_v1  ;;  %v56_v17 = vmul.f32 %v233_v9, %v338_v1  ;;  %v301_v28 = vld [vmem:[%s422_s0 + $0x20] sm:$0xff]  }
   0x5   :  { %v57_v18 = vmul.f32 %v236_v10, %v338_v1  ;;  %v58_v19 = vmul.f32 %v237_v11, %v338_v1  ;;  %v59_v22 = vmul.f32 %v240_v14, %v338_v1  ;;  %v60_v23 = vmul.f32 %v241_v15, %v338_v1 }
   0x6   :  { %v76_v20 = vadd.f32 %v352_v7, %v53_v12  ;;  %v77_v21 = vadd.f32 %v352_v7, %v54_v13  ;;  %v78_v24 = vadd.f32 %v352_v7, %v55_v16  ;;  %v79_v25 = vadd.f32 %v352_v7, %v56_v17 }
   0x7   :  { %v80_v26 = vadd.f32 %v352_v7, %v57_v18  ;;  %v81_v27 = vadd.f32 %v352_v7, %v58_v19  ;;  %v82_v31 = vadd.f32 %v352_v7, %v59_v22  ;;  %v83_v32 = vadd.f32 %v352_v7, %v60_v23 }
   0x8   :  { %v92_v29 = vmax.f32 %v76_v20, 0.0  ;;  %v93_v30 = vmax.f32 %v77_v21, 0.0  ;;  %v94_v34 = vmax.f32 %v78_v24, 0.0  ;;  %v95_v35 = vmax.f32 %v79_v25, 0.0 }
   0x9   :  { %v96_v36 = vmax.f32 %v80_v26, 0.0  ;;  %v97_v37 = vmax.f32 %v81_v27, 0.0  ;;  %v98_v40 = vmax.f32 %v82_v31, 0.0  ;;  %v99_v41 = vmax.f32 %v83_v32, 0.0 }
   0xa   :  { %v261_v39 = vpack.c.bf16 %v93_v30, %v92_v29  ;;  %v244_v42 = vunpack.c.l.bf16 %v301_v28  ;;  %v266_v44 = vpack.c.bf16 %v95_v35, %v94_v34  ;;  %v245_v46 = vunpack.c.h.bf16 %v301_v28 }
   0xb   :  { %v271_v45 = vpack.c.bf16 %v97_v37, %v96_v36  ;;  %v248_v47 = vunpack.c.l.bf16 %v302_v33  ;;  %v276_v48 = vpack.c.bf16 %v99_v41, %v98_v40  ;;  %v249_v50 = vunpack.c.h.bf16 %v302_v33 }
   0xc   :  { %262 = vst [vmem:[%s425_s3] sm:$0xff] %v261_v39   ;;  %v61_v49 = vmul.f32 %v244_v42, %v338_v1  ;;  %v252_v51 = vunpack.c.l.bf16 %v303_v38  ;;  %305 = vst [vmem:[%s425_s3 + $0x8] sm:$0xff] %v266_v44   ;;  %v62_v52 = vmul.f32 %v245_v46, %v338_v1  ;;  %v253_v54 = vunpack.c.h.bf16 %v303_v38 }
   0xd   :  { %306 = vst [vmem:[%s425_s3 + $0x10] sm:$0xff] %v271_v45   ;;  %v63_v53 = vmul.f32 %v248_v47, %v338_v1  ;;  %v256_v55 = vunpack.c.l.bf16 %v304_v43  ;;  %307 = vst [vmem:[%s425_s3 + $0x18] sm:$0xff] %v276_v48   ;;  %v64_v57 = vmul.f32 %v249_v50, %v338_v1  ;;  %v257_v59 = vunpack.c.h.bf16 %v304_v43 }
   0xe   :  { %v84_v56 = vadd.f32 %v352_v7, %v61_v49  ;;  %v65_v58 = vmul.f32 %v252_v51, %v338_v1  ;;  %v85_v60 = vadd.f32 %v352_v7, %v62_v52  ;;  %v66_v62 = vmul.f32 %v253_v54, %v338_v1 }
   0xf   :  { %v86_v61 = vadd.f32 %v352_v7, %v63_v53  ;;  %v67_v63 = vmul.f32 %v256_v55, %v338_v1  ;;  %v87_v2 = vadd.f32 %v352_v7, %v64_v57  ;;  %v68_v4 = vmul.f32 %v257_v59, %v338_v1 }
  0x10   :  { %v100_v0 = vmax.f32 %v84_v56, 0.0  ;;  %v88_v3 = vadd.f32 %v352_v7, %v65_v58  ;;  %v101_v5 = vmax.f32 %v85_v60, 0.0  ;;  %v89_v8 = vadd.f32 %v352_v7, %v66_v62 }
  0x11   :  { %v102_v6 = vmax.f32 %v86_v61, 0.0  ;;  %v90_v9 = vadd.f32 %v352_v7, %v67_v63  ;;  %v103_v10 = vmax.f32 %v87_v2, 0.0  ;;  %v91_v12 = vadd.f32 %v352_v7, %v68_v4 }
  0x12   :  { %v104_v11 = vmax.f32 %v88_v3, 0.0  ;;  %v281_v13 = vpack.c.bf16 %v101_v5, %v100_v0  ;;  %v105_v14 = vmax.f32 %v89_v8, 0.0 }
  0x13   :  { %v106_v15 = vmax.f32 %v90_v9, 0.0  ;;  %v286_v16 = vpack.c.bf16 %v103_v10, %v102_v6  ;;  %v107_v17 = vmax.f32 %v91_v12, 0.0 }
  0x14   :  { %308 = vst [vmem:[%s425_s3 + $0x20] sm:$0xff] %v281_v13   ;;  %v291_v1 = vpack.c.bf16 %v105_v14, %v104_v11 }
  0x15   :  { %309 = vst [vmem:[%s425_s3 + $0x28] sm:$0xff] %v286_v16   ;;  %v296_v18 = vpack.c.bf16 %v107_v17, %v106_v15 }
  0x16   :  { %310 = vst [vmem:[%s425_s3 + $0x30] sm:$0xff] %v291_v1  }
  0x17   :  { %311 = vst [vmem:[%s425_s3 + $0x38] sm:$0xff] %v296_v18  }

// kernel: generator_forward.9
= control target key start
LH: loop header
LB: loop body
LE: loop exit
PB: predicated region body
PF: predicated region fallthrough
CT: control target
= control target key end

     0   :  { %10 = vsyncpa [#allocation3], 0  ;;  %s1401_s0 = inlined_call_operand.vmem [shape: bf16[4,32,512], index: 0, kind: input, shape index: {}]   ;;  %s1402_s1 = inlined_call_operand.hbm [shape: bf16[4,512,128], index: 1, kind: input, shape index: {}]   ;;  %s1403_s2 = inlined_call_operand.vmem [shape: bf16[4,32,128], index: 2, kind: output, shape index: {0}]   ;;  %s1404_s3 = inlined_call_operand.vmem [shape: f32[1,128], index: 3, kind: output, shape index: {1}]   ;;  %s1405_s4 = inlined_call_operand.vmem [shape: f32[1,128], index: 4, kind: output, shape index: {2}]  }
   0x1   :  { %12 = vsyncpa [#allocation3 + $0x1], 0  ;;  %s1207_s15 = smov 0   ;;  %s1209_s16 = smov 0  }
   0x2   :  { %s1211_s17 = smov 0   ;;  %s1213_s18 = smov 0  }
   0x3   :  { %s1215_s19 = smov 0   ;;  %s1217_s20 = smov 0  }
   0x4 LB: > { %s859_s21 = sadd.s32 4294967295, %s1176_s20   ;;  %s30_s22 = sadd.s32 1, %s1172_s19  ;;  %s1176_s20 = sphi %s1217_s20, %s18_s20   ;;  %s1172_s19 = sphi %s1215_s19, %s1413_s19   ;;  %s1168_s18 = sphi %s1213_s18, %s1412_s18   ;;  %s1164_s17 = sphi %s1211_s17, %s1411_s17   ;;  %s1160_s16 = sphi %s1209_s16, %s1410_s16   ;;  %s1156_s15 = sphi %s1207_s15, %s1409_s15  }
   0x5   : > { %p32_p0 = scmp.ge.s32.totalorder %s30_s22, 4  ;;  %s65_s23 = sadd.s32 1, %s1164_s17 }
   0x6   : > { %p72_p1 = scmp.ne.s32.totalorder %s1164_s17, %s1160_s16  ;;  %p73_p2 = scmp.eq.s32.totalorder %s1176_s20, 0 }
   0x7   : > { %s1415_s22 = smov (%p32_p0, %s30_s22), 0  ;;  %p78_p4 = scmp.ne.s32.totalorder %s1160_s16, %s1156_s15 }
   0x8   : > { %p1243_p3 = por %p73_p2, %p72_p1  ;;  %s62_s25 = ssub.s32 %s1172_s19, %s1415_s22 }
   0x9   : > { %p79_p5 = scmp.eq.s32.totalorder %s859_s21, 0  ;;  %p63_p6 = scmp.eq.s32.totalorder %s62_s25, 0 }
   0xa   : > { %p1000_p8 = scmp.lt.s32.totalorder %s1176_s20, 4  ;;  %s186_s28 = sand.u32 1, %s1164_s17  }
   0xb   : > { %p1250_p7 = por %p79_p5, %p78_p4  ;;  %s919_s29 = sshll.u32 %s1172_s19, 12 }
   0xc   : > { %s1256_s27 = scalar_select %p63_p6, %s1164_s17, %s65_s23  }
   0xd   : > { %s863_s30 = sshll.u32 %s186_s28, 8  ;;  %s1263_s7 = scalar_lea.hbm %s1402_s1, %s919_s29 }
   0xe   : > { %s190_s8 = scalar_lea.vmem [#allocation2], %s863_s30  ;;  %p1267_p9 = pnand %p1000_p8, %p1243_p3 }
   0xf   : > { %s197_s9 = sshll.u32 %s190_s8, 4  ;;  %s1273_s11 = scalar_lea.sflag [#allocation3], %s186_s28  ;;  %s1271_s9 = int_to_ptr.vmem [resolvable:$true] %s197_s9 }
  0x10   : > { %s1096_s12 = scalar_lea.hbm %s1263_s7, 4096  ;;  %p1098_p11 = pneg %p1267_p9 }
  0x11   : > { %p1097_p10 = scmp.ne.s32.totalorder %s1263_s7, %s1096_s12  ;;  %s1101_s15 = scalar_lea.hbm %s1402_s1, 16384 }
  0x12   : > { %p1102_p0 = scmp.lt.u32.totalorder %s1263_s7, %s1402_s1  ;;  %p1103_p1 = scmp.lt.u32.totalorder %s1101_s15, %s1096_s12 }
  0x13   : > { %p1099_p12 = pnand %p1098_p11, %p1097_p10  ;;  %p1105_p3 = scmp.lt.u32.totalorder %s1096_s12, %s1263_s7 }
  0x14   : > { %p1104_p2 = por %p1103_p1, %p1102_p0 }
  0x15   : > { %p1100_p13 = pneg %p1099_p12 }
  0x16   : > { %p1106_p4 = por %p1105_p3, %p1104_p2 }
  0x18   : > { %p1107_p5 = pnand %p1106_p4, %p1100_p13 }
  0x1a   : > { %1110 = shalt.err (!%p1107_p5)
}
  0x1b   : > { %s1111_s24 = scalar_lea.vmem %s1271_s9, 4096  ;;  %s1178_s25 = smov [#allocation2]  }
  0x1c   : > { %p1112_p6 = scmp.ne.s32.totalorder %s1271_s9, %s1111_s24  ;;  %s1116_s28 = sshll.u32 %s1178_s25, 4  ;;  %s1117_s28 = int_to_ptr.vmem [resolvable:$false] %s1116_s28 }
  0x1d   : > { %s1118_s29 = scalar_lea.vmem %s1117_s28, 8192  ;;  %p1119_p12 = scmp.lt.s32.totalorder %s1271_s9, %s1117_s28 }
  0x1e   : > { %p1114_p8 = pnand %p1112_p6, %p1098_p11  ;;  %p1120_p0 = scmp.lt.s32.totalorder %s1118_s29, %s1111_s24 }
  0x20   : > { %p1115_p10 = pneg %p1114_p8  ;;  %p1121_p1 = por %p1120_p0, %p1119_p12 }
  0x22   : > { %p1122_p2 = pnand %p1121_p1, %p1115_p10 }
  0x24   : > { %1125 = shalt.err (!%p1122_p2)
}
  0x25   : > { %s1179_s30 = smov 64   ;;  %s1180_s5 = smov 4  }
  0x26   : > { %999 = dma.hbm_to_vmem [thread:$0]  (!%p1267_p9), %s1263_s7, 4096, %s1271_s9, %s1273_s11, %s1179_s30, %s1179_s30, %s1180_s5  }
  0x27   : > { %p866_p11 = scmp.ge.s32.totalorder %s1176_s20, 1  ;;  %p205_p13 = scmp.lt.s32.totalorder %s1176_s20, 5 }
  0x29   : > { %p206_p3 = pnand %p866_p11, %p205_p13 }
  0x2a   : > { %s211_s6 = sand.u32 (!%p206_p3), 1, %s1160_s16  }
  0x2b   : > { %209 = sbr.rel (%p206_p3) target bundleno = 341 (0x155), region = 28  ;;  %s867_s8 = sshll.u32 (!%p206_p3), %s211_s6, 8 }
  0x2c   : > { %s212_s12 = scalar_lea.sflag (!%p206_p3), [#allocation3], %s211_s6  ;;  %s1304_s13 = scalar_lea.vmem (!%p206_p3), [#allocation2], %s867_s8 }
  0x32   : > { %1151 = dma.done.wait (%p1250_p7), %s212_s12, 4096  }
  0x33   : > { %1153 = vsyncadd (%p1250_p7), %s212_s12, 4294963200  ;;  %p255_p9 = scmp.lt.s32.totalorder %s1168_s18, 3  ;;  %p276_p4 = scmp.eq.s32.totalorder %s1168_s18, 0 }
  0x34   : > { %v1181_v0 = vmov (%p276_p4), 0.0  }
  0x35   : > { %s1417_s18 = smov (!%p255_p9, %s1168_s18), 3  ;;  %281 = sbr.rel (!%p276_p4) target bundleno = 60 (0x3c), region = 36 }
  0x36   : > { %s920_s7 = sshll.u32 %s1417_s18, 6  ;;  %s921_s9 = sshll.u32 %s1417_s18, 4  ;;  %282 = vst [vmem:[%s1404_s3] sm:$0x1] (%p276_p4), %v1181_v0  ;;  %283 = vst [vmem:[%s1405_s4] sm:$0x1] (%p276_p4), %v1181_v0 }
  0x37   : > { %s1316_s14 = scalar_lea.vmem %s1401_s0, %s920_s7  ;;  %s1321_s23 = scalar_lea.vmem %s1403_s2, %s921_s9 }
  0x3c PF: > { %v1052_v1 = vld [vmem:[%s1304_s13 + $0x40] sm:$0xff]   ;;  %v1056_v5 = vld [vmem:[%s1304_s13 + $0x48] sm:$0xff]   ;;  %v1060_v9 = vld [vmem:[%s1304_s13 + $0x50] sm:$0xff]  }
  0x3d   : > { %v1053_v2 = vld [vmem:[%s1304_s13 + $0xc0] sm:$0xff]   ;;  %938 = vmatprep.subr.bf16.mxu0 %v1052_v1  ;;  %v1057_v6 = vld [vmem:[%s1304_s13 + $0xc8] sm:$0xff]   ;;  %v1061_v10 = vld [vmem:[%s1304_s13 + $0xd0] sm:$0xff]  }
  0x3e   : > { %v1054_v3 = vld [vmem:[%s1304_s13] sm:$0xff]   ;;  %966 = vmatprep.subr.bf16.mxu1 %v1053_v2  ;;  %v1058_v7 = vld [vmem:[%s1304_s13 + $0x8] sm:$0xff]   ;;  %v1062_v11 = vld [vmem:[%s1304_s13 + $0x10] sm:$0xff]  }
  0x3f   : > { %v1055_v4 = vld [vmem:[%s1304_s13 + $0x80] sm:$0xff]   ;;  %939 = vmatpush3.bf16.msra.mxu0 %v1054_v3  ;;  %v1059_v8 = vld [vmem:[%s1304_s13 + $0x88] sm:$0xff]   ;;  %v1063_v12 = vld [vmem:[%s1304_s13 + $0x90] sm:$0xff]  }
  0x40   : > { %967 = vmatpush3.bf16.msra.mxu1 %v1055_v4  ;;  %940 = vmatprep.subr.bf16.mxu0 %v1056_v5  ;;  %v1064_v13 = vld [vmem:[%s1304_s13 + $0x58] sm:$0xff]   ;;  %v1068_v17 = vld [vmem:[%s1304_s13 + $0x60] sm:$0xff]   ;;  %v1072_v21 = vld [vmem:[%s1304_s13 + $0x68] sm:$0xff]  }
  0x41   : > { %968 = vmatprep.subr.bf16.mxu1 %v1057_v6  ;;  %v1065_v14 = vld [vmem:[%s1304_s13 + $0xd8] sm:$0xff]   ;;  %v1069_v18 = vld [vmem:[%s1304_s13 + $0xe0] sm:$0xff]   ;;  %v1073_v22 = vld [vmem:[%s1304_s13 + $0xe8] sm:$0xff]  }
  0x42   : > { %v1066_v15 = vld [vmem:[%s1304_s13 + $0x18] sm:$0xff]   ;;  %v1070_v19 = vld [vmem:[%s1304_s13 + $0x20] sm:$0xff]   ;;  %v1074_v23 = vld [vmem:[%s1304_s13 + $0x28] sm:$0xff]  }
  0x43   : > { %941 = vmatpush3.bf16.msra.mxu0 %v1058_v7  ;;  %v1067_v16 = vld [vmem:[%s1304_s13 + $0x98] sm:$0xff]   ;;  %v1071_v20 = vld [vmem:[%s1304_s13 + $0xa0] sm:$0xff]   ;;  %v1075_v24 = vld [vmem:[%s1304_s13 + $0xa8] sm:$0xff]  }
  0x44   : > { %969 = vmatpush3.bf16.msra.mxu1 %v1059_v8  ;;  %942 = vmatprep.subr.bf16.mxu0 %v1060_v9  ;;  %v1076_v25 = vld [vmem:[%s1304_s13 + $0x70] sm:$0xff]   ;;  %v1080_v29 = vld [vmem:[%s1304_s13 + $0x78] sm:$0xff]  }
  0x45   : > { %970 = vmatprep.subr.bf16.mxu1 %v1061_v10  ;;  %v1077_v26 = vld [vmem:[%s1304_s13 + $0xf0] sm:$0xff]   ;;  %v1081_v30 = vld [vmem:[%s1304_s13 + $0xf8] sm:$0xff]  }
  0x46   : > { %v1078_v27 = vld [vmem:[%s1304_s13 + $0x30] sm:$0xff]   ;;  %v1082_v31 = vld [vmem:[%s1304_s13 + $0x38] sm:$0xff]  }
  0x47   : > { %943 = vmatpush3.bf16.msra.mxu0 %v1062_v11  ;;  %v1079_v28 = vld [vmem:[%s1304_s13 + $0xb0] sm:$0xff]   ;;  %v1083_v32 = vld [vmem:[%s1304_s13 + $0xb8] sm:$0xff]  }
  0x48   : > { %971 = vmatpush3.bf16.msra.mxu1 %v1063_v12  ;;  %944 = vmatprep.subr.bf16.mxu0 %v1064_v13  ;;  %v1084_v33 = vld [vmem:[%s1316_s14] ss:$16 sps:$4 sm:$0xff]   ;;  %v1086_v34 = vld [vmem:[%s1316_s14 + $0x4] ss:$16 sps:$4 sm:$0xff]   ;;  %v1087_v35 = vld [vmem:[%s1316_s14 + $0x8] ss:$16 sps:$4 sm:$0xff]  }
  0x49   : > { %972 = vmatprep.subr.bf16.mxu1 %v1065_v14  ;;  %v1089_v36 = vld [vmem:[%s1316_s14 + $0xc] ss:$16 sps:$4 sm:$0xff]   ;;  %620 = vmatprep.mubr.bf16.mxu0 %v1086_v34  ;;  %v1090_v37 = vld [vmem:[%s1316_s14 + $0x24] ss:$16 sps:$4 sm:$0xff]   ;;  %v1094_v39 = vld [vmem:[%s1316_s14 + $0x20] ss:$16 sps:$4 sm:$0xff]  }
  0x4a   : > { %669 = vmatprep.mubr.bf16.mxu1 %v1089_v36  ;;  %v1092_v38 = vld [vmem:[%s1316_s14 + $0x2c] ss:$16 sps:$4 sm:$0xff]   ;;  %v1095_v40 = vld [vmem:[%s1316_s14 + $0x28] ss:$16 sps:$4 sm:$0xff]  }
  0x4b   : > { %945 = vmatpush3.bf16.msra.mxu0 %v1066_v15 }
  0x4c   : > { %973 = vmatpush3.bf16.msra.mxu1 %v1067_v16  ;;  %946 = vmatprep.subr.bf16.mxu0 %v1068_v17 }
  0x4d   : > { %974 = vmatprep.subr.bf16.mxu1 %v1069_v18 }
  0x4f   : > { %947 = vmatpush3.bf16.msra.mxu0 %v1070_v19 }
  0x50   : > { %975 = vmatpush3.bf16.msra.mxu1 %v1071_v20  ;;  %948 = vmatprep.subr.bf16.mxu0 %v1072_v21 }
  0x51   : > { %976 = vmatprep.subr.bf16.mxu1 %v1073_v22 }
  0x53   : > { %949 = vmatpush3.bf16.msra.mxu0 %v1074_v23 }
  0x54   : > { %977 = vmatpush3.bf16.msra.mxu1 %v1075_v24  ;;  %950 = vmatprep.subr.bf16.mxu0 %v1076_v25 }
  0x55   : > { %978 = vmatprep.subr.bf16.mxu1 %v1077_v26  ;;  %v706_v26 = vld [vmem:[%s1404_s3] sm:$0x1] }
  0x57   : > { %951 = vmatpush3.bf16.msra.mxu0 %v1078_v27 }
  0x58   : > { %979 = vmatpush3.bf16.msra.mxu1 %v1079_v28  ;;  %952 = vmatprep.subr.bf16.mxu0 %v1080_v29  ;;  %v718_v29 = vld [vmem:[%s1405_s4] sm:$0x1] }
  0x59   : > { %980 = vmatprep.subr.bf16.mxu1 %v1081_v30 }
  0x5b   : > { %953 = vmatpush3.bf16.msra.mxu0 %v1082_v31 }
  0x5c   : > { %981 = vmatpush3.bf16.msra.mxu1 %v1083_v32 }
  0x5e   : > { %621 = vmatmul.mubr.bf16.vlgmr.msra.gmra.mrb[0].mxu0 %v1084_v33 }
  0x5f   : > { %670 = vmatmul.mubr.bf16.vlgmr.msra.gmra.mrb[0].mxu1 %v1087_v35  ;;  %628 = vmatprep.mubr.bf16.mxu0 %v1090_v37 }
  0x60   : > { %677 = vmatprep.mubr.bf16.mxu1 %v1092_v38 }
  0x66   : > { %629 = vmatmul.mubr.bf16.gmra.mrb[4].mxu0 %v1094_v39 }
  0x67   : > { %678 = vmatmul.mubr.bf16.gmra.mrb[4].mxu1 %v1095_v40 }
 0x131   : > { %v954_v41 = vpop.f32.mrb[0].mxu0 }
 0x132   : > { %v982_v42 = vpop.f32.mrb[0].mxu1  ;;  %v955_v43 = vpop.f32.mrb[1].mxu0 }
 0x133   : > { %v956_v44 = vadd.f32 %v955_v43, %v954_v41  ;;  %v983_v45 = vpop.f32.mrb[1].mxu1  ;;  %v957_v46 = vpop.f32.mrb[2].mxu0 }
 0x134   : > { %v984_v47 = vadd.f32 %v983_v45, %v982_v42  ;;  %v985_v48 = vpop.f32.mrb[2].mxu1  ;;  %v958_v49 = vpop.f32.mrb[3].mxu0 }
 0x135   : > { %v959_v50 = vadd.f32 %v958_v49, %v957_v46  ;;  %v986_v51 = vpop.f32.mrb[3].mxu1 }
 0x136   : > { %v672_v52 = vadd.f32 %v984_v47, %v956_v44  ;;  %v987_v53 = vadd.f32 %v986_v51, %v985_v48 }
 0x138   : > { %v675_v54 = vadd.f32 %v987_v53, %v959_v50  ;;  %v719_v56 = vmul.f32 %v672_v52, %v672_v52 }
 0x139   : > { %v960_v55 = vpop.f32.mrb[4].mxu0 }
 0x13a   : > { %v930_v57 = vpack.c.bf16 %v675_v54, %v672_v52  ;;  %v707_v58 = vadd.f32 %v675_v54, %v672_v52  ;;  %v720_v59 = vmul.f32 %v675_v54, %v675_v54  ;;  %v988_v60 = vpop.f32.mrb[4].mxu1  ;;  %v961_v61 = vpop.f32.mrb[5].mxu0 }
 0x13b   : > { %v962_v62 = vadd.f32 %v961_v61, %v960_v55  ;;  %v989_v63 = vpop.f32.mrb[5].mxu1  ;;  %v963_v0 = vpop.f32.mrb[6].mxu0 }
 0x13c   : > { %931 = vst [vmem:[%s1321_s23] sm:$0xff] %v930_v57   ;;  %v723_v1 = vadd.f32 %v720_v59, %v719_v56  ;;  %v990_v2 = vadd.f32 %v989_v63, %v988_v60  ;;  %v991_v3 = vpop.f32.mrb[6].mxu1  ;;  %v964_v4 = vpop.f32.mrb[7].mxu0 }
 0x13d   : > { %v965_v5 = vadd.f32 %v964_v4, %v963_v0  ;;  %v992_v6 = vpop.f32.mrb[7].mxu1 }
 0x13e   : > { %v680_v7 = vadd.f32 %v990_v2, %v962_v62  ;;  %v993_v8 = vadd.f32 %v992_v6, %v991_v3 }
 0x140   : > { %v708_v9 = vadd.f32 %v707_v58, %v680_v7  ;;  %v721_v10 = vmul.f32 %v680_v7, %v680_v7  ;;  %v683_v11 = vadd.f32 %v993_v8, %v965_v5 }
 0x142   : > { %v724_v12 = vadd.f32 %v723_v1, %v721_v10  ;;  %v935_v13 = vpack.c.bf16 %v683_v11, %v680_v7  ;;  %v709_v14 = vadd.f32 %v708_v9, %v683_v11  ;;  %v722_v15 = vmul.f32 %v683_v11, %v683_v11 }
 0x144   : > { %937 = vst [vmem:[%s1321_s23 + $0x8] sm:$0xff] %v935_v13   ;;  %v710_v16 = vrot.slane %v709_v14, 4  ;;  %v725_v17 = vadd.f32 %v724_v12, %v722_v15 }
 0x146   : > { %v711_v18 = vadd.f32 %v710_v16, %v709_v14  ;;  %v726_v19 = vrot.slane %v725_v17, 4 }
 0x148   : > { %v712_v20 = vrot.slane %v711_v18, 2  ;;  %v727_v21 = vadd.f32 %v726_v19, %v725_v17 }
 0x14a   : > { %v713_v22 = vadd.f32 %v712_v20, %v711_v18  ;;  %v728_v23 = vrot.slane %v727_v21, 2 }
 0x14c   : > { %v714_v24 = vrot.slane %v713_v22, 1  ;;  %v729_v25 = vadd.f32 %v728_v23, %v727_v21 }
 0x14e   : > { %v715_v27 = vadd.f32 %v714_v24, %v713_v22  ;;  %v730_v28 = vrot.slane %v729_v25, 1 }
 0x150   : > { %v716_v30 = vadd.f32 %v715_v27, %v706_v26  ;;  %v731_v31 = vadd.f32 %v730_v28, %v729_v25 }
 0x152   : > { %717 = vst [vmem:[%s1404_s3] sm:$0x1] %v716_v30  ;;  %v732_v32 = vadd.f32 %v731_v31, %v718_v29 }
 0x154   : > { %733 = vst [vmem:[%s1405_s4] sm:$0x1] %v732_v32 }
 0x155 PF: > { %s18_s20 = sadd.s32 1, %s1176_s20   ;;  %s1409_s15 = smov %s1160_s16 }
 0x156   : > { %p15_p7 = scmp.ge.s32.totalorder %s18_s20, 6   ;;  %s1410_s16 = smov %s1164_s17 }
 0x157   : > { %s1411_s17 = smov %s1256_s27  ;;  %s1412_s18 = smov %s1172_s19 }
 0x158   : > { %s1413_s19 = smov %s1415_s22  ;;  %17 = sbr.rel (!%p15_p7) target bundleno = 4 (0x4), region = 91 }
 0x15f   :  { %776 = vsyncpa [#allocation3], 1 }
 0x160   :  { %778 = vsyncpa [#allocation3 + $0x1], 1 }

// kernel: generator_forward.11
= control target key start
LH: loop header
LB: loop body
LE: loop exit
PB: predicated region body
PF: predicated region fallthrough
CT: control target
= control target key end

     0   :  { %s1608_s15 = smov 0   ;;  %s1610_s16 = smov 0   ;;  %s1740_s0 = inlined_call_operand.vmem [shape: bf16[4,128,512], index: 0, kind: input, shape index: {}]   ;;  %s1741_s1 = inlined_call_operand.vmem [shape: bf16[4,512,128], index: 1, kind: input, shape index: {}]   ;;  %s1742_s2 = inlined_call_operand.vmem [shape: bf16[4,128,128], index: 2, kind: output, shape index: {0}]   ;;  %s1743_s3 = inlined_call_operand.vmem [shape: f32[1,128], index: 3, kind: output, shape index: {1}]   ;;  %s1744_s4 = inlined_call_operand.vmem [shape: f32[1,128], index: 4, kind: output, shape index: {2}]  }
   0x1   :  { %s1612_s17 = smov 0  }
   0x2 LB: > { %s27_s18 = sadd.s32 1, %s1576_s16  ;;  %p1168_p0 = scmp.ge.s32.totalorder %s1580_s17, 1  ;;  %s1580_s17 = sphi %s1612_s17, %s15_s17   ;;  %s1576_s16 = sphi %s1610_s16, %s1746_s16   ;;  %s1572_s15 = sphi %s1608_s15, %s1745_s15  }
   0x3   : > { %p29_p1 = scmp.ge.s32.totalorder %s27_s18, 4  ;;  %p189_p2 = scmp.lt.s32.totalorder %s1580_s17, 5 }
   0x5   : > { %s1748_s18 = smov (%p29_p1, %s27_s18), 0  ;;  %p190_p3 = pnand %p1168_p0, %p189_p2 }
   0x6   : > { %p230_p4 = scmp.lt.s32.totalorder (!%p190_p3), %s1572_s15, 3  ;;  %p256_p5 = scmp.eq.s32.totalorder (!%p190_p3), %s1572_s15, 0 }
   0x7   : > { %193 = sbr.rel (%p190_p3) target bundleno = 350 (0x15e), region = 28 }
   0xe   : > { %s1750_s15 = smov (!%p230_p4, %s1572_s15), 3  ;;  %261 = sbr.rel (!%p256_p5) target bundleno = 21 (0x15), region = 32 }
   0xf   : > { %s1258_s19 = sshll.u32 %s1750_s15, 8  ;;  %s1260_s20 = sshll.u32 %s1750_s15, 6  ;;  %v1582_v0 = vmov (%p256_p5), 0.0  }
  0x10   : > { %s1629_s23 = scalar_lea.vmem %s1740_s0, %s1258_s19  ;;  %s1634_s26 = scalar_lea.vmem %s1741_s1, %s1258_s19  ;;  %262 = vst [vmem:[%s1743_s3] sm:$0x1] (%p256_p5), %v1582_v0  ;;  %263 = vst [vmem:[%s1744_s4] sm:$0x1] (%p256_p5), %v1582_v0 }
  0x11   : > { %s1639_s29 = scalar_lea.vmem %s1742_s2, %s1260_s20 }
  0x15 PF: > { %v1478_v1 = vld [vmem:[%s1634_s26 + $0x40] sm:$0xff]   ;;  %v1482_v5 = vld [vmem:[%s1634_s26 + $0x48] sm:$0xff]   ;;  %v1486_v9 = vld [vmem:[%s1634_s26 + $0x50] sm:$0xff]  }
  0x16   : > { %v1479_v2 = vld [vmem:[%s1634_s26 + $0xc0] sm:$0xff]   ;;  %1325 = vmatprep.subr.bf16.mxu0 %v1478_v1  ;;  %v1483_v6 = vld [vmem:[%s1634_s26 + $0xc8] sm:$0xff]   ;;  %v1487_v10 = vld [vmem:[%s1634_s26 + $0xd0] sm:$0xff]  }
  0x17   : > { %v1480_v3 = vld [vmem:[%s1634_s26] sm:$0xff]   ;;  %1389 = vmatprep.subr.bf16.mxu1 %v1479_v2  ;;  %v1484_v7 = vld [vmem:[%s1634_s26 + $0x8] sm:$0xff]   ;;  %v1488_v11 = vld [vmem:[%s1634_s26 + $0x10] sm:$0xff]  }
  0x18   : > { %v1481_v4 = vld [vmem:[%s1634_s26 + $0x80] sm:$0xff]   ;;  %1326 = vmatpush3.bf16.msra.mxu0 %v1480_v3  ;;  %v1485_v8 = vld [vmem:[%s1634_s26 + $0x88] sm:$0xff]   ;;  %v1489_v12 = vld [vmem:[%s1634_s26 + $0x90] sm:$0xff]  }
  0x19   : > { %1390 = vmatpush3.bf16.msra.mxu1 %v1481_v4  ;;  %1327 = vmatprep.subr.bf16.mxu0 %v1482_v5  ;;  %v1490_v13 = vld [vmem:[%s1634_s26 + $0x58] sm:$0xff]   ;;  %v1494_v17 = vld [vmem:[%s1634_s26 + $0x60] sm:$0xff]   ;;  %v1498_v21 = vld [vmem:[%s1634_s26 + $0x68] sm:$0xff]  }
  0x1a   : > { %1391 = vmatprep.subr.bf16.mxu1 %v1483_v6  ;;  %v1491_v14 = vld [vmem:[%s1634_s26 + $0xd8] sm:$0xff]   ;;  %v1495_v18 = vld [vmem:[%s1634_s26 + $0xe0] sm:$0xff]   ;;  %v1499_v22 = vld [vmem:[%s1634_s26 + $0xe8] sm:$0xff]  }
  0x1b   : > { %v1492_v15 = vld [vmem:[%s1634_s26 + $0x18] sm:$0xff]   ;;  %v1496_v19 = vld [vmem:[%s1634_s26 + $0x20] sm:$0xff]   ;;  %v1500_v23 = vld [vmem:[%s1634_s26 + $0x28] sm:$0xff]  }
  0x1c   : > { %1328 = vmatpush3.bf16.msra.mxu0 %v1484_v7  ;;  %v1493_v16 = vld [vmem:[%s1634_s26 + $0x98] sm:$0xff]   ;;  %v1497_v20 = vld [vmem:[%s1634_s26 + $0xa0] sm:$0xff]   ;;  %v1501_v24 = vld [vmem:[%s1634_s26 + $0xa8] sm:$0xff]  }
  0x1d   : > { %1392 = vmatpush3.bf16.msra.mxu1 %v1485_v8  ;;  %1329 = vmatprep.subr.bf16.mxu0 %v1486_v9  ;;  %v1502_v25 = vld [vmem:[%s1634_s26 + $0x70] sm:$0xff]   ;;  %v1506_v29 = vld [vmem:[%s1634_s26 + $0x78] sm:$0xff]  }
  0x1e   : > { %1393 = vmatprep.subr.bf16.mxu1 %v1487_v10  ;;  %v1503_v26 = vld [vmem:[%s1634_s26 + $0xf0] sm:$0xff]   ;;  %v1507_v30 = vld [vmem:[%s1634_s26 + $0xf8] sm:$0xff]  }
  0x1f   : > { %v1504_v27 = vld [vmem:[%s1634_s26 + $0x30] sm:$0xff]   ;;  %v1508_v31 = vld [vmem:[%s1634_s26 + $0x38] sm:$0xff]  }
  0x20   : > { %1330 = vmatpush3.bf16.msra.mxu0 %v1488_v11  ;;  %v1505_v28 = vld [vmem:[%s1634_s26 + $0xb0] sm:$0xff]   ;;  %v1509_v32 = vld [vmem:[%s1634_s26 + $0xb8] sm:$0xff]  }
  0x21   : > { %1394 = vmatpush3.bf16.msra.mxu1 %v1489_v12  ;;  %1331 = vmatprep.subr.bf16.mxu0 %v1490_v13  ;;  %v1510_v33 = vld [vmem:[%s1629_s23] ss:$16 sps:$4 sm:$0xff]   ;;  %v1512_v34 = vld [vmem:[%s1629_s23 + $0x4] ss:$16 sps:$4 sm:$0xff]   ;;  %v1513_v35 = vld [vmem:[%s1629_s23 + $0x8] ss:$16 sps:$4 sm:$0xff]  }
  0x22   : > { %1395 = vmatprep.subr.bf16.mxu1 %v1491_v14  ;;  %v1515_v36 = vld [vmem:[%s1629_s23 + $0xc] ss:$16 sps:$4 sm:$0xff]   ;;  %744 = vmatprep.mubr.bf16.mxu0 %v1512_v34  ;;  %v1516_v37 = vld [vmem:[%s1629_s23 + $0x24] ss:$16 sps:$4 sm:$0xff]   ;;  %v1520_v39 = vld [vmem:[%s1629_s23 + $0x20] ss:$16 sps:$4 sm:$0xff]  }
  0x23   : > { %841 = vmatprep.mubr.bf16.mxu1 %v1515_v36  ;;  %v1518_v38 = vld [vmem:[%s1629_s23 + $0x2c] ss:$16 sps:$4 sm:$0xff]   ;;  %v1521_v40 = vld [vmem:[%s1629_s23 + $0x28] ss:$16 sps:$4 sm:$0xff]   ;;  %v1522_v41 = vld [vmem:[%s1629_s23 + $0x44] ss:$16 sps:$4 sm:$0xff]  }
  0x24   : > { %1332 = vmatpush3.bf16.msra.mxu0 %v1492_v15  ;;  %v1524_v42 = vld [vmem:[%s1629_s23 + $0x4c] ss:$16 sps:$4 sm:$0xff]   ;;  %v1526_v43 = vld [vmem:[%s1629_s23 + $0x40] ss:$16 sps:$4 sm:$0xff]   ;;  %v1527_v44 = vld [vmem:[%s1629_s23 + $0x48] ss:$16 sps:$4 sm:$0xff]  }
  0x25   : > { %1396 = vmatpush3.bf16.msra.mxu1 %v1493_v16  ;;  %1333 = vmatprep.subr.bf16.mxu0 %v1494_v17  ;;  %v1528_v45 = vld [vmem:[%s1629_s23 + $0x64] ss:$16 sps:$4 sm:$0xff]   ;;  %v1530_v46 = vld [vmem:[%s1629_s23 + $0x6c] ss:$16 sps:$4 sm:$0xff]   ;;  %v1532_v47 = vld [vmem:[%s1629_s23 + $0x60] ss:$16 sps:$4 sm:$0xff]  }
  0x26   : > { %1397 = vmatprep.subr.bf16.mxu1 %v1495_v18  ;;  %v1533_v48 = vld [vmem:[%s1629_s23 + $0x68] ss:$16 sps:$4 sm:$0xff]   ;;  %v1534_v49 = vld [vmem:[%s1629_s23 + $0x84] ss:$16 sps:$4 sm:$0xff]   ;;  %v1536_v50 = vld [vmem:[%s1629_s23 + $0x8c] ss:$16 sps:$4 sm:$0xff]  }
  0x27   : > { %v1538_v51 = vld [vmem:[%s1629_s23 + $0x80] ss:$16 sps:$4 sm:$0xff]   ;;  %v1539_v52 = vld [vmem:[%s1629_s23 + $0x88] ss:$16 sps:$4 sm:$0xff]   ;;  %v1540_v53 = vld [vmem:[%s1629_s23 + $0xa4] ss:$16 sps:$4 sm:$0xff]  }
  0x28   : > { %1334 = vmatpush3.bf16.msra.mxu0 %v1496_v19  ;;  %v1542_v54 = vld [vmem:[%s1629_s23 + $0xac] ss:$16 sps:$4 sm:$0xff]   ;;  %v1544_v55 = vld [vmem:[%s1629_s23 + $0xa0] ss:$16 sps:$4 sm:$0xff]   ;;  %v1545_v56 = vld [vmem:[%s1629_s23 + $0xa8] ss:$16 sps:$4 sm:$0xff]  }
  0x29   : > { %1398 = vmatpush3.bf16.msra.mxu1 %v1497_v20  ;;  %1335 = vmatprep.subr.bf16.mxu0 %v1498_v21  ;;  %v1546_v57 = vld [vmem:[%s1629_s23 + $0xc4] ss:$16 sps:$4 sm:$0xff]   ;;  %v1548_v58 = vld [vmem:[%s1629_s23 + $0xcc] ss:$16 sps:$4 sm:$0xff]   ;;  %v1550_v59 = vld [vmem:[%s1629_s23 + $0xc0] ss:$16 sps:$4 sm:$0xff]  }
  0x2a   : > { %1399 = vmatprep.subr.bf16.mxu1 %v1499_v22  ;;  %v1551_v60 = vld [vmem:[%s1629_s23 + $0xc8] ss:$16 sps:$4 sm:$0xff]   ;;  %v1552_v61 = vld [vmem:[%s1629_s23 + $0xe4] ss:$16 sps:$4 sm:$0xff]   ;;  %v1554_v62 = vld [vmem:[%s1629_s23 + $0xec] ss:$16 sps:$4 sm:$0xff]  }
  0x2b   : > { %v1556_v63 = vld [vmem:[%s1629_s23 + $0xe0] ss:$16 sps:$4 sm:$0xff]   ;;  %v1557_v0 = vld [vmem:[%s1629_s23 + $0xe8] ss:$16 sps:$4 sm:$0xff]  }
  0x2c   : > { %1336 = vmatpush3.bf16.msra.mxu0 %v1500_v23 }
  0x2d   : > { %1400 = vmatpush3.bf16.msra.mxu1 %v1501_v24  ;;  %1337 = vmatprep.subr.bf16.mxu0 %v1502_v25 }
  0x2e   : > { %1401 = vmatprep.subr.bf16.mxu1 %v1503_v26 }
  0x30   : > { %1338 = vmatpush3.bf16.msra.mxu0 %v1504_v27 }
  0x31   : > { %1402 = vmatpush3.bf16.msra.mxu1 %v1505_v28  ;;  %1339 = vmatprep.subr.bf16.mxu0 %v1506_v29 }
  0x32   : > { %1403 = vmatprep.subr.bf16.mxu1 %v1507_v30 }
  0x34   : > { %1340 = vmatpush3.bf16.msra.mxu0 %v1508_v31 }
  0x35   : > { %1404 = vmatpush3.bf16.msra.mxu1 %v1509_v32 }
  0x37   : > { %745 = vmatmul.mubr.bf16.vlgmr.msra.gmra.mrb[0].mxu0 %v1510_v33 }
  0x38   : > { %842 = vmatmul.mubr.bf16.vlgmr.msra.gmra.mrb[0].mxu1 %v1513_v35  ;;  %752 = vmatprep.mubr.bf16.mxu0 %v1516_v37 }
  0x39   : > { %849 = vmatprep.mubr.bf16.mxu1 %v1518_v38 }
  0x3f   : > { %753 = vmatmul.mubr.bf16.gmra.mrb[4].mxu0 %v1520_v39 }
  0x40   : > { %850 = vmatmul.mubr.bf16.gmra.mrb[4].mxu1 %v1521_v40  ;;  %760 = vmatprep.mubr.bf16.mxu0 %v1522_v41 }
  0x41   : > { %857 = vmatprep.mubr.bf16.mxu1 %v1524_v42 }
  0x47   : > { %761 = vmatmul.mubr.bf16.gmra.mrb[8].mxu0 %v1526_v43 }
  0x48   : > { %858 = vmatmul.mubr.bf16.gmra.mrb[8].mxu1 %v1527_v44  ;;  %768 = vmatprep.mubr.bf16.mxu0 %v1528_v45 }
  0x49   : > { %865 = vmatprep.mubr.bf16.mxu1 %v1530_v46 }
  0x4f   : > { %769 = vmatmul.mubr.bf16.gmra.mrb[12].mxu0 %v1532_v47 }
  0x50   : > { %866 = vmatmul.mubr.bf16.gmra.mrb[12].mxu1 %v1533_v48  ;;  %776 = vmatprep.mubr.bf16.mxu0 %v1534_v49 }
  0x51   : > { %873 = vmatprep.mubr.bf16.mxu1 %v1536_v50 }
  0x57   : > { %777 = vmatmul.mubr.bf16.gmra.mrb[16].mxu0 %v1538_v51 }
  0x58   : > { %874 = vmatmul.mubr.bf16.gmra.mrb[16].mxu1 %v1539_v52  ;;  %784 = vmatprep.mubr.bf16.mxu0 %v1540_v53 }
  0x59   : > { %881 = vmatprep.mubr.bf16.mxu1 %v1542_v54 }
  0x5f   : > { %785 = vmatmul.mubr.bf16.gmra.mrb[20].mxu0 %v1544_v55 }
  0x60   : > { %882 = vmatmul.mubr.bf16.gmra.mrb[20].mxu1 %v1545_v56  ;;  %792 = vmatprep.mubr.bf16.mxu0 %v1546_v57 }
  0x61   : > { %889 = vmatprep.mubr.bf16.mxu1 %v1548_v58 }
  0x67   : > { %793 = vmatmul.mubr.bf16.gmra.mrb[24].mxu0 %v1550_v59 }
  0x68   : > { %890 = vmatmul.mubr.bf16.gmra.mrb[24].mxu1 %v1551_v60  ;;  %800 = vmatprep.mubr.bf16.mxu0 %v1552_v61 }
  0x69   : > { %897 = vmatprep.mubr.bf16.mxu1 %v1554_v62 }
  0x6f   : > { %801 = vmatmul.mubr.bf16.gmra.mrb[28].mxu0 %v1556_v63 }
  0x70   : > { %898 = vmatmul.mubr.bf16.gmra.mrb[28].mxu1 %v1557_v0 }
 0x10a   : > { %v1341_v1 = vpop.f32.mrb[0].mxu0 }
 0x10b   : > { %v1405_v2 = vpop.f32.mrb[0].mxu1  ;;  %v1342_v3 = vpop.f32.mrb[1].mxu0 }
 0x10c   : > { %v1343_v4 = vadd.f32 %v1342_v3, %v1341_v1  ;;  %v1406_v5 = vpop.f32.mrb[1].mxu1  ;;  %v1344_v6 = vpop.f32.mrb[2].mxu0 }
 0x10d   : > { %v1407_v7 = vadd.f32 %v1406_v5, %v1405_v2  ;;  %v1408_v8 = vpop.f32.mrb[2].mxu1  ;;  %v1345_v9 = vpop.f32.mrb[3].mxu0 }
 0x10e   : > { %v1346_v10 = vadd.f32 %v1345_v9, %v1344_v6  ;;  %v1409_v11 = vpop.f32.mrb[3].mxu1 }
 0x10f   : > { %v844_v12 = vadd.f32 %v1407_v7, %v1343_v4  ;;  %v1410_v13 = vadd.f32 %v1409_v11, %v1408_v8 }
 0x111   : > { %v847_v14 = vadd.f32 %v1410_v13, %v1346_v10  ;;  %v1011_v16 = vmul.f32 %v844_v12, %v844_v12 }
 0x112   : > { %v1347_v15 = vpop.f32.mrb[4].mxu0 }
 0x113   : > { %v1281_v17 = vpack.c.bf16 %v847_v14, %v844_v12  ;;  %v987_v18 = vadd.f32 %v847_v14, %v844_v12  ;;  %v1012_v19 = vmul.f32 %v847_v14, %v847_v14  ;;  %v1411_v20 = vpop.f32.mrb[4].mxu1  ;;  %v1348_v21 = vpop.f32.mrb[5].mxu0 }
 0x114   : > { %v1349_v22 = vadd.f32 %v1348_v21, %v1347_v15  ;;  %v1412_v23 = vpop.f32.mrb[5].mxu1  ;;  %v1350_v24 = vpop.f32.mrb[6].mxu0 }
 0x115   : > { %1282 = vst [vmem:[%s1639_s29] sm:$0xff] %v1281_v17   ;;  %v1027_v25 = vadd.f32 %v1012_v19, %v1011_v16  ;;  %v1413_v26 = vadd.f32 %v1412_v23, %v1411_v20  ;;  %v1414_v27 = vpop.f32.mrb[6].mxu1  ;;  %v1351_v28 = vpop.f32.mrb[7].mxu0 }
 0x116   : > { %v1352_v29 = vadd.f32 %v1351_v28, %v1350_v24  ;;  %v1415_v30 = vpop.f32.mrb[7].mxu1 }
 0x117   : > { %v852_v31 = vadd.f32 %v1413_v26, %v1349_v22  ;;  %v1416_v32 = vadd.f32 %v1415_v30, %v1414_v27 }
 0x119   : > { %v988_v33 = vadd.f32 %v987_v18, %v852_v31  ;;  %v1013_v34 = vmul.f32 %v852_v31, %v852_v31  ;;  %v855_v35 = vadd.f32 %v1416_v32, %v1352_v29 }
 0x11a   : > { %v1353_v36 = vpop.f32.mrb[8].mxu0 }
 0x11b   : > { %v1028_v37 = vadd.f32 %v1027_v25, %v1013_v34  ;;  %v1286_v38 = vpack.c.bf16 %v855_v35, %v852_v31  ;;  %v989_v39 = vadd.f32 %v988_v33, %v855_v35  ;;  %v1014_v40 = vmul.f32 %v855_v35, %v855_v35  ;;  %v1417_v41 = vpop.f32.mrb[8].mxu1  ;;  %v1354_v42 = vpop.f32.mrb[9].mxu0 }
 0x11c   : > { %v1355_v43 = vadd.f32 %v1354_v42, %v1353_v36  ;;  %v1418_v44 = vpop.f32.mrb[9].mxu1  ;;  %v1356_v45 = vpop.f32.mrb[10].mxu0 }
 0x11d   : > { %1318 = vst [vmem:[%s1639_s29 + $0x8] sm:$0xff] %v1286_v38   ;;  %v1029_v46 = vadd.f32 %v1028_v37, %v1014_v40  ;;  %v1419_v47 = vadd.f32 %v1418_v44, %v1417_v41  ;;  %v1420_v48 = vpop.f32.mrb[10].mxu1  ;;  %v1357_v49 = vpop.f32.mrb[11].mxu0 }
 0x11e   : > { %v1358_v50 = vadd.f32 %v1357_v49, %v1356_v45  ;;  %v1421_v51 = vpop.f32.mrb[11].mxu1 }
 0x11f   : > { %v860_v52 = vadd.f32 %v1419_v47, %v1355_v43  ;;  %v1422_v53 = vadd.f32 %v1421_v51, %v1420_v48 }
 0x121   : > { %v990_v54 = vadd.f32 %v989_v39, %v860_v52  ;;  %v1015_v55 = vmul.f32 %v860_v52, %v860_v52  ;;  %v863_v56 = vadd.f32 %v1422_v53, %v1358_v50 }
 0x122   : > { %v1359_v57 = vpop.f32.mrb[12].mxu0 }
 0x123   : > { %v1030_v58 = vadd.f32 %v1029_v46, %v1015_v55  ;;  %v1291_v59 = vpack.c.bf16 %v863_v56, %v860_v52  ;;  %v991_v60 = vadd.f32 %v990_v54, %v863_v56  ;;  %v1016_v61 = vmul.f32 %v863_v56, %v863_v56  ;;  %v1423_v62 = vpop.f32.mrb[12].mxu1  ;;  %v1360_v63 = vpop.f32.mrb[13].mxu0 }
 0x124   : > { %v1361_v0 = vadd.f32 %v1360_v63, %v1359_v57  ;;  %v1424_v1 = vpop.f32.mrb[13].mxu1  ;;  %v1362_v2 = vpop.f32.mrb[14].mxu0 }
 0x125   : > { %1319 = vst [vmem:[%s1639_s29 + $0x10] sm:$0xff] %v1291_v59   ;;  %v1031_v3 = vadd.f32 %v1030_v58, %v1016_v61  ;;  %v1425_v4 = vadd.f32 %v1424_v1, %v1423_v62  ;;  %v1426_v5 = vpop.f32.mrb[14].mxu1  ;;  %v1363_v6 = vpop.f32.mrb[15].mxu0 }
 0x126   : > { %v1364_v7 = vadd.f32 %v1363_v6, %v1362_v2  ;;  %v1427_v8 = vpop.f32.mrb[15].mxu1 }
 0x127   : > { %v868_v9 = vadd.f32 %v1425_v4, %v1361_v0  ;;  %v1428_v10 = vadd.f32 %v1427_v8, %v1426_v5 }
 0x129   : > { %v992_v11 = vadd.f32 %v991_v60, %v868_v9  ;;  %v1017_v12 = vmul.f32 %v868_v9, %v868_v9  ;;  %v871_v13 = vadd.f32 %v1428_v10, %v1364_v7 }
 0x12a   : > { %v1365_v14 = vpop.f32.mrb[16].mxu0 }
 0x12b   : > { %v1032_v15 = vadd.f32 %v1031_v3, %v1017_v12  ;;  %v1296_v16 = vpack.c.bf16 %v871_v13, %v868_v9  ;;  %v993_v17 = vadd.f32 %v992_v11, %v871_v13  ;;  %v1018_v18 = vmul.f32 %v871_v13, %v871_v13  ;;  %v1429_v19 = vpop.f32.mrb[16].mxu1  ;;  %v1366_v20 = vpop.f32.mrb[17].mxu0 }
 0x12c   : > { %v1367_v21 = vadd.f32 %v1366_v20, %v1365_v14  ;;  %v1430_v22 = vpop.f32.mrb[17].mxu1  ;;  %v1368_v23 = vpop.f32.mrb[18].mxu0 }
 0x12d   : > { %1320 = vst [vmem:[%s1639_s29 + $0x18] sm:$0xff] %v1296_v16   ;;  %v1033_v24 = vadd.f32 %v1032_v15, %v1018_v18  ;;  %v1431_v25 = vadd.f32 %v1430_v22, %v1429_v19  ;;  %v1432_v26 = vpop.f32.mrb[18].mxu1  ;;  %v1369_v27 = vpop.f32.mrb[19].mxu0 }
 0x12e   : > { %v1370_v28 = vadd.f32 %v1369_v27, %v1368_v23  ;;  %v1433_v29 = vpop.f32.mrb[19].mxu1 }
 0x12f   : > { %v876_v30 = vadd.f32 %v1431_v25, %v1367_v21  ;;  %v1434_v31 = vadd.f32 %v1433_v29, %v1432_v26 }
 0x131   : > { %v994_v32 = vadd.f32 %v993_v17, %v876_v30  ;;  %v1019_v33 = vmul.f32 %v876_v30, %v876_v30  ;;  %v879_v34 = vadd.f32 %v1434_v31, %v1370_v28 }
 0x132   : > { %v1371_v35 = vpop.f32.mrb[20].mxu0 }
 0x133   : > { %v1034_v36 = vadd.f32 %v1033_v24, %v1019_v33  ;;  %v1301_v37 = vpack.c.bf16 %v879_v34, %v876_v30  ;;  %v995_v38 = vadd.f32 %v994_v32, %v879_v34  ;;  %v1020_v39 = vmul.f32 %v879_v34, %v879_v34  ;;  %v1435_v40 = vpop.f32.mrb[20].mxu1  ;;  %v1372_v41 = vpop.f32.mrb[21].mxu0 }
 0x134   : > { %v1373_v42 = vadd.f32 %v1372_v41, %v1371_v35  ;;  %v1436_v43 = vpop.f32.mrb[21].mxu1  ;;  %v1374_v44 = vpop.f32.mrb[22].mxu0 }
 0x135   : > { %1321 = vst [vmem:[%s1639_s29 + $0x20] sm:$0xff] %v1301_v37   ;;  %v1035_v45 = vadd.f32 %v1034_v36, %v1020_v39  ;;  %v1437_v46 = vadd.f32 %v1436_v43, %v1435_v40  ;;  %v1438_v47 = vpop.f32.mrb[22].mxu1  ;;  %v1375_v48 = vpop.f32.mrb[23].mxu0 }
 0x136   : > { %v1376_v49 = vadd.f32 %v1375_v48, %v1374_v44  ;;  %v1439_v50 = vpop.f32.mrb[23].mxu1  ;;  %v986_v48 = vld [vmem:[%s1743_s3] sm:$0x1] }
 0x137   : > { %v884_v51 = vadd.f32 %v1437_v46, %v1373_v42  ;;  %v1440_v52 = vadd.f32 %v1439_v50, %v1438_v47 }
 0x139   : > { %v996_v53 = vadd.f32 %v995_v38, %v884_v51  ;;  %v1021_v54 = vmul.f32 %v884_v51, %v884_v51  ;;  %v887_v55 = vadd.f32 %v1440_v52, %v1376_v49 }
 0x13a   : > { %v1377_v56 = vpop.f32.mrb[24].mxu0 }
 0x13b   : > { %v1036_v57 = vadd.f32 %v1035_v45, %v1021_v54  ;;  %v1306_v58 = vpack.c.bf16 %v887_v55, %v884_v51  ;;  %v997_v59 = vadd.f32 %v996_v53, %v887_v55  ;;  %v1022_v60 = vmul.f32 %v887_v55, %v887_v55  ;;  %v1441_v61 = vpop.f32.mrb[24].mxu1  ;;  %v1378_v62 = vpop.f32.mrb[25].mxu0  ;;  %v1010_v51 = vld [vmem:[%s1744_s4] sm:$0x1] }
 0x13c   : > { %v1379_v63 = vadd.f32 %v1378_v62, %v1377_v56  ;;  %v1442_v0 = vpop.f32.mrb[25].mxu1  ;;  %v1380_v1 = vpop.f32.mrb[26].mxu0 }
 0x13d   : > { %1322 = vst [vmem:[%s1639_s29 + $0x28] sm:$0xff] %v1306_v58   ;;  %v1037_v2 = vadd.f32 %v1036_v57, %v1022_v60  ;;  %v1443_v3 = vadd.f32 %v1442_v0, %v1441_v61  ;;  %v1444_v4 = vpop.f32.mrb[26].mxu1  ;;  %v1381_v5 = vpop.f32.mrb[27].mxu0 }
 0x13e   : > { %v1382_v6 = vadd.f32 %v1381_v5, %v1380_v1  ;;  %v1445_v7 = vpop.f32.mrb[27].mxu1 }
 0x13f   : > { %v892_v8 = vadd.f32 %v1443_v3, %v1379_v63  ;;  %v1446_v9 = vadd.f32 %v1445_v7, %v1444_v4 }
 0x141   : > { %v998_v10 = vadd.f32 %v997_v59, %v892_v8  ;;  %v1023_v11 = vmul.f32 %v892_v8, %v892_v8  ;;  %v895_v12 = vadd.f32 %v1446_v9, %v1382_v6 }
 0x142   : > { %v1383_v13 = vpop.f32.mrb[28].mxu0 }
 0x143   : > { %v1038_v14 = vadd.f32 %v1037_v2, %v1023_v11  ;;  %v1311_v15 = vpack.c.bf16 %v895_v12, %v892_v8  ;;  %v999_v16 = vadd.f32 %v998_v10, %v895_v12  ;;  %v1024_v17 = vmul.f32 %v895_v12, %v895_v12  ;;  %v1447_v18 = vpop.f32.mrb[28].mxu1  ;;  %v1384_v19 = vpop.f32.mrb[29].mxu0 }
 0x144   : > { %v1385_v20 = vadd.f32 %v1384_v19, %v1383_v13  ;;  %v1448_v21 = vpop.f32.mrb[29].mxu1  ;;  %v1386_v22 = vpop.f32.mrb[30].mxu0 }
 0x145   : > { %1323 = vst [vmem:[%s1639_s29 + $0x30] sm:$0xff] %v1311_v15   ;;  %v1039_v23 = vadd.f32 %v1038_v14, %v1024_v17  ;;  %v1449_v24 = vadd.f32 %v1448_v21, %v1447_v18  ;;  %v1450_v25 = vpop.f32.mrb[30].mxu1  ;;  %v1387_v26 = vpop.f32.mrb[31].mxu0 }
 0x146   : > { %v1388_v27 = vadd.f32 %v1387_v26, %v1386_v22  ;;  %v1451_v28 = vpop.f32.mrb[31].mxu1 }
 0x147   : > { %v900_v29 = vadd.f32 %v1449_v24, %v1385_v20  ;;  %v1452_v30 = vadd.f32 %v1451_v28, %v1450_v25 }
 0x149   : > { %v1000_v31 = vadd.f32 %v999_v16, %v900_v29  ;;  %v1025_v32 = vmul.f32 %v900_v29, %v900_v29  ;;  %v903_v33 = vadd.f32 %v1452_v30, %v1388_v27 }
 0x14b   : > { %v1040_v34 = vadd.f32 %v1039_v23, %v1025_v32  ;;  %v1316_v35 = vpack.c.bf16 %v903_v33, %v900_v29  ;;  %v1001_v36 = vadd.f32 %v1000_v31, %v903_v33  ;;  %v1026_v37 = vmul.f32 %v903_v33, %v903_v33 }
 0x14d   : > { %1324 = vst [vmem:[%s1639_s29 + $0x38] sm:$0xff] %v1316_v35   ;;  %v1002_v38 = vrot.slane %v1001_v36, 4  ;;  %v1041_v39 = vadd.f32 %v1040_v34, %v1026_v37 }
 0x14f   : > { %v1003_v40 = vadd.f32 %v1002_v38, %v1001_v36  ;;  %v1042_v41 = vrot.slane %v1041_v39, 4 }
 0x151   : > { %v1004_v42 = vrot.slane %v1003_v40, 2  ;;  %v1043_v43 = vadd.f32 %v1042_v41, %v1041_v39 }
 0x153   : > { %v1005_v44 = vadd.f32 %v1004_v42, %v1003_v40  ;;  %v1044_v45 = vrot.slane %v1043_v43, 2 }
 0x155   : > { %v1006_v46 = vrot.slane %v1005_v44, 1  ;;  %v1045_v47 = vadd.f32 %v1044_v45, %v1043_v43 }
 0x157   : > { %v1007_v49 = vadd.f32 %v1006_v46, %v1005_v44  ;;  %v1046_v50 = vrot.slane %v1045_v47, 1 }
 0x159   : > { %v1008_v52 = vadd.f32 %v1007_v49, %v986_v48  ;;  %v1047_v53 = vadd.f32 %v1046_v50, %v1045_v47 }
 0x15b   : > { %1009 = vst [vmem:[%s1743_s3] sm:$0x1] %v1008_v52  ;;  %v1048_v54 = vadd.f32 %v1047_v53, %v1010_v51 }
 0x15d   : > { %1049 = vst [vmem:[%s1744_s4] sm:$0x1] %v1048_v54 }
 0x15e PF: > { %s15_s17 = sadd.s32 1, %s1580_s17   ;;  %s1745_s15 = smov %s1576_s16 }
 0x15f   : > { %p12_p6 = scmp.ge.s32.totalorder %s15_s17, 6   ;;  %s1746_s16 = smov %s1748_s18 }
 0x161   :  { %14 = sbr.rel (!%p12_p6) target bundleno = 2 (0x2), region = 81 }

// kernel: generator_forward.12
= control target key start
LH: loop header
LB: loop body
LE: loop exit
PB: predicated region body
PF: predicated region fallthrough
CT: control target
= control target key end

     0   :  { %s1502_s0 = inlined_call_operand.vmem [shape: bf16[512,128], index: 0, kind: input, shape index: {}]   ;;  %s1503_s1 = inlined_call_operand.vmem [shape: f32[1,128], index: 1, kind: input, shape index: {}]   ;;  %s1504_s2 = inlined_call_operand.vmem [shape: f32[1,128], index: 2, kind: input, shape index: {}]   ;;  %s1505_s3 = inlined_call_operand.vmem [shape: bf16[512,128], index: 3, kind: output, shape index: {}]  }
   0x1   :  { %v803_v0 = vld [vmem:[%s1502_s0] sm:$0xff]   ;;  %v1090_v4 = vld [vmem:[%s1502_s0 + $0x8] sm:$0xff]   ;;  %v1091_v5 = vld [vmem:[%s1502_s0 + $0x10] sm:$0xff]  }
   0x2   :  { %v1178_v1 = vld [vmem:[%s1503_s1] ss:$0 sm:$0xff]  ;;  %v804_v2 = vunpack.c.l.bf16 %v803_v0  ;;  %v805_v3 = vunpack.c.h.bf16 %v803_v0  ;;  %v1092_v6 = vld [vmem:[%s1502_s0 + $0x18] sm:$0xff]   ;;  %v808_v8 = vunpack.c.l.bf16 %v1090_v4  ;;  %v809_v9 = vunpack.c.h.bf16 %v1090_v4  ;;  %v1094_v33 = vld [vmem:[%s1502_s0 + $0x28] sm:$0xff]  }
   0x3   :  { %v1192_v7 = vld [vmem:[%s1504_s2] ss:$0 sm:$0xff]  ;;  %v812_v10 = vunpack.c.l.bf16 %v1091_v5  ;;  %v813_v11 = vunpack.c.h.bf16 %v1091_v5  ;;  %v816_v14 = vunpack.c.l.bf16 %v1092_v6  ;;  %v817_v15 = vunpack.c.h.bf16 %v1092_v6  ;;  %v1095_v38 = vld [vmem:[%s1502_s0 + $0x30] sm:$0xff]   ;;  %v1096_v43 = vld [vmem:[%s1502_s0 + $0x38] sm:$0xff]  }
   0x4   :  { %v149_v12 = vmul.f32 %v804_v2, %v1178_v1  ;;  %v150_v13 = vmul.f32 %v805_v3, %v1178_v1  ;;  %v151_v16 = vmul.f32 %v808_v8, %v1178_v1  ;;  %v152_v17 = vmul.f32 %v809_v9, %v1178_v1  ;;  %v1093_v28 = vld [vmem:[%s1502_s0 + $0x20] sm:$0xff]  }
   0x5   :  { %v153_v18 = vmul.f32 %v812_v10, %v1178_v1  ;;  %v154_v19 = vmul.f32 %v813_v11, %v1178_v1  ;;  %v155_v22 = vmul.f32 %v816_v14, %v1178_v1  ;;  %v156_v23 = vmul.f32 %v817_v15, %v1178_v1  ;;  %v1097_v0 = vld [vmem:[%s1502_s0 + $0x40] sm:$0xff]   ;;  %v1098_v11 = vld [vmem:[%s1502_s0 + $0x48] sm:$0xff]  }
   0x6   :  { %v220_v20 = vadd.f32 %v1192_v7, %v149_v12  ;;  %v221_v21 = vadd.f32 %v1192_v7, %v150_v13  ;;  %v222_v24 = vadd.f32 %v1192_v7, %v151_v16  ;;  %v223_v25 = vadd.f32 %v1192_v7, %v152_v17  ;;  %v1099_v16 = vld [vmem:[%s1502_s0 + $0x50] sm:$0xff]  }
   0x7   :  { %v224_v26 = vadd.f32 %v1192_v7, %v153_v18  ;;  %v225_v27 = vadd.f32 %v1192_v7, %v154_v19  ;;  %v226_v31 = vadd.f32 %v1192_v7, %v155_v22  ;;  %v227_v32 = vadd.f32 %v1192_v7, %v156_v23 }
   0x8   :  { %v284_v29 = vmax.f32 %v220_v20, 0.0  ;;  %v285_v30 = vmax.f32 %v221_v21, 0.0  ;;  %v286_v34 = vmax.f32 %v222_v24, 0.0  ;;  %v287_v35 = vmax.f32 %v223_v25, 0.0  ;;  %v1100_v25 = vld [vmem:[%s1502_s0 + $0x58] sm:$0xff]  }
   0x9   :  { %v288_v36 = vmax.f32 %v224_v26, 0.0  ;;  %v289_v37 = vmax.f32 %v225_v27, 0.0  ;;  %v290_v40 = vmax.f32 %v226_v31, 0.0  ;;  %v291_v41 = vmax.f32 %v227_v32, 0.0 }
   0xa   :  { %v933_v39 = vpack.c.bf16 %v285_v30, %v284_v29  ;;  %v820_v42 = vunpack.c.l.bf16 %v1093_v28  ;;  %v938_v44 = vpack.c.bf16 %v287_v35, %v286_v34  ;;  %v821_v46 = vunpack.c.h.bf16 %v1093_v28 }
   0xb   :  { %v943_v45 = vpack.c.bf16 %v289_v37, %v288_v36  ;;  %v824_v47 = vunpack.c.l.bf16 %v1094_v33  ;;  %v948_v48 = vpack.c.bf16 %v291_v41, %v290_v40  ;;  %v825_v50 = vunpack.c.h.bf16 %v1094_v33 }
   0xc   :  { %934 = vst [vmem:[%s1505_s3] sm:$0xff] %v933_v39   ;;  %v157_v49 = vmul.f32 %v820_v42, %v1178_v1  ;;  %v828_v51 = vunpack.c.l.bf16 %v1095_v38  ;;  %1121 = vst [vmem:[%s1505_s3 + $0x8] sm:$0xff] %v938_v44   ;;  %v158_v52 = vmul.f32 %v821_v46, %v1178_v1  ;;  %v829_v54 = vunpack.c.h.bf16 %v1095_v38  ;;  %v1101_v38 = vld [vmem:[%s1502_s0 + $0x60] sm:$0xff]  }
   0xd   :  { %1122 = vst [vmem:[%s1505_s3 + $0x10] sm:$0xff] %v943_v45   ;;  %v159_v53 = vmul.f32 %v824_v47, %v1178_v1  ;;  %v832_v55 = vunpack.c.l.bf16 %v1096_v43  ;;  %1123 = vst [vmem:[%s1505_s3 + $0x18] sm:$0xff] %v948_v48   ;;  %v160_v57 = vmul.f32 %v825_v50, %v1178_v1  ;;  %v833_v59 = vunpack.c.h.bf16 %v1096_v43 }
   0xe   :  { %v228_v56 = vadd.f32 %v1192_v7, %v157_v49  ;;  %v161_v58 = vmul.f32 %v828_v51, %v1178_v1  ;;  %v229_v60 = vadd.f32 %v1192_v7, %v158_v52  ;;  %v162_v62 = vmul.f32 %v829_v54, %v1178_v1  ;;  %v1102_v51 = vld [vmem:[%s1502_s0 + $0x68] sm:$0xff]  }
   0xf   :  { %v230_v61 = vadd.f32 %v1192_v7, %v159_v53  ;;  %v163_v63 = vmul.f32 %v832_v55, %v1178_v1  ;;  %v231_v3 = vadd.f32 %v1192_v7, %v160_v57  ;;  %v164_v5 = vmul.f32 %v833_v59, %v1178_v1 }
  0x10   :  { %v292_v2 = vmax.f32 %v228_v56, 0.0  ;;  %v232_v4 = vadd.f32 %v1192_v7, %v161_v58  ;;  %v293_v6 = vmax.f32 %v229_v60, 0.0  ;;  %v233_v9 = vadd.f32 %v1192_v7, %v162_v62  ;;  %v1103_v60 = vld [vmem:[%s1502_s0 + $0x70] sm:$0xff]  }
  0x11   :  { %v294_v8 = vmax.f32 %v230_v61, 0.0  ;;  %v234_v10 = vadd.f32 %v1192_v7, %v163_v63  ;;  %v295_v12 = vmax.f32 %v231_v3, 0.0  ;;  %v235_v14 = vadd.f32 %v1192_v7, %v164_v5 }
  0x12   :  { %v296_v13 = vmax.f32 %v232_v4, 0.0  ;;  %v836_v15 = vunpack.c.l.bf16 %v1097_v0  ;;  %v953_v17 = vpack.c.bf16 %v293_v6, %v292_v2  ;;  %v297_v18 = vmax.f32 %v233_v9, 0.0  ;;  %v1104_v2 = vld [vmem:[%s1502_s0 + $0x78] sm:$0xff]  }
  0x13   :  { %v298_v19 = vmax.f32 %v234_v10, 0.0  ;;  %v837_v20 = vunpack.c.h.bf16 %v1097_v0  ;;  %v958_v21 = vpack.c.bf16 %v295_v12, %v294_v8  ;;  %v299_v22 = vmax.f32 %v235_v14, 0.0  ;;  %v1105_v12 = vld [vmem:[%s1502_s0 + $0x80] sm:$0xff]  }
  0x14   :  { %v165_v23 = vmul.f32 %v836_v15, %v1178_v1  ;;  %v840_v24 = vunpack.c.l.bf16 %v1098_v11  ;;  %1124 = vst [vmem:[%s1505_s3 + $0x20] sm:$0xff] %v953_v17   ;;  %v963_v26 = vpack.c.bf16 %v297_v18, %v296_v13  ;;  %v841_v28 = vunpack.c.h.bf16 %v1098_v11 }
  0x15   :  { %v166_v27 = vmul.f32 %v837_v20, %v1178_v1  ;;  %v844_v29 = vunpack.c.l.bf16 %v1099_v16  ;;  %1125 = vst [vmem:[%s1505_s3 + $0x28] sm:$0xff] %v958_v21   ;;  %v968_v30 = vpack.c.bf16 %v299_v22, %v298_v19  ;;  %v845_v33 = vunpack.c.h.bf16 %v1099_v16 }
  0x16   :  { %v236_v31 = vadd.f32 %v1192_v7, %v165_v23  ;;  %v167_v32 = vmul.f32 %v840_v24, %v1178_v1  ;;  %1126 = vst [vmem:[%s1505_s3 + $0x30] sm:$0xff] %v963_v26   ;;  %v168_v35 = vmul.f32 %v841_v28, %v1178_v1  ;;  %v848_v37 = vunpack.c.l.bf16 %v1100_v25 }
  0x17   :  { %v237_v34 = vadd.f32 %v1192_v7, %v166_v27  ;;  %v169_v36 = vmul.f32 %v844_v29, %v1178_v1  ;;  %1127 = vst [vmem:[%s1505_s3 + $0x38] sm:$0xff] %v968_v30   ;;  %v170_v41 = vmul.f32 %v845_v33, %v1178_v1  ;;  %v849_v42 = vunpack.c.h.bf16 %v1100_v25  ;;  %v1106_v29 = vld [vmem:[%s1502_s0 + $0x88] sm:$0xff]  }
  0x18   :  { %v300_v39 = vmax.f32 %v236_v31, 0.0  ;;  %v238_v40 = vadd.f32 %v1192_v7, %v167_v32  ;;  %v239_v44 = vadd.f32 %v1192_v7, %v168_v35  ;;  %v171_v46 = vmul.f32 %v848_v37, %v1178_v1 }
  0x19   :  { %v301_v43 = vmax.f32 %v237_v34, 0.0  ;;  %v240_v45 = vadd.f32 %v1192_v7, %v169_v36  ;;  %v241_v48 = vadd.f32 %v1192_v7, %v170_v41  ;;  %v172_v49 = vmul.f32 %v849_v42, %v1178_v1  ;;  %v1107_v34 = vld [vmem:[%s1502_s0 + $0x90] sm:$0xff]  }
  0x1a   :  { %v302_v47 = vmax.f32 %v238_v40, 0.0  ;;  %v852_v50 = vunpack.c.l.bf16 %v1101_v38  ;;  %v303_v53 = vmax.f32 %v239_v44, 0.0  ;;  %v242_v55 = vadd.f32 %v1192_v7, %v171_v46 }
  0x1b   :  { %v973_v52 = vpack.c.bf16 %v301_v43, %v300_v39  ;;  %v304_v54 = vmax.f32 %v240_v45, 0.0  ;;  %v305_v56 = vmax.f32 %v241_v48, 0.0  ;;  %v243_v57 = vadd.f32 %v1192_v7, %v172_v49  ;;  %v1108_v43 = vld [vmem:[%s1502_s0 + $0x98] sm:$0xff]  }
  0x1c   :  { %v853_v58 = vunpack.c.h.bf16 %v1101_v38  ;;  %v173_v59 = vmul.f32 %v852_v50, %v1178_v1  ;;  %v978_v61 = vpack.c.bf16 %v303_v53, %v302_v47  ;;  %v306_v62 = vmax.f32 %v242_v55, 0.0 }
  0x1d   :  { %1128 = vst [vmem:[%s1505_s3 + $0x40] sm:$0xff] %v973_v52   ;;  %v856_v63 = vunpack.c.l.bf16 %v1102_v51  ;;  %v857_v0 = vunpack.c.h.bf16 %v1102_v51  ;;  %v983_v3 = vpack.c.bf16 %v305_v56, %v304_v54  ;;  %v307_v4 = vmax.f32 %v243_v57, 0.0  ;;  %v1109_v56 = vld [vmem:[%s1502_s0 + $0xa0] sm:$0xff]  }
  0x1e   :  { %v174_v5 = vmul.f32 %v853_v58, %v1178_v1  ;;  %v244_v6 = vadd.f32 %v1192_v7, %v173_v59  ;;  %1129 = vst [vmem:[%s1505_s3 + $0x48] sm:$0xff] %v978_v61   ;;  %v860_v10 = vunpack.c.l.bf16 %v1103_v60  ;;  %v861_v11 = vunpack.c.h.bf16 %v1103_v60 }
  0x1f   :  { %v175_v8 = vmul.f32 %v856_v63, %v1178_v1  ;;  %v176_v9 = vmul.f32 %v857_v0, %v1178_v1  ;;  %1130 = vst [vmem:[%s1505_s3 + $0x50] sm:$0xff] %v983_v3   ;;  %v988_v13 = vpack.c.bf16 %v307_v4, %v306_v62  ;;  %v864_v16 = vunpack.c.l.bf16 %v1104_v2 }
  0x20   :  { %v245_v14 = vadd.f32 %v1192_v7, %v174_v5  ;;  %v308_v15 = vmax.f32 %v244_v6, 0.0  ;;  %v177_v19 = vmul.f32 %v860_v10, %v1178_v1  ;;  %v178_v20 = vmul.f32 %v861_v11, %v1178_v1 }
  0x21   :  { %v246_v17 = vadd.f32 %v1192_v7, %v175_v8  ;;  %v247_v18 = vadd.f32 %v1192_v7, %v176_v9  ;;  %1131 = vst [vmem:[%s1505_s3 + $0x58] sm:$0xff] %v988_v13   ;;  %v865_v22 = vunpack.c.h.bf16 %v1104_v2  ;;  %v179_v23 = vmul.f32 %v864_v16, %v1178_v1  ;;  %v1110_v2 = vld [vmem:[%s1502_s0 + $0xa8] sm:$0xff]   ;;  %v1111_v16 = vld [vmem:[%s1502_s0 + $0xb0] sm:$0xff]  }
  0x22   :  { %v309_v21 = vmax.f32 %v245_v14, 0.0  ;;  %v868_v24 = vunpack.c.l.bf16 %v1105_v12  ;;  %v248_v27 = vadd.f32 %v1192_v7, %v177_v19  ;;  %v249_v28 = vadd.f32 %v1192_v7, %v178_v20 }
  0x23   :  { %v310_v25 = vmax.f32 %v246_v17, 0.0  ;;  %v311_v26 = vmax.f32 %v247_v18, 0.0  ;;  %v180_v31 = vmul.f32 %v865_v22, %v1178_v1  ;;  %v250_v32 = vadd.f32 %v1192_v7, %v179_v23 }
  0x24   :  { %v993_v30 = vpack.c.bf16 %v309_v21, %v308_v15  ;;  %v869_v33 = vunpack.c.h.bf16 %v1105_v12  ;;  %v312_v36 = vmax.f32 %v248_v27, 0.0  ;;  %v313_v37 = vmax.f32 %v249_v28, 0.0  ;;  %v1112_v21 = vld [vmem:[%s1502_s0 + $0xb8] sm:$0xff]  }
  0x25   :  { %v998_v35 = vpack.c.bf16 %v311_v26, %v310_v25  ;;  %v181_v38 = vmul.f32 %v868_v24, %v1178_v1  ;;  %v251_v39 = vadd.f32 %v1192_v7, %v180_v31  ;;  %v314_v40 = vmax.f32 %v250_v32, 0.0 }
  0x26   :  { %1132 = vst [vmem:[%s1505_s3 + $0x60] sm:$0xff] %v993_v30   ;;  %v182_v41 = vmul.f32 %v869_v33, %v1178_v1  ;;  %v872_v42 = vunpack.c.l.bf16 %v1106_v29  ;;  %v1003_v44 = vpack.c.bf16 %v313_v37, %v312_v36  ;;  %v873_v46 = vunpack.c.h.bf16 %v1106_v29 }
  0x27   :  { %1133 = vst [vmem:[%s1505_s3 + $0x68] sm:$0xff] %v998_v35   ;;  %v252_v45 = vadd.f32 %v1192_v7, %v181_v38  ;;  %v876_v47 = vunpack.c.l.bf16 %v1107_v34  ;;  %v315_v48 = vmax.f32 %v251_v39, 0.0  ;;  %v877_v51 = vunpack.c.h.bf16 %v1107_v34  ;;  %v1113_v34 = vld [vmem:[%s1502_s0 + $0xc0] sm:$0xff]  }
  0x28   :  { %v253_v49 = vadd.f32 %v1192_v7, %v182_v41  ;;  %v183_v50 = vmul.f32 %v872_v42, %v1178_v1  ;;  %1134 = vst [vmem:[%s1505_s3 + $0x70] sm:$0xff] %v1003_v44   ;;  %v184_v53 = vmul.f32 %v873_v46, %v1178_v1  ;;  %v880_v55 = vunpack.c.l.bf16 %v1108_v43 }
  0x29   :  { %v316_v52 = vmax.f32 %v252_v45, 0.0  ;;  %v185_v54 = vmul.f32 %v876_v47, %v1178_v1  ;;  %v1008_v57 = vpack.c.bf16 %v315_v48, %v314_v40  ;;  %v186_v60 = vmul.f32 %v877_v51, %v1178_v1  ;;  %v1114_v47 = vld [vmem:[%s1502_s0 + $0xc8] sm:$0xff]  }
  0x2a   :  { %v317_v58 = vmax.f32 %v253_v49, 0.0  ;;  %v254_v59 = vadd.f32 %v1192_v7, %v183_v50  ;;  %v255_v61 = vadd.f32 %v1192_v7, %v184_v53  ;;  %v881_v63 = vunpack.c.h.bf16 %v1108_v43 }
  0x2b   :  { %v256_v62 = vadd.f32 %v1192_v7, %v185_v54  ;;  %v187_v0 = vmul.f32 %v880_v55, %v1178_v1  ;;  %1135 = vst [vmem:[%s1505_s3 + $0x78] sm:$0xff] %v1008_v57   ;;  %v257_v5 = vadd.f32 %v1192_v7, %v186_v60  ;;  %v884_v6 = vunpack.c.l.bf16 %v1109_v56 }
  0x2c   :  { %v1013_v3 = vpack.c.bf16 %v317_v58, %v316_v52  ;;  %v318_v4 = vmax.f32 %v254_v59, 0.0  ;;  %v319_v8 = vmax.f32 %v255_v61, 0.0  ;;  %v188_v10 = vmul.f32 %v881_v63, %v1178_v1  ;;  %v1115_v52 = vld [vmem:[%s1502_s0 + $0xd0] sm:$0xff]   ;;  %v1116_v61 = vld [vmem:[%s1502_s0 + $0xd8] sm:$0xff]  }
  0x2d   :  { %v320_v9 = vmax.f32 %v256_v62, 0.0  ;;  %v258_v11 = vadd.f32 %v1192_v7, %v187_v0  ;;  %v321_v12 = vmax.f32 %v257_v5, 0.0  ;;  %v885_v13 = vunpack.c.h.bf16 %v1109_v56 }
  0x2e   :  { %1136 = vst [vmem:[%s1505_s3 + $0x80] sm:$0xff] %v1013_v3   ;;  %v189_v14 = vmul.f32 %v884_v6, %v1178_v1  ;;  %v888_v15 = vunpack.c.l.bf16 %v1110_v2  ;;  %v1018_v17 = vpack.c.bf16 %v319_v8, %v318_v4  ;;  %v259_v18 = vadd.f32 %v1192_v7, %v188_v10 }
  0x2f   :  { %v322_v19 = vmax.f32 %v258_v11, 0.0  ;;  %v889_v20 = vunpack.c.h.bf16 %v1110_v2  ;;  %v1023_v22 = vpack.c.bf16 %v321_v12, %v320_v9  ;;  %v190_v23 = vmul.f32 %v885_v13, %v1178_v1  ;;  %v1117_v12 = vld [vmem:[%s1502_s0 + $0xe0] sm:$0xff]  }
  0x30   :  { %v260_v24 = vadd.f32 %v1192_v7, %v189_v14  ;;  %v191_v25 = vmul.f32 %v888_v15, %v1178_v1  ;;  %1137 = vst [vmem:[%s1505_s3 + $0x88] sm:$0xff] %v1018_v17   ;;  %v323_v26 = vmax.f32 %v259_v18, 0.0  ;;  %v892_v28 = vunpack.c.l.bf16 %v1111_v16 }
  0x31   :  { %v192_v27 = vmul.f32 %v889_v20, %v1178_v1  ;;  %v893_v29 = vunpack.c.h.bf16 %v1111_v16  ;;  %1138 = vst [vmem:[%s1505_s3 + $0x90] sm:$0xff] %v1023_v22   ;;  %v261_v30 = vadd.f32 %v1192_v7, %v190_v23  ;;  %v896_v33 = vunpack.c.l.bf16 %v1112_v21 }
  0x32   :  { %v324_v31 = vmax.f32 %v260_v24, 0.0  ;;  %v262_v32 = vadd.f32 %v1192_v7, %v191_v25  ;;  %v1028_v35 = vpack.c.bf16 %v323_v26, %v322_v19  ;;  %v193_v37 = vmul.f32 %v892_v28, %v1178_v1 }
  0x33   :  { %v263_v36 = vadd.f32 %v1192_v7, %v192_v27  ;;  %v194_v38 = vmul.f32 %v893_v29, %v1178_v1  ;;  %v325_v39 = vmax.f32 %v261_v30, 0.0  ;;  %v897_v41 = vunpack.c.h.bf16 %v1112_v21  ;;  %v1118_v21 = vld [vmem:[%s1502_s0 + $0xe8] sm:$0xff]  }
  0x34   :  { %v326_v40 = vmax.f32 %v262_v32, 0.0  ;;  %v195_v42 = vmul.f32 %v896_v33, %v1178_v1  ;;  %1139 = vst [vmem:[%s1505_s3 + $0x98] sm:$0xff] %v1028_v35   ;;  %v264_v44 = vadd.f32 %v1192_v7, %v193_v37  ;;  %v900_v46 = vunpack.c.l.bf16 %v1113_v34 }
  0x35   :  { %v327_v43 = vmax.f32 %v263_v36, 0.0  ;;  %v265_v45 = vadd.f32 %v1192_v7, %v194_v38  ;;  %v1033_v48 = vpack.c.bf16 %v325_v39, %v324_v31  ;;  %v196_v49 = vmul.f32 %v897_v41, %v1178_v1  ;;  %v1120_v39 = vld [vmem:[%s1502_s0 + $0xf8] sm:$0xff]  }
  0x36   :  { %v266_v50 = vadd.f32 %v1192_v7, %v195_v42  ;;  %v901_v51 = vunpack.c.h.bf16 %v1113_v34  ;;  %v328_v54 = vmax.f32 %v264_v44, 0.0  ;;  %v197_v56 = vmul.f32 %v900_v46, %v1178_v1  ;;  %v1119_v34 = vld [vmem:[%s1502_s0 + $0xf0] sm:$0xff]  }
  0x37   :  { %v1038_v53 = vpack.c.bf16 %v327_v43, %v326_v40  ;;  %v329_v55 = vmax.f32 %v265_v45, 0.0  ;;  %1140 = vst [vmem:[%s1505_s3 + $0xa0] sm:$0xff] %v1033_v48   ;;  %v267_v57 = vadd.f32 %v1192_v7, %v196_v49  ;;  %v904_v60 = vunpack.c.l.bf16 %v1114_v47 }
  0x38   :  { %v330_v58 = vmax.f32 %v266_v50, 0.0  ;;  %v198_v59 = vmul.f32 %v901_v51, %v1178_v1  ;;  %v268_v63 = vadd.f32 %v1192_v7, %v197_v56  ;;  %v905_v0 = vunpack.c.h.bf16 %v1114_v47 }
  0x39   :  { %1141 = vst [vmem:[%s1505_s3 + $0xa8] sm:$0xff] %v1038_v53   ;;  %v1043_v62 = vpack.c.bf16 %v329_v55, %v328_v54  ;;  %v908_v2 = vunpack.c.l.bf16 %v1115_v52  ;;  %v331_v3 = vmax.f32 %v267_v57, 0.0  ;;  %v199_v5 = vmul.f32 %v904_v60, %v1178_v1 }
  0x3a   :  { %v269_v4 = vadd.f32 %v1192_v7, %v198_v59  ;;  %v909_v6 = vunpack.c.h.bf16 %v1115_v52  ;;  %v332_v8 = vmax.f32 %v268_v63, 0.0  ;;  %v200_v9 = vmul.f32 %v905_v0, %v1178_v1 }
  0x3b   :  { %1142 = vst [vmem:[%s1505_s3 + $0xb0] sm:$0xff] %v1043_v62   ;;  %v201_v10 = vmul.f32 %v908_v2, %v1178_v1  ;;  %v912_v11 = vunpack.c.l.bf16 %v1116_v61  ;;  %v1048_v13 = vpack.c.bf16 %v331_v3, %v330_v58  ;;  %v270_v15 = vadd.f32 %v1192_v7, %v199_v5 }
  0x3c   :  { %v333_v14 = vmax.f32 %v269_v4, 0.0  ;;  %v202_v16 = vmul.f32 %v909_v6, %v1178_v1  ;;  %v271_v17 = vadd.f32 %v1192_v7, %v200_v9  ;;  %v913_v19 = vunpack.c.h.bf16 %v1116_v61 }
  0x3d   :  { %v272_v18 = vadd.f32 %v1192_v7, %v201_v10  ;;  %v203_v20 = vmul.f32 %v912_v11, %v1178_v1  ;;  %1143 = vst [vmem:[%s1505_s3 + $0xb8] sm:$0xff] %v1048_v13   ;;  %v334_v23 = vmax.f32 %v270_v15, 0.0  ;;  %v916_v25 = vunpack.c.l.bf16 %v1117_v12 }
  0x3e   :  { %v1053_v22 = vpack.c.bf16 %v333_v14, %v332_v8  ;;  %v273_v24 = vadd.f32 %v1192_v7, %v202_v16  ;;  %v335_v26 = vmax.f32 %v271_v17, 0.0  ;;  %v204_v28 = vmul.f32 %v913_v19, %v1178_v1 }
  0x3f   :  { %v336_v27 = vmax.f32 %v272_v18, 0.0  ;;  %v274_v29 = vadd.f32 %v1192_v7, %v203_v20  ;;  %v917_v31 = vunpack.c.h.bf16 %v1117_v12  ;;  %v205_v32 = vmul.f32 %v916_v25, %v1178_v1 }
  0x40   :  { %1144 = vst [vmem:[%s1505_s3 + $0xc0] sm:$0xff] %v1053_v22   ;;  %v337_v30 = vmax.f32 %v273_v24, 0.0  ;;  %v920_v33 = vunpack.c.l.bf16 %v1118_v21  ;;  %v1058_v35 = vpack.c.bf16 %v335_v26, %v334_v23  ;;  %v275_v36 = vadd.f32 %v1192_v7, %v204_v28 }
  0x41   :  { %v338_v37 = vmax.f32 %v274_v29, 0.0  ;;  %v921_v38 = vunpack.c.h.bf16 %v1118_v21  ;;  %v206_v41 = vmul.f32 %v917_v31, %v1178_v1  ;;  %v276_v42 = vadd.f32 %v1192_v7, %v205_v32 }
  0x42   :  { %v1063_v40 = vpack.c.bf16 %v337_v30, %v336_v27  ;;  %v207_v43 = vmul.f32 %v920_v33, %v1178_v1  ;;  %1145 = vst [vmem:[%s1505_s3 + $0xc8] sm:$0xff] %v1058_v35   ;;  %v339_v44 = vmax.f32 %v275_v36, 0.0  ;;  %v924_v46 = vunpack.c.l.bf16 %v1119_v34 }
  0x43   :  { %v208_v45 = vmul.f32 %v921_v38, %v1178_v1  ;;  %v925_v47 = vunpack.c.h.bf16 %v1119_v34  ;;  %v277_v48 = vadd.f32 %v1192_v7, %v206_v41  ;;  %v340_v49 = vmax.f32 %v276_v42, 0.0 }
  0x44   :  { %1146 = vst [vmem:[%s1505_s3 + $0xd0] sm:$0xff] %v1063_v40   ;;  %v278_v50 = vadd.f32 %v1192_v7, %v207_v43  ;;  %v928_v51 = vunpack.c.l.bf16 %v1120_v39  ;;  %v1068_v52 = vpack.c.bf16 %v339_v44, %v338_v37  ;;  %v209_v54 = vmul.f32 %v924_v46, %v1178_v1 }
  0x45   :  { %v279_v53 = vadd.f32 %v1192_v7, %v208_v45  ;;  %v210_v55 = vmul.f32 %v925_v47, %v1178_v1  ;;  %v341_v56 = vmax.f32 %v277_v48, 0.0  ;;  %v929_v58 = vunpack.c.h.bf16 %v1120_v39 }
  0x46   :  { %v342_v57 = vmax.f32 %v278_v50, 0.0  ;;  %v211_v59 = vmul.f32 %v928_v51, %v1178_v1  ;;  %1147 = vst [vmem:[%s1505_s3 + $0xd8] sm:$0xff] %v1068_v52   ;;  %v280_v61 = vadd.f32 %v1192_v7, %v209_v54 }
  0x47   :  { %v343_v60 = vmax.f32 %v279_v53, 0.0  ;;  %v281_v62 = vadd.f32 %v1192_v7, %v210_v55  ;;  %v1073_v63 = vpack.c.bf16 %v341_v56, %v340_v49  ;;  %v212_v0 = vmul.f32 %v929_v58, %v1178_v1 }
  0x48   :  { %v282_v2 = vadd.f32 %v1192_v7, %v211_v59  ;;  %v344_v4 = vmax.f32 %v280_v61, 0.0 }
  0x49   :  { %v1078_v3 = vpack.c.bf16 %v343_v60, %v342_v57  ;;  %v345_v5 = vmax.f32 %v281_v62, 0.0  ;;  %1148 = vst [vmem:[%s1505_s3 + $0xe0] sm:$0xff] %v1073_v63   ;;  %v283_v6 = vadd.f32 %v1192_v7, %v212_v0 }
  0x4a   :  { %v346_v8 = vmax.f32 %v282_v2, 0.0 }
  0x4b   :  { %1149 = vst [vmem:[%s1505_s3 + $0xe8] sm:$0xff] %v1078_v3   ;;  %v1083_v9 = vpack.c.bf16 %v345_v5, %v344_v4  ;;  %v347_v10 = vmax.f32 %v283_v6, 0.0 }
  0x4d   :  { %1150 = vst [vmem:[%s1505_s3 + $0xf0] sm:$0xff] %v1083_v9   ;;  %v1088_v1 = vpack.c.bf16 %v347_v10, %v346_v8 }
  0x4f   :  { %1151 = vst [vmem:[%s1505_s3 + $0xf8] sm:$0xff] %v1088_v1  }

// kernel: generator_forward.13
= control target key start
LH: loop header
LB: loop body
LE: loop exit
PB: predicated region body
PF: predicated region fallthrough
CT: control target
= control target key end

     0   :  { %s2735_s14 = smov 0   ;;  %s2737_s15 = smov 0   ;;  %s3168_s0 = inlined_call_operand.vmem [shape: bf16[4,512,512], index: 0, kind: input, shape index: {}]   ;;  %s3169_s1 = inlined_call_operand.vmem [shape: bf16[4,512,128], index: 1, kind: input, shape index: {}]   ;;  %s3170_s2 = inlined_call_operand.<no memory space> [shape: f32[1,1], index: 2, kind: input, shape index: {}]   ;;  %s3171_s3 = inlined_call_operand.vmem [shape: f32[4,512,1], index: 3, kind: output, shape index: {}]  }
   0x1   :  { %8 = sst [smem:[#allocation2]] %s3170_s2  ;;  %s2739_s16 = smov 0  }
   0x2 LB: > { %s26_s2 = sadd.s32 1, %s2705_s15  ;;  %p2138_p0 = scmp.ge.s32.totalorder %s2709_s16, 1  ;;  %s2709_s16 = sphi %s2739_s16, %s14_s16   ;;  %s2705_s15 = sphi %s2737_s15, %s3173_s15   ;;  %s2701_s14 = sphi %s2735_s14, %s3172_s14  }
   0x3   : > { %p28_p1 = scmp.ge.s32.totalorder %s26_s2, 4  ;;  %p170_p2 = scmp.lt.s32.totalorder %s2709_s16, 5 }
   0x5   : > { %s3175_s2 = smov (%p28_p1, %s26_s2), 0  ;;  %p171_p3 = pnand %p2138_p0, %p170_p2 }
   0x6   : > { %p209_p4 = scmp.lt.s32.totalorder (!%p171_p3), %s2701_s14, 3  ;;  %v2711_v0 = vmov (!%p171_p3), 0   ;;  %s1837_s25 = sld [smem:[#allocation2]] (!%p171_p3)  ;;  %vm1967_vm0 = vcmask (!%p171_p3), 7168  }
   0x7   : > { %174 = sbr.rel (%p171_p3) target bundleno = 560 (0x230), region = 32  ;;  %1259 = vmatprep.subr.bf16.mxu0 (!%p171_p3), %v2711_v0  ;;  %1548 = vmatprep.subr.bf16.mxu1 (!%p171_p3), %v2711_v0 }
   0xe   : > { %s3177_s14 = smov (!%p209_p4, %s2701_s14), 3 }
   0xf   : > { %s2308_s17 = sshll.u32 %s3177_s14, 8  ;;  %s2307_s21 = sshll.u32 %s3177_s14, 10 }
  0x10   : > { %s2761_s20 = scalar_lea.vmem %s3169_s1, %s2308_s17  ;;  %s2798_s24 = scalar_lea.vmem %s3168_s0, %s2307_s21 }
  0x11   : > { %v2335_v1 = vld [vmem:[%s2761_s20] sm:$0xff]   ;;  %v2337_v3 = vld [vmem:[%s2761_s20 + $0x8] sm:$0xff]   ;;  %v2339_v5 = vld [vmem:[%s2761_s20 + $0x10] sm:$0xff]   ;;  %s2309_s26 = sshll.u32 %s3177_s14, 9 }
  0x12   : > { %v2336_v2 = vld [vmem:[%s2761_s20 + $0x80] sm:$0xff]   ;;  %1260 = vmatpush1.bf16.msra.mxu0 %v2335_v1  ;;  %v2338_v4 = vld [vmem:[%s2761_s20 + $0x88] sm:$0xff]   ;;  %v2340_v6 = vld [vmem:[%s2761_s20 + $0x90] sm:$0xff]   ;;  %s2958_s29 = scalar_lea.vmem %s3171_s3, %s2309_s26 }
  0x13   : > { %1549 = vmatpush1.bf16.msra.mxu1 %v2336_v2  ;;  %1261 = vmatprep.subr.bf16.mxu0 %v2711_v0  ;;  %v2341_v7 = vld [vmem:[%s2761_s20 + $0x18] sm:$0xff]   ;;  %v2343_v9 = vld [vmem:[%s2761_s20 + $0x20] sm:$0xff]   ;;  %v2345_v11 = vld [vmem:[%s2761_s20 + $0x28] sm:$0xff]  }
  0x14   : > { %1550 = vmatprep.subr.bf16.mxu1 %v2711_v0  ;;  %v2342_v8 = vld [vmem:[%s2761_s20 + $0x98] sm:$0xff]   ;;  %v2344_v10 = vld [vmem:[%s2761_s20 + $0xa0] sm:$0xff]   ;;  %v2346_v12 = vld [vmem:[%s2761_s20 + $0xa8] sm:$0xff]  }
  0x15   : > { %v2347_v13 = vld [vmem:[%s2761_s20 + $0x30] sm:$0xff]   ;;  %v2349_v15 = vld [vmem:[%s2761_s20 + $0x38] sm:$0xff]   ;;  %v2351_v17 = vld [vmem:[%s2761_s20 + $0x40] sm:$0xff]  }
  0x16   : > { %1262 = vmatpush1.bf16.msra.mxu0 %v2337_v3  ;;  %v2348_v14 = vld [vmem:[%s2761_s20 + $0xb0] sm:$0xff]   ;;  %v2350_v16 = vld [vmem:[%s2761_s20 + $0xb8] sm:$0xff]   ;;  %v2352_v18 = vld [vmem:[%s2761_s20 + $0xc0] sm:$0xff]  }
  0x17   : > { %1551 = vmatpush1.bf16.msra.mxu1 %v2338_v4  ;;  %1263 = vmatprep.subr.bf16.mxu0 %v2711_v0  ;;  %v2369_v19 = vld [vmem:[%s2798_s24 + $0x4] ss:$16 sps:$4 sm:$0xff]   ;;  %v2353_v20 = vld [vmem:[%s2761_s20 + $0x48] sm:$0xff]   ;;  %v2357_v25 = vld [vmem:[%s2761_s20 + $0x58] sm:$0xff]  }
  0x18   : > { %1552 = vmatprep.subr.bf16.mxu1 %v2711_v0  ;;  %v2372_v21 = vld [vmem:[%s2798_s24 + $0xc] ss:$16 sps:$4 sm:$0xff]   ;;  %1291 = vmatprep.mubr.bf16.mxu0 %v2369_v19  ;;  %v2355_v23 = vld [vmem:[%s2761_s20 + $0x50] sm:$0xff]   ;;  %v2359_v27 = vld [vmem:[%s2761_s20 + $0x60] sm:$0xff]  }
  0x19   : > { %v2354_v22 = vld [vmem:[%s2761_s20 + $0xc8] sm:$0xff]   ;;  %1580 = vmatprep.mubr.bf16.mxu1 %v2372_v21  ;;  %v2356_v24 = vld [vmem:[%s2761_s20 + $0xd0] sm:$0xff]   ;;  %v2358_v26 = vld [vmem:[%s2761_s20 + $0xd8] sm:$0xff]  }
  0x1a   : > { %1264 = vmatpush1.bf16.msra.mxu0 %v2339_v5  ;;  %v2360_v28 = vld [vmem:[%s2761_s20 + $0xe0] sm:$0xff]   ;;  %v2361_v29 = vld [vmem:[%s2761_s20 + $0x68] sm:$0xff]   ;;  %v2363_v31 = vld [vmem:[%s2761_s20 + $0x70] sm:$0xff]  }
  0x1b   : > { %1553 = vmatpush1.bf16.msra.mxu1 %v2340_v6  ;;  %1265 = vmatprep.subr.bf16.mxu0 %v2711_v0  ;;  %v2362_v30 = vld [vmem:[%s2761_s20 + $0xe8] sm:$0xff]   ;;  %v2364_v32 = vld [vmem:[%s2761_s20 + $0xf0] sm:$0xff]   ;;  %v2365_v33 = vld [vmem:[%s2761_s20 + $0x78] sm:$0xff]  }
  0x1c   : > { %1554 = vmatprep.subr.bf16.mxu1 %v2711_v0  ;;  %v2366_v34 = vld [vmem:[%s2761_s20 + $0xf8] sm:$0xff]   ;;  %v2367_v35 = vld [vmem:[%s2798_s24] ss:$16 sps:$4 sm:$0xff]   ;;  %v2373_v37 = vld [vmem:[%s2798_s24 + $0x24] ss:$16 sps:$4 sm:$0xff]  }
  0x1d   : > { %v2370_v36 = vld [vmem:[%s2798_s24 + $0x8] ss:$16 sps:$4 sm:$0xff]   ;;  %v2375_v38 = vld [vmem:[%s2798_s24 + $0x2c] ss:$16 sps:$4 sm:$0xff]   ;;  %v2377_v39 = vld [vmem:[%s2798_s24 + $0x20] ss:$16 sps:$4 sm:$0xff]  }
  0x1e   : > { %1266 = vmatpush1.bf16.msra.mxu0 %v2341_v7  ;;  %v2378_v40 = vld [vmem:[%s2798_s24 + $0x28] ss:$16 sps:$4 sm:$0xff]   ;;  %v2379_v41 = vld [vmem:[%s2798_s24 + $0x44] ss:$16 sps:$4 sm:$0xff]   ;;  %v2381_v42 = vld [vmem:[%s2798_s24 + $0x4c] ss:$16 sps:$4 sm:$0xff]  }
  0x1f   : > { %1555 = vmatpush1.bf16.msra.mxu1 %v2342_v8  ;;  %1267 = vmatprep.subr.bf16.mxu0 %v2711_v0  ;;  %v2383_v43 = vld [vmem:[%s2798_s24 + $0x40] ss:$16 sps:$4 sm:$0xff]   ;;  %v2384_v44 = vld [vmem:[%s2798_s24 + $0x48] ss:$16 sps:$4 sm:$0xff]   ;;  %v2385_v45 = vld [vmem:[%s2798_s24 + $0x64] ss:$16 sps:$4 sm:$0xff]  }
  0x20   : > { %1556 = vmatprep.subr.bf16.mxu1 %v2711_v0  ;;  %v2387_v46 = vld [vmem:[%s2798_s24 + $0x6c] ss:$16 sps:$4 sm:$0xff]   ;;  %v2389_v47 = vld [vmem:[%s2798_s24 + $0x60] ss:$16 sps:$4 sm:$0xff]   ;;  %v2390_v48 = vld [vmem:[%s2798_s24 + $0x68] ss:$16 sps:$4 sm:$0xff]  }
  0x21   : > { %v2391_v49 = vld [vmem:[%s2798_s24 + $0x84] ss:$16 sps:$4 sm:$0xff]   ;;  %v2393_v50 = vld [vmem:[%s2798_s24 + $0x8c] ss:$16 sps:$4 sm:$0xff]   ;;  %v2395_v51 = vld [vmem:[%s2798_s24 + $0x80] ss:$16 sps:$4 sm:$0xff]  }
  0x22   : > { %1268 = vmatpush1.bf16.msra.mxu0 %v2343_v9  ;;  %v2396_v52 = vld [vmem:[%s2798_s24 + $0x88] ss:$16 sps:$4 sm:$0xff]   ;;  %v2397_v53 = vld [vmem:[%s2798_s24 + $0xa4] ss:$16 sps:$4 sm:$0xff]   ;;  %v2399_v54 = vld [vmem:[%s2798_s24 + $0xac] ss:$16 sps:$4 sm:$0xff]  }
  0x23   : > { %1557 = vmatpush1.bf16.msra.mxu1 %v2344_v10  ;;  %1269 = vmatprep.subr.bf16.mxu0 %v2711_v0  ;;  %v2401_v55 = vld [vmem:[%s2798_s24 + $0xa0] ss:$16 sps:$4 sm:$0xff]   ;;  %v2402_v56 = vld [vmem:[%s2798_s24 + $0xa8] ss:$16 sps:$4 sm:$0xff]   ;;  %v2403_v57 = vld [vmem:[%s2798_s24 + $0xc4] ss:$16 sps:$4 sm:$0xff]  }
  0x24   : > { %1558 = vmatprep.subr.bf16.mxu1 %v2711_v0  ;;  %v2405_v58 = vld [vmem:[%s2798_s24 + $0xcc] ss:$16 sps:$4 sm:$0xff]   ;;  %v2407_v59 = vld [vmem:[%s2798_s24 + $0xc0] ss:$16 sps:$4 sm:$0xff]   ;;  %v2408_v60 = vld [vmem:[%s2798_s24 + $0xc8] ss:$16 sps:$4 sm:$0xff]  }
  0x25   : > { %v2409_v61 = vld [vmem:[%s2798_s24 + $0xe4] ss:$16 sps:$4 sm:$0xff]   ;;  %v2411_v62 = vld [vmem:[%s2798_s24 + $0xec] ss:$16 sps:$4 sm:$0xff]   ;;  %v2413_v63 = vld [vmem:[%s2798_s24 + $0xe0] ss:$16 sps:$4 sm:$0xff]  }
  0x26   : > { %1270 = vmatpush1.bf16.msra.mxu0 %v2345_v11  ;;  %v2415_v1 = vld [vmem:[%s2798_s24 + $0x104] ss:$16 sps:$4 sm:$0xff]   ;;  %v2417_v2 = vld [vmem:[%s2798_s24 + $0x10c] ss:$16 sps:$4 sm:$0xff]   ;;  %v2419_v3 = vld [vmem:[%s2798_s24 + $0x100] ss:$16 sps:$4 sm:$0xff]  }
  0x27   : > { %1559 = vmatpush1.bf16.msra.mxu1 %v2346_v12  ;;  %1271 = vmatprep.subr.bf16.mxu0 %v2711_v0  ;;  %v2420_v4 = vld [vmem:[%s2798_s24 + $0x108] ss:$16 sps:$4 sm:$0xff]   ;;  %v2421_v5 = vld [vmem:[%s2798_s24 + $0x124] ss:$16 sps:$4 sm:$0xff]   ;;  %v2423_v6 = vld [vmem:[%s2798_s24 + $0x12c] ss:$16 sps:$4 sm:$0xff]  }
  0x28   : > { %1560 = vmatprep.subr.bf16.mxu1 %v2711_v0  ;;  %v2425_v7 = vld [vmem:[%s2798_s24 + $0x120] ss:$16 sps:$4 sm:$0xff]   ;;  %v2426_v8 = vld [vmem:[%s2798_s24 + $0x128] ss:$16 sps:$4 sm:$0xff]   ;;  %v2427_v9 = vld [vmem:[%s2798_s24 + $0x144] ss:$16 sps:$4 sm:$0xff]  }
  0x29   : > { %v2429_v10 = vld [vmem:[%s2798_s24 + $0x14c] ss:$16 sps:$4 sm:$0xff]   ;;  %v2431_v11 = vld [vmem:[%s2798_s24 + $0x140] ss:$16 sps:$4 sm:$0xff]   ;;  %v2432_v12 = vld [vmem:[%s2798_s24 + $0x148] ss:$16 sps:$4 sm:$0xff]  }
  0x2a   : > { %1272 = vmatpush1.bf16.msra.mxu0 %v2347_v13  ;;  %v2433_v13 = vld [vmem:[%s2798_s24 + $0x164] ss:$16 sps:$4 sm:$0xff]   ;;  %v2443_v19 = vld [vmem:[%s2798_s24 + $0x180] ss:$16 sps:$4 sm:$0xff]  }
  0x2b   : > { %1561 = vmatpush1.bf16.msra.mxu1 %v2348_v14  ;;  %1273 = vmatprep.subr.bf16.mxu0 %v2711_v0  ;;  %v2435_v14 = vld [vmem:[%s2798_s24 + $0x16c] ss:$16 sps:$4 sm:$0xff]   ;;  %v2445_v21 = vld [vmem:[%s2798_s24 + $0x1a4] ss:$16 sps:$4 sm:$0xff]  }
  0x2c   : > { %1562 = vmatprep.subr.bf16.mxu1 %v2711_v0 }
  0x2e   : > { %1274 = vmatpush1.bf16.msra.mxu0 %v2349_v15  ;;  %v2437_v15 = vld [vmem:[%s2798_s24 + $0x160] ss:$16 sps:$4 sm:$0xff]  }
  0x2f   : > { %1563 = vmatpush1.bf16.msra.mxu1 %v2350_v16  ;;  %1275 = vmatprep.subr.bf16.mxu0 %v2711_v0  ;;  %v2438_v16 = vld [vmem:[%s2798_s24 + $0x168] ss:$16 sps:$4 sm:$0xff]  }
  0x30   : > { %1564 = vmatprep.subr.bf16.mxu1 %v2711_v0 }
  0x32   : > { %1276 = vmatpush1.bf16.msra.mxu0 %v2351_v17  ;;  %v2439_v17 = vld [vmem:[%s2798_s24 + $0x184] ss:$16 sps:$4 sm:$0xff]  }
  0x33   : > { %1565 = vmatpush1.bf16.msra.mxu1 %v2352_v18  ;;  %1277 = vmatprep.subr.bf16.mxu0 %v2711_v0  ;;  %v2441_v18 = vld [vmem:[%s2798_s24 + $0x18c] ss:$16 sps:$4 sm:$0xff]  }
  0x34   : > { %1566 = vmatprep.subr.bf16.mxu1 %v2711_v0 }
  0x36   : > { %1278 = vmatpush1.bf16.msra.mxu0 %v2353_v20  ;;  %v2444_v20 = vld [vmem:[%s2798_s24 + $0x188] ss:$16 sps:$4 sm:$0xff]  }
  0x37   : > { %1567 = vmatpush1.bf16.msra.mxu1 %v2354_v22  ;;  %1279 = vmatprep.subr.bf16.mxu0 %v2711_v0  ;;  %v2447_v22 = vld [vmem:[%s2798_s24 + $0x1ac] ss:$16 sps:$4 sm:$0xff]  }
  0x38   : > { %1568 = vmatprep.subr.bf16.mxu1 %v2711_v0 }
  0x3a   : > { %1280 = vmatpush1.bf16.msra.mxu0 %v2355_v23  ;;  %v2449_v23 = vld [vmem:[%s2798_s24 + $0x1a0] ss:$16 sps:$4 sm:$0xff]  }
  0x3b   : > { %1569 = vmatpush1.bf16.msra.mxu1 %v2356_v24  ;;  %1281 = vmatprep.subr.bf16.mxu0 %v2711_v0  ;;  %v2450_v24 = vld [vmem:[%s2798_s24 + $0x1a8] ss:$16 sps:$4 sm:$0xff]  }
  0x3c   : > { %1570 = vmatprep.subr.bf16.mxu1 %v2711_v0 }
  0x3e   : > { %1282 = vmatpush1.bf16.msra.mxu0 %v2357_v25  ;;  %v2451_v25 = vld [vmem:[%s2798_s24 + $0x1c4] ss:$16 sps:$4 sm:$0xff]  }
  0x3f   : > { %1571 = vmatpush1.bf16.msra.mxu1 %v2358_v26  ;;  %1283 = vmatprep.subr.bf16.mxu0 %v2711_v0  ;;  %v2453_v26 = vld [vmem:[%s2798_s24 + $0x1cc] ss:$16 sps:$4 sm:$0xff]  }
  0x40   : > { %1572 = vmatprep.subr.bf16.mxu1 %v2711_v0 }
  0x42   : > { %1284 = vmatpush1.bf16.msra.mxu0 %v2359_v27  ;;  %v2455_v27 = vld [vmem:[%s2798_s24 + $0x1c0] ss:$16 sps:$4 sm:$0xff]  }
  0x43   : > { %1573 = vmatpush1.bf16.msra.mxu1 %v2360_v28  ;;  %1285 = vmatprep.subr.bf16.mxu0 %v2711_v0  ;;  %v2456_v28 = vld [vmem:[%s2798_s24 + $0x1c8] ss:$16 sps:$4 sm:$0xff]  }
  0x44   : > { %1574 = vmatprep.subr.bf16.mxu1 %v2711_v0 }
  0x46   : > { %1286 = vmatpush1.bf16.msra.mxu0 %v2361_v29  ;;  %v2457_v29 = vld [vmem:[%s2798_s24 + $0x1e4] ss:$16 sps:$4 sm:$0xff]  }
  0x47   : > { %1575 = vmatpush1.bf16.msra.mxu1 %v2362_v30  ;;  %1287 = vmatprep.subr.bf16.mxu0 %v2711_v0  ;;  %v2459_v30 = vld [vmem:[%s2798_s24 + $0x1ec] ss:$16 sps:$4 sm:$0xff]  }
  0x48   : > { %1576 = vmatprep.subr.bf16.mxu1 %v2711_v0 }
  0x4a   : > { %1288 = vmatpush1.bf16.msra.mxu0 %v2363_v31  ;;  %v2461_v31 = vld [vmem:[%s2798_s24 + $0x1e0] ss:$16 sps:$4 sm:$0xff]  }
  0x4b   : > { %1577 = vmatpush1.bf16.msra.mxu1 %v2364_v32  ;;  %1289 = vmatprep.subr.bf16.mxu0 %v2711_v0  ;;  %v2462_v32 = vld [vmem:[%s2798_s24 + $0x1e8] ss:$16 sps:$4 sm:$0xff]  }
  0x4c   : > { %1578 = vmatprep.subr.bf16.mxu1 %v2711_v0  ;;  %v2414_v0 = vld [vmem:[%s2798_s24 + $0xe8] ss:$16 sps:$4 sm:$0xff]  }
  0x4e   : > { %1290 = vmatpush1.bf16.msra.mxu0 %v2365_v33  ;;  %v2463_v33 = vld [vmem:[%s2798_s24 + $0x204] ss:$16 sps:$4 sm:$0xff]  }
  0x4f   : > { %1579 = vmatpush1.bf16.msra.mxu1 %v2366_v34  ;;  %v2465_v34 = vld [vmem:[%s2798_s24 + $0x20c] ss:$16 sps:$4 sm:$0xff]  }
  0x51   : > { %1292 = vmatmul.mubr.bf16.vlgmr.msra.gmra.mrb[0].mxu0 %v2367_v35  ;;  %v2467_v35 = vld [vmem:[%s2798_s24 + $0x200] ss:$16 sps:$4 sm:$0xff]  }
  0x52   : > { %1581 = vmatmul.mubr.bf16.vlgmr.msra.gmra.mrb[0].mxu1 %v2370_v36  ;;  %1299 = vmatprep.mubr.bf16.mxu0 %v2373_v37  ;;  %v2468_v36 = vld [vmem:[%s2798_s24 + $0x208] ss:$16 sps:$4 sm:$0xff]   ;;  %v2469_v37 = vld [vmem:[%s2798_s24 + $0x224] ss:$16 sps:$4 sm:$0xff]  }
  0x53   : > { %1588 = vmatprep.mubr.bf16.mxu1 %v2375_v38  ;;  %v2471_v38 = vld [vmem:[%s2798_s24 + $0x22c] ss:$16 sps:$4 sm:$0xff]  }
  0x59   : > { %1300 = vmatmul.mubr.bf16.gmra.mrb[4].mxu0 %v2377_v39  ;;  %v2473_v39 = vld [vmem:[%s2798_s24 + $0x220] ss:$16 sps:$4 sm:$0xff]  }
  0x5a   : > { %1589 = vmatmul.mubr.bf16.gmra.mrb[4].mxu1 %v2378_v40  ;;  %1307 = vmatprep.mubr.bf16.mxu0 %v2379_v41  ;;  %v2474_v40 = vld [vmem:[%s2798_s24 + $0x228] ss:$16 sps:$4 sm:$0xff]   ;;  %v2475_v41 = vld [vmem:[%s2798_s24 + $0x244] ss:$16 sps:$4 sm:$0xff]  }
  0x5b   : > { %1596 = vmatprep.mubr.bf16.mxu1 %v2381_v42  ;;  %v2477_v42 = vld [vmem:[%s2798_s24 + $0x24c] ss:$16 sps:$4 sm:$0xff]  }
  0x61   : > { %1308 = vmatmul.mubr.bf16.gmra.mrb[8].mxu0 %v2383_v43  ;;  %v2479_v43 = vld [vmem:[%s2798_s24 + $0x240] ss:$16 sps:$4 sm:$0xff]  }
  0x62   : > { %1597 = vmatmul.mubr.bf16.gmra.mrb[8].mxu1 %v2384_v44  ;;  %1315 = vmatprep.mubr.bf16.mxu0 %v2385_v45  ;;  %v2480_v44 = vld [vmem:[%s2798_s24 + $0x248] ss:$16 sps:$4 sm:$0xff]   ;;  %v2481_v45 = vld [vmem:[%s2798_s24 + $0x264] ss:$16 sps:$4 sm:$0xff]  }
  0x63   : > { %1604 = vmatprep.mubr.bf16.mxu1 %v2387_v46  ;;  %v2483_v46 = vld [vmem:[%s2798_s24 + $0x26c] ss:$16 sps:$4 sm:$0xff]  }
  0x69   : > { %1316 = vmatmul.mubr.bf16.gmra.mrb[12].mxu0 %v2389_v47  ;;  %v2485_v47 = vld [vmem:[%s2798_s24 + $0x260] ss:$16 sps:$4 sm:$0xff]  }
  0x6a   : > { %1605 = vmatmul.mubr.bf16.gmra.mrb[12].mxu1 %v2390_v48  ;;  %1323 = vmatprep.mubr.bf16.mxu0 %v2391_v49  ;;  %v2486_v48 = vld [vmem:[%s2798_s24 + $0x268] ss:$16 sps:$4 sm:$0xff]   ;;  %v2487_v49 = vld [vmem:[%s2798_s24 + $0x284] ss:$16 sps:$4 sm:$0xff]  }
  0x6b   : > { %1612 = vmatprep.mubr.bf16.mxu1 %v2393_v50  ;;  %v2489_v50 = vld [vmem:[%s2798_s24 + $0x28c] ss:$16 sps:$4 sm:$0xff]  }
  0x71   : > { %1324 = vmatmul.mubr.bf16.gmra.mrb[16].mxu0 %v2395_v51  ;;  %v2491_v51 = vld [vmem:[%s2798_s24 + $0x280] ss:$16 sps:$4 sm:$0xff]  }
  0x72   : > { %1613 = vmatmul.mubr.bf16.gmra.mrb[16].mxu1 %v2396_v52  ;;  %1331 = vmatprep.mubr.bf16.mxu0 %v2397_v53  ;;  %v2492_v52 = vld [vmem:[%s2798_s24 + $0x288] ss:$16 sps:$4 sm:$0xff]   ;;  %v2493_v53 = vld [vmem:[%s2798_s24 + $0x2a4] ss:$16 sps:$4 sm:$0xff]  }
  0x73   : > { %1620 = vmatprep.mubr.bf16.mxu1 %v2399_v54  ;;  %v2495_v54 = vld [vmem:[%s2798_s24 + $0x2ac] ss:$16 sps:$4 sm:$0xff]  }
  0x79   : > { %1332 = vmatmul.mubr.bf16.gmra.mrb[20].mxu0 %v2401_v55  ;;  %v2497_v55 = vld [vmem:[%s2798_s24 + $0x2a0] ss:$16 sps:$4 sm:$0xff]  }
  0x7a   : > { %1621 = vmatmul.mubr.bf16.gmra.mrb[20].mxu1 %v2402_v56  ;;  %1339 = vmatprep.mubr.bf16.mxu0 %v2403_v57  ;;  %v2498_v56 = vld [vmem:[%s2798_s24 + $0x2a8] ss:$16 sps:$4 sm:$0xff]   ;;  %v2499_v57 = vld [vmem:[%s2798_s24 + $0x2c4] ss:$16 sps:$4 sm:$0xff]  }
  0x7b   : > { %1628 = vmatprep.mubr.bf16.mxu1 %v2405_v58  ;;  %v2501_v58 = vld [vmem:[%s2798_s24 + $0x2cc] ss:$16 sps:$4 sm:$0xff]  }
  0x81   : > { %1340 = vmatmul.mubr.bf16.gmra.mrb[24].mxu0 %v2407_v59  ;;  %v2503_v59 = vld [vmem:[%s2798_s24 + $0x2c0] ss:$16 sps:$4 sm:$0xff]  }
  0x82   : > { %1629 = vmatmul.mubr.bf16.gmra.mrb[24].mxu1 %v2408_v60  ;;  %1347 = vmatprep.mubr.bf16.mxu0 %v2409_v61  ;;  %v2504_v60 = vld [vmem:[%s2798_s24 + $0x2c8] ss:$16 sps:$4 sm:$0xff]   ;;  %v2505_v61 = vld [vmem:[%s2798_s24 + $0x2e4] ss:$16 sps:$4 sm:$0xff]  }
  0x83   : > { %1636 = vmatprep.mubr.bf16.mxu1 %v2411_v62  ;;  %v2507_v62 = vld [vmem:[%s2798_s24 + $0x2ec] ss:$16 sps:$4 sm:$0xff]  }
  0x89   : > { %1348 = vmatmul.mubr.bf16.gmra.mrb[28].mxu0 %v2413_v63  ;;  %v2509_v63 = vld [vmem:[%s2798_s24 + $0x2e0] ss:$16 sps:$4 sm:$0xff]  }
  0x8a   : > { %1637 = vmatmul.mubr.bf16.gmra.mrb[28].mxu1 %v2414_v0  ;;  %1355 = vmatprep.mubr.bf16.mxu0 %v2415_v1  ;;  %v2510_v0 = vld [vmem:[%s2798_s24 + $0x2e8] ss:$16 sps:$4 sm:$0xff]   ;;  %v2511_v1 = vld [vmem:[%s2798_s24 + $0x304] ss:$16 sps:$4 sm:$0xff]  }
  0x8b   : > { %1644 = vmatprep.mubr.bf16.mxu1 %v2417_v2  ;;  %v2513_v2 = vld [vmem:[%s2798_s24 + $0x30c] ss:$16 sps:$4 sm:$0xff]  }
  0x91   : > { %1356 = vmatmul.mubr.bf16.gmra.mrb[32].mxu0 %v2419_v3  ;;  %v2515_v3 = vld [vmem:[%s2798_s24 + $0x300] ss:$16 sps:$4 sm:$0xff]  }
  0x92   : > { %1645 = vmatmul.mubr.bf16.gmra.mrb[32].mxu1 %v2420_v4  ;;  %1363 = vmatprep.mubr.bf16.mxu0 %v2421_v5  ;;  %v2516_v4 = vld [vmem:[%s2798_s24 + $0x308] ss:$16 sps:$4 sm:$0xff]   ;;  %v2517_v5 = vld [vmem:[%s2798_s24 + $0x324] ss:$16 sps:$4 sm:$0xff]  }
  0x93   : > { %1652 = vmatprep.mubr.bf16.mxu1 %v2423_v6  ;;  %v2519_v6 = vld [vmem:[%s2798_s24 + $0x32c] ss:$16 sps:$4 sm:$0xff]  }
  0x99   : > { %1364 = vmatmul.mubr.bf16.gmra.mrb[36].mxu0 %v2425_v7  ;;  %v2521_v7 = vld [vmem:[%s2798_s24 + $0x320] ss:$16 sps:$4 sm:$0xff]  }
  0x9a   : > { %1653 = vmatmul.mubr.bf16.gmra.mrb[36].mxu1 %v2426_v8  ;;  %1371 = vmatprep.mubr.bf16.mxu0 %v2427_v9  ;;  %v2522_v8 = vld [vmem:[%s2798_s24 + $0x328] ss:$16 sps:$4 sm:$0xff]   ;;  %v2523_v9 = vld [vmem:[%s2798_s24 + $0x344] ss:$16 sps:$4 sm:$0xff]  }
  0x9b   : > { %1660 = vmatprep.mubr.bf16.mxu1 %v2429_v10  ;;  %v2525_v10 = vld [vmem:[%s2798_s24 + $0x34c] ss:$16 sps:$4 sm:$0xff]  }
  0xa1   : > { %1372 = vmatmul.mubr.bf16.gmra.mrb[40].mxu0 %v2431_v11  ;;  %v2527_v11 = vld [vmem:[%s2798_s24 + $0x340] ss:$16 sps:$4 sm:$0xff]  }
  0xa2   : > { %1661 = vmatmul.mubr.bf16.gmra.mrb[40].mxu1 %v2432_v12  ;;  %1379 = vmatprep.mubr.bf16.mxu0 %v2433_v13  ;;  %v2528_v12 = vld [vmem:[%s2798_s24 + $0x348] ss:$16 sps:$4 sm:$0xff]   ;;  %v2529_v13 = vld [vmem:[%s2798_s24 + $0x364] ss:$16 sps:$4 sm:$0xff]  }
  0xa3   : > { %1668 = vmatprep.mubr.bf16.mxu1 %v2435_v14  ;;  %v2531_v14 = vld [vmem:[%s2798_s24 + $0x36c] ss:$16 sps:$4 sm:$0xff]  }
  0xa9   : > { %1380 = vmatmul.mubr.bf16.gmra.mrb[44].mxu0 %v2437_v15 }
  0xaa   : > { %1669 = vmatmul.mubr.bf16.gmra.mrb[44].mxu1 %v2438_v16  ;;  %1387 = vmatprep.mubr.bf16.mxu0 %v2439_v17  ;;  %v2941_v17 = vstv %s1837_s25 }
  0xab   : > { %1676 = vmatprep.mubr.bf16.mxu1 %v2441_v18 }
  0xb1   : > { %1388 = vmatmul.mubr.bf16.gmra.mrb[48].mxu0 %v2443_v19  ;;  %v2533_v19 = vld [vmem:[%s2798_s24 + $0x360] ss:$16 sps:$4 sm:$0xff]  }
  0xb2   : > { %1677 = vmatmul.mubr.bf16.gmra.mrb[48].mxu1 %v2444_v20  ;;  %1395 = vmatprep.mubr.bf16.mxu0 %v2445_v21 }
  0xb3   : > { %1684 = vmatprep.mubr.bf16.mxu1 %v2447_v22 }
  0xb9   : > { %1396 = vmatmul.mubr.bf16.gmra.mrb[52].mxu0 %v2449_v23  ;;  %v2534_v23 = vld [vmem:[%s2798_s24 + $0x368] ss:$16 sps:$4 sm:$0xff]  }
  0xba   : > { %1685 = vmatmul.mubr.bf16.gmra.mrb[52].mxu1 %v2450_v24  ;;  %1403 = vmatprep.mubr.bf16.mxu0 %v2451_v25  ;;  %v2535_v24 = vld [vmem:[%s2798_s24 + $0x384] ss:$16 sps:$4 sm:$0xff]  }
  0xbb   : > { %1692 = vmatprep.mubr.bf16.mxu1 %v2453_v26 }
  0xc1   : > { %1404 = vmatmul.mubr.bf16.gmra.mrb[56].mxu0 %v2455_v27  ;;  %v2537_v27 = vld [vmem:[%s2798_s24 + $0x38c] ss:$16 sps:$4 sm:$0xff]  }
  0xc2   : > { %1693 = vmatmul.mubr.bf16.gmra.mrb[56].mxu1 %v2456_v28  ;;  %1411 = vmatprep.mubr.bf16.mxu0 %v2457_v29 }
  0xc3   : > { %1700 = vmatprep.mubr.bf16.mxu1 %v2459_v30 }
  0xc9   : > { %1412 = vmatmul.mubr.bf16.gmra.mrb[60].mxu0 %v2461_v31 }
  0xca   : > { %1701 = vmatmul.mubr.bf16.gmra.mrb[60].mxu1 %v2462_v32  ;;  %1419 = vmatprep.mubr.bf16.mxu0 %v2463_v33 }
  0xcb   : > { %1708 = vmatprep.mubr.bf16.mxu1 %v2465_v34 }
  0xd1   : > { %1420 = vmatmul.mubr.bf16.gmra.mrb[64].mxu0 %v2467_v35  ;;  %v2539_v35 = vld [vmem:[%s2798_s24 + $0x380] ss:$16 sps:$4 sm:$0xff]  }
  0xd2   : > { %1709 = vmatmul.mubr.bf16.gmra.mrb[64].mxu1 %v2468_v36  ;;  %1427 = vmatprep.mubr.bf16.mxu0 %v2469_v37 }
  0xd3   : > { %1716 = vmatprep.mubr.bf16.mxu1 %v2471_v38 }
  0xd9   : > { %1428 = vmatmul.mubr.bf16.gmra.mrb[68].mxu0 %v2473_v39  ;;  %v2540_v39 = vld [vmem:[%s2798_s24 + $0x388] ss:$16 sps:$4 sm:$0xff]  }
  0xda   : > { %1717 = vmatmul.mubr.bf16.gmra.mrb[68].mxu1 %v2474_v40  ;;  %1435 = vmatprep.mubr.bf16.mxu0 %v2475_v41  ;;  %v2541_v40 = vld [vmem:[%s2798_s24 + $0x3a4] ss:$16 sps:$4 sm:$0xff]  }
  0xdb   : > { %1724 = vmatprep.mubr.bf16.mxu1 %v2477_v42 }
  0xe1   : > { %1436 = vmatmul.mubr.bf16.gmra.mrb[72].mxu0 %v2479_v43  ;;  %v2543_v43 = vld [vmem:[%s2798_s24 + $0x3ac] ss:$16 sps:$4 sm:$0xff]  }
  0xe2   : > { %1725 = vmatmul.mubr.bf16.gmra.mrb[72].mxu1 %v2480_v44  ;;  %1443 = vmatprep.mubr.bf16.mxu0 %v2481_v45 }
  0xe3   : > { %1732 = vmatprep.mubr.bf16.mxu1 %v2483_v46 }
  0xe9   : > { %1444 = vmatmul.mubr.bf16.gmra.mrb[76].mxu0 %v2485_v47 }
  0xea   : > { %1733 = vmatmul.mubr.bf16.gmra.mrb[76].mxu1 %v2486_v48  ;;  %1451 = vmatprep.mubr.bf16.mxu0 %v2487_v49 }
  0xeb   : > { %1740 = vmatprep.mubr.bf16.mxu1 %v2489_v50 }
  0xf1   : > { %1452 = vmatmul.mubr.bf16.gmra.mrb[80].mxu0 %v2491_v51 }
  0xf2   : > { %1741 = vmatmul.mubr.bf16.gmra.mrb[80].mxu1 %v2492_v52  ;;  %1459 = vmatprep.mubr.bf16.mxu0 %v2493_v53  ;;  %v2545_v52 = vld [vmem:[%s2798_s24 + $0x3a0] ss:$16 sps:$4 sm:$0xff]  }
  0xf3   : > { %1748 = vmatprep.mubr.bf16.mxu1 %v2495_v54 }
  0xf9   : > { %1460 = vmatmul.mubr.bf16.gmra.mrb[84].mxu0 %v2497_v55 }
  0xfa   : > { %1749 = vmatmul.mubr.bf16.gmra.mrb[84].mxu1 %v2498_v56  ;;  %1467 = vmatprep.mubr.bf16.mxu0 %v2499_v57  ;;  %v2546_v57 = vld [vmem:[%s2798_s24 + $0x3a8] ss:$16 sps:$4 sm:$0xff]  }
  0xfb   : > { %1756 = vmatprep.mubr.bf16.mxu1 %v2501_v58  ;;  %v2547_v58 = vld [vmem:[%s2798_s24 + $0x3c4] ss:$16 sps:$4 sm:$0xff]  }
 0x101   : > { %1468 = vmatmul.mubr.bf16.gmra.mrb[88].mxu0 %v2503_v59 }
 0x102   : > { %1757 = vmatmul.mubr.bf16.gmra.mrb[88].mxu1 %v2504_v60  ;;  %1475 = vmatprep.mubr.bf16.mxu0 %v2505_v61  ;;  %v2549_v61 = vld [vmem:[%s2798_s24 + $0x3cc] ss:$16 sps:$4 sm:$0xff]  }
 0x103   : > { %1764 = vmatprep.mubr.bf16.mxu1 %v2507_v62 }
 0x109   : > { %1476 = vmatmul.mubr.bf16.gmra.mrb[92].mxu0 %v2509_v63 }
 0x10a   : > { %1765 = vmatmul.mubr.bf16.gmra.mrb[92].mxu1 %v2510_v0  ;;  %1483 = vmatprep.mubr.bf16.mxu0 %v2511_v1 }
 0x10b   : > { %1772 = vmatprep.mubr.bf16.mxu1 %v2513_v2 }
 0x111   : > { %1484 = vmatmul.mubr.bf16.gmra.mrb[96].mxu0 %v2515_v3 }
 0x112   : > { %1773 = vmatmul.mubr.bf16.gmra.mrb[96].mxu1 %v2516_v4  ;;  %1491 = vmatprep.mubr.bf16.mxu0 %v2517_v5 }
 0x113   : > { %1780 = vmatprep.mubr.bf16.mxu1 %v2519_v6  ;;  %v2551_v6 = vld [vmem:[%s2798_s24 + $0x3c0] ss:$16 sps:$4 sm:$0xff]  }
 0x119   : > { %1492 = vmatmul.mubr.bf16.gmra.mrb[100].mxu0 %v2521_v7 }
 0x11a   : > { %1781 = vmatmul.mubr.bf16.gmra.mrb[100].mxu1 %v2522_v8  ;;  %1499 = vmatprep.mubr.bf16.mxu0 %v2523_v9 }
 0x11b   : > { %1788 = vmatprep.mubr.bf16.mxu1 %v2525_v10 }
 0x121   : > { %1500 = vmatmul.mubr.bf16.gmra.mrb[104].mxu0 %v2527_v11  ;;  %v2552_v11 = vld [vmem:[%s2798_s24 + $0x3c8] ss:$16 sps:$4 sm:$0xff]  }
 0x122   : > { %1789 = vmatmul.mubr.bf16.gmra.mrb[104].mxu1 %v2528_v12  ;;  %1507 = vmatprep.mubr.bf16.mxu0 %v2529_v13  ;;  %v2553_v12 = vld [vmem:[%s2798_s24 + $0x3e4] ss:$16 sps:$4 sm:$0xff]  }
 0x123   : > { %1796 = vmatprep.mubr.bf16.mxu1 %v2531_v14 }
 0x124   : > { %v1293_v15 = vpop.f32.mrb[0].mxu0 }
 0x125   : > { %v1582_v16 = vpop.f32.mrb[0].mxu1  ;;  %v1295_v18 = vpop.f32.mrb[1].mxu0 }
 0x126   : > { %v1583_v20 = vadd.f32 %v1582_v16, %v1293_v15  ;;  %v1584_v21 = vpop.f32.mrb[1].mxu1  ;;  %v1296_v22 = vpop.f32.mrb[2].mxu0  ;;  %v2555_v15 = vld [vmem:[%s2798_s24 + $0x3ec] ss:$16 sps:$4 sm:$0xff]  }
 0x127   : > { %v1585_v25 = vpop.f32.mrb[2].mxu1  ;;  %v1298_v26 = vpop.f32.mrb[3].mxu0 }
 0x128   : > { %v1839_v28 = vadd.f32 %v2941_v17, %v1583_v20  ;;  %v1586_v29 = vadd.f32 %v1585_v25, %v1296_v22  ;;  %v1587_v30 = vpop.f32.mrb[3].mxu1  ;;  %v2557_v25 = vld [vmem:[%s2798_s24 + $0x3e0] ss:$16 sps:$4 sm:$0xff]  }
 0x129   : > { %1508 = vmatmul.mubr.bf16.gmra.mrb[108].mxu0 %v2533_v19  ;;  %v2558_v30 = vld [vmem:[%s2798_s24 + $0x3e8] ss:$16 sps:$4 sm:$0xff]  }
 0x12a   : > { %2559 = vtanh.f32 %v1839_v28  ;;  %v1840_v31 = vadd.f32 %v2941_v17, %v1586_v29  ;;  %1797 = vmatmul.mubr.bf16.gmra.mrb[108].mxu1 %v2534_v23  ;;  %1515 = vmatprep.mubr.bf16.mxu0 %v2535_v24 }
 0x12b   : > { %1804 = vmatprep.mubr.bf16.mxu1 %v2537_v27 }
 0x12c   : > { %2561 = vtanh.f32 %v1840_v31  ;;  %v1301_v32 = vpop.f32.mrb[4].mxu0 }
 0x12d   : > { %v1590_v33 = vpop.f32.mrb[4].mxu1  ;;  %v1303_v34 = vpop.f32.mrb[5].mxu0 }
 0x12e   : > { %v1591_v36 = vadd.f32 %v1590_v33, %v1301_v32  ;;  %v1592_v37 = vpop.f32.mrb[5].mxu1  ;;  %v1304_v38 = vpop.f32.mrb[6].mxu0 }
 0x12f   : > { %v1593_v41 = vpop.f32.mrb[6].mxu1  ;;  %v1306_v42 = vpop.f32.mrb[7].mxu0 }
 0x130   : > { %v1841_v44 = vadd.f32 %v2941_v17, %v1591_v36  ;;  %v1594_v45 = vadd.f32 %v1593_v41, %v1304_v38  ;;  %v1595_v46 = vpop.f32.mrb[7].mxu1 }
 0x131   : > { %1516 = vmatmul.mubr.bf16.gmra.mrb[112].mxu0 %v2539_v35 }
 0x132   : > { %2563 = vtanh.f32 %v1841_v44  ;;  %v1842_v47 = vadd.f32 %v2941_v17, %v1594_v45  ;;  %1805 = vmatmul.mubr.bf16.gmra.mrb[112].mxu1 %v2540_v39  ;;  %1523 = vmatprep.mubr.bf16.mxu0 %v2541_v40 }
 0x133   : > { %1812 = vmatprep.mubr.bf16.mxu1 %v2543_v43 }
 0x134   : > { %v2560_v48 = vpop.eup %2559  ;;  %2565 = vtanh.f32 %v1842_v47  ;;  %v1309_v49 = vpop.f32.mrb[8].mxu0 }
 0x135   : > { %1968 = vst.msk [vmem:[%s2958_s29] sm:$0xff] %vm1967_vm0, %v2560_v48  ;;  %v1598_v50 = vpop.f32.mrb[8].mxu1  ;;  %v1311_v51 = vpop.f32.mrb[9].mxu0 }
 0x136   : > { %v2562_v53 = vpop.eup %2561  ;;  %v1599_v54 = vadd.f32 %v1598_v50, %v1309_v49  ;;  %v1600_v55 = vpop.f32.mrb[9].mxu1 }
 0x137   : > { %v1312_v56 = vpop.f32.mrb[10].mxu0  ;;  %1969 = vst.msk [vmem:[%s2958_s29 + $0x8] sm:$0xff] %vm1967_vm0, %v2562_v53  ;;  %v1601_v59 = vpop.f32.mrb[10].mxu1 }
 0x138   : > { %v1314_v60 = vpop.f32.mrb[11].mxu0  ;;  %v1843_v62 = vadd.f32 %v2941_v17, %v1599_v54  ;;  %v1602_v63 = vadd.f32 %v1601_v59, %v1312_v56  ;;  %v1603_v0 = vpop.f32.mrb[11].mxu1 }
 0x139   : > { %1524 = vmatmul.mubr.bf16.gmra.mrb[116].mxu0 %v2545_v52 }
 0x13a   : > { %2567 = vtanh.f32 %v1843_v62  ;;  %v1844_v1 = vadd.f32 %v2941_v17, %v1602_v63  ;;  %1813 = vmatmul.mubr.bf16.gmra.mrb[116].mxu1 %v2546_v57  ;;  %1531 = vmatprep.mubr.bf16.mxu0 %v2547_v58 }
 0x13b   : > { %1820 = vmatprep.mubr.bf16.mxu1 %v2549_v61 }
 0x13c   : > { %v2564_v2 = vpop.eup %2563  ;;  %2569 = vtanh.f32 %v1844_v1  ;;  %v1317_v3 = vpop.f32.mrb[12].mxu0 }
 0x13d   : > { %1970 = vst.msk [vmem:[%s2958_s29 + $0x10] sm:$0xff] %vm1967_vm0, %v2564_v2  ;;  %v1606_v4 = vpop.f32.mrb[12].mxu1  ;;  %v1319_v5 = vpop.f32.mrb[13].mxu0 }
 0x13e   : > { %v2566_v7 = vpop.eup %2565  ;;  %v1607_v8 = vadd.f32 %v1606_v4, %v1317_v3  ;;  %v1608_v9 = vpop.f32.mrb[13].mxu1 }
 0x13f   : > { %v1320_v10 = vpop.f32.mrb[14].mxu0  ;;  %1971 = vst.msk [vmem:[%s2958_s29 + $0x18] sm:$0xff] %vm1967_vm0, %v2566_v7  ;;  %v1609_v13 = vpop.f32.mrb[14].mxu1 }
 0x140   : > { %v1322_v14 = vpop.f32.mrb[15].mxu0  ;;  %v1845_v16 = vadd.f32 %v2941_v17, %v1607_v8  ;;  %v1610_v18 = vadd.f32 %v1609_v13, %v1320_v10  ;;  %v1611_v19 = vpop.f32.mrb[15].mxu1 }
 0x141   : > { %1532 = vmatmul.mubr.bf16.gmra.mrb[120].mxu0 %v2551_v6 }
 0x142   : > { %2571 = vtanh.f32 %v1845_v16  ;;  %v1846_v20 = vadd.f32 %v2941_v17, %v1610_v18  ;;  %1821 = vmatmul.mubr.bf16.gmra.mrb[120].mxu1 %v2552_v11  ;;  %1539 = vmatprep.mubr.bf16.mxu0 %v2553_v12 }
 0x143   : > { %1828 = vmatprep.mubr.bf16.mxu1 %v2555_v15 }
 0x144   : > { %v2568_v21 = vpop.eup %2567  ;;  %2573 = vtanh.f32 %v1846_v20  ;;  %v1325_v22 = vpop.f32.mrb[16].mxu0 }
 0x145   : > { %1972 = vst.msk [vmem:[%s2958_s29 + $0x20] sm:$0xff] %vm1967_vm0, %v2568_v21  ;;  %v1614_v23 = vpop.f32.mrb[16].mxu1  ;;  %v1327_v24 = vpop.f32.mrb[17].mxu0 }
 0x146   : > { %v2570_v26 = vpop.eup %2569  ;;  %v1615_v27 = vadd.f32 %v1614_v23, %v1325_v22  ;;  %v1616_v28 = vpop.f32.mrb[17].mxu1 }
 0x147   : > { %v1328_v29 = vpop.f32.mrb[18].mxu0  ;;  %1973 = vst.msk [vmem:[%s2958_s29 + $0x28] sm:$0xff] %vm1967_vm0, %v2570_v26  ;;  %v1617_v31 = vpop.f32.mrb[18].mxu1 }
 0x148   : > { %v1330_v32 = vpop.f32.mrb[19].mxu0  ;;  %v1847_v33 = vadd.f32 %v2941_v17, %v1615_v27  ;;  %v1618_v34 = vadd.f32 %v1617_v31, %v1328_v29  ;;  %v1619_v35 = vpop.f32.mrb[19].mxu1 }
 0x149   : > { %1540 = vmatmul.mubr.bf16.gmra.mrb[124].mxu0 %v2557_v25 }
 0x14a   : > { %2575 = vtanh.f32 %v1847_v33  ;;  %v1848_v36 = vadd.f32 %v2941_v17, %v1618_v34  ;;  %1829 = vmatmul.mubr.bf16.gmra.mrb[124].mxu1 %v2558_v30 }
 0x14c   : > { %v2572_v37 = vpop.eup %2571  ;;  %2577 = vtanh.f32 %v1848_v36  ;;  %v1333_v38 = vpop.f32.mrb[20].mxu0 }
 0x14d   : > { %1974 = vst.msk [vmem:[%s2958_s29 + $0x30] sm:$0xff] %vm1967_vm0, %v2572_v37  ;;  %v1622_v39 = vpop.f32.mrb[20].mxu1  ;;  %v1335_v40 = vpop.f32.mrb[21].mxu0 }
 0x14e   : > { %v2574_v41 = vpop.eup %2573  ;;  %v1623_v42 = vadd.f32 %v1622_v39, %v1333_v38  ;;  %v1624_v43 = vpop.f32.mrb[21].mxu1 }
 0x14f   : > { %v1336_v44 = vpop.f32.mrb[22].mxu0  ;;  %1975 = vst.msk [vmem:[%s2958_s29 + $0x38] sm:$0xff] %vm1967_vm0, %v2574_v41  ;;  %v1625_v45 = vpop.f32.mrb[22].mxu1 }
 0x150   : > { %v1338_v46 = vpop.f32.mrb[23].mxu0  ;;  %v1849_v47 = vadd.f32 %v2941_v17, %v1623_v42  ;;  %v1626_v48 = vadd.f32 %v1625_v45, %v1336_v44  ;;  %v1627_v49 = vpop.f32.mrb[23].mxu1 }
 0x152   : > { %2579 = vtanh.f32 %v1849_v47  ;;  %v1850_v50 = vadd.f32 %v2941_v17, %v1626_v48 }
 0x154   : > { %v2576_v51 = vpop.eup %2575  ;;  %2581 = vtanh.f32 %v1850_v50  ;;  %v1341_v52 = vpop.f32.mrb[24].mxu0 }
 0x155   : > { %1976 = vst.msk [vmem:[%s2958_s29 + $0x40] sm:$0xff] %vm1967_vm0, %v2576_v51  ;;  %v1630_v53 = vpop.f32.mrb[24].mxu1  ;;  %v1343_v54 = vpop.f32.mrb[25].mxu0 }
 0x156   : > { %v2578_v55 = vpop.eup %2577  ;;  %v1631_v56 = vadd.f32 %v1630_v53, %v1341_v52  ;;  %v1632_v57 = vpop.f32.mrb[25].mxu1 }
 0x157   : > { %v1344_v58 = vpop.f32.mrb[26].mxu0  ;;  %1977 = vst.msk [vmem:[%s2958_s29 + $0x48] sm:$0xff] %vm1967_vm0, %v2578_v55  ;;  %v1633_v59 = vpop.f32.mrb[26].mxu1 }
 0x158   : > { %v1346_v60 = vpop.f32.mrb[27].mxu0  ;;  %v1851_v61 = vadd.f32 %v2941_v17, %v1631_v56  ;;  %v1634_v62 = vadd.f32 %v1633_v59, %v1344_v58  ;;  %v1635_v63 = vpop.f32.mrb[27].mxu1 }
 0x15a   : > { %2583 = vtanh.f32 %v1851_v61  ;;  %v1852_v0 = vadd.f32 %v2941_v17, %v1634_v62 }
 0x15c   : > { %v2580_v1 = vpop.eup %2579  ;;  %2585 = vtanh.f32 %v1852_v0  ;;  %v1349_v2 = vpop.f32.mrb[28].mxu0 }
 0x15d   : > { %1978 = vst.msk [vmem:[%s2958_s29 + $0x50] sm:$0xff] %vm1967_vm0, %v2580_v1  ;;  %v1638_v3 = vpop.f32.mrb[28].mxu1  ;;  %v1351_v4 = vpop.f32.mrb[29].mxu0 }
 0x15e   : > { %v2582_v5 = vpop.eup %2581  ;;  %v1639_v6 = vadd.f32 %v1638_v3, %v1349_v2  ;;  %v1640_v7 = vpop.f32.mrb[29].mxu1 }
 0x15f   : > { %v1352_v8 = vpop.f32.mrb[30].mxu0  ;;  %1979 = vst.msk [vmem:[%s2958_s29 + $0x58] sm:$0xff] %vm1967_vm0, %v2582_v5  ;;  %v1641_v9 = vpop.f32.mrb[30].mxu1 }
 0x160   : > { %v1354_v10 = vpop.f32.mrb[31].mxu0  ;;  %v1853_v11 = vadd.f32 %v2941_v17, %v1639_v6  ;;  %v1642_v12 = vadd.f32 %v1641_v9, %v1352_v8  ;;  %v1643_v13 = vpop.f32.mrb[31].mxu1 }
 0x162   : > { %2587 = vtanh.f32 %v1853_v11  ;;  %v1854_v14 = vadd.f32 %v2941_v17, %v1642_v12 }
 0x164   : > { %v2584_v15 = vpop.eup %2583  ;;  %2589 = vtanh.f32 %v1854_v14  ;;  %v1357_v16 = vpop.f32.mrb[32].mxu0 }
 0x165   : > { %1980 = vst.msk [vmem:[%s2958_s29 + $0x60] sm:$0xff] %vm1967_vm0, %v2584_v15  ;;  %v1646_v18 = vpop.f32.mrb[32].mxu1  ;;  %v1359_v19 = vpop.f32.mrb[33].mxu0 }
 0x166   : > { %v2586_v20 = vpop.eup %2585  ;;  %v1647_v21 = vadd.f32 %v1646_v18, %v1357_v16  ;;  %v1648_v22 = vpop.f32.mrb[33].mxu1 }
 0x167   : > { %v1360_v23 = vpop.f32.mrb[34].mxu0  ;;  %1981 = vst.msk [vmem:[%s2958_s29 + $0x68] sm:$0xff] %vm1967_vm0, %v2586_v20  ;;  %v1649_v24 = vpop.f32.mrb[34].mxu1 }
 0x168   : > { %v1362_v25 = vpop.f32.mrb[35].mxu0  ;;  %v1855_v26 = vadd.f32 %v2941_v17, %v1647_v21  ;;  %v1650_v27 = vadd.f32 %v1649_v24, %v1360_v23  ;;  %v1651_v28 = vpop.f32.mrb[35].mxu1 }
 0x16a   : > { %2591 = vtanh.f32 %v1855_v26  ;;  %v1856_v29 = vadd.f32 %v2941_v17, %v1650_v27 }
 0x16c   : > { %v2588_v30 = vpop.eup %2587  ;;  %2593 = vtanh.f32 %v1856_v29  ;;  %v1365_v31 = vpop.f32.mrb[36].mxu0 }
 0x16d   : > { %1982 = vst.msk [vmem:[%s2958_s29 + $0x70] sm:$0xff] %vm1967_vm0, %v2588_v30  ;;  %v1654_v32 = vpop.f32.mrb[36].mxu1  ;;  %v1367_v33 = vpop.f32.mrb[37].mxu0 }
 0x16e   : > { %v2590_v34 = vpop.eup %2589  ;;  %v1655_v35 = vadd.f32 %v1654_v32, %v1365_v31  ;;  %v1656_v36 = vpop.f32.mrb[37].mxu1 }
 0x16f   : > { %v1368_v37 = vpop.f32.mrb[38].mxu0  ;;  %1983 = vst.msk [vmem:[%s2958_s29 + $0x78] sm:$0xff] %vm1967_vm0, %v2590_v34  ;;  %v1657_v38 = vpop.f32.mrb[38].mxu1 }
 0x170   : > { %v1370_v39 = vpop.f32.mrb[39].mxu0  ;;  %v1857_v40 = vadd.f32 %v2941_v17, %v1655_v35  ;;  %v1658_v41 = vadd.f32 %v1657_v38, %v1368_v37  ;;  %v1659_v42 = vpop.f32.mrb[39].mxu1 }
 0x172   : > { %2595 = vtanh.f32 %v1857_v40  ;;  %v1858_v43 = vadd.f32 %v2941_v17, %v1658_v41 }
 0x174   : > { %v2592_v44 = vpop.eup %2591  ;;  %2597 = vtanh.f32 %v1858_v43  ;;  %v1373_v45 = vpop.f32.mrb[40].mxu0 }
 0x175   : > { %1984 = vst.msk [vmem:[%s2958_s29 + $0x80] sm:$0xff] %vm1967_vm0, %v2592_v44  ;;  %v1662_v46 = vpop.f32.mrb[40].mxu1  ;;  %v1375_v47 = vpop.f32.mrb[41].mxu0 }
 0x176   : > { %v2594_v48 = vpop.eup %2593  ;;  %v1663_v49 = vadd.f32 %v1662_v46, %v1373_v45  ;;  %v1664_v50 = vpop.f32.mrb[41].mxu1 }
 0x177   : > { %v1376_v51 = vpop.f32.mrb[42].mxu0  ;;  %1985 = vst.msk [vmem:[%s2958_s29 + $0x88] sm:$0xff] %vm1967_vm0, %v2594_v48  ;;  %v1665_v52 = vpop.f32.mrb[42].mxu1 }
 0x178   : > { %v1378_v53 = vpop.f32.mrb[43].mxu0  ;;  %v1859_v54 = vadd.f32 %v2941_v17, %v1663_v49  ;;  %v1666_v55 = vadd.f32 %v1665_v52, %v1376_v51  ;;  %v1667_v56 = vpop.f32.mrb[43].mxu1 }
 0x17a   : > { %2599 = vtanh.f32 %v1859_v54  ;;  %v1860_v57 = vadd.f32 %v2941_v17, %v1666_v55 }
 0x17c   : > { %v2596_v58 = vpop.eup %2595  ;;  %2601 = vtanh.f32 %v1860_v57  ;;  %v1381_v59 = vpop.f32.mrb[44].mxu0 }
 0x17d   : > { %1986 = vst.msk [vmem:[%s2958_s29 + $0x90] sm:$0xff] %vm1967_vm0, %v2596_v58  ;;  %v1670_v60 = vpop.f32.mrb[44].mxu1  ;;  %v1383_v61 = vpop.f32.mrb[45].mxu0 }
 0x17e   : > { %v2598_v62 = vpop.eup %2597  ;;  %v1671_v63 = vadd.f32 %v1670_v60, %v1381_v59  ;;  %v1672_v0 = vpop.f32.mrb[45].mxu1 }
 0x17f   : > { %v1384_v1 = vpop.f32.mrb[46].mxu0  ;;  %1987 = vst.msk [vmem:[%s2958_s29 + $0x98] sm:$0xff] %vm1967_vm0, %v2598_v62  ;;  %v1673_v2 = vpop.f32.mrb[46].mxu1 }
 0x180   : > { %v1386_v3 = vpop.f32.mrb[47].mxu0  ;;  %v1861_v4 = vadd.f32 %v2941_v17, %v1671_v63  ;;  %v1674_v5 = vadd.f32 %v1673_v2, %v1384_v1  ;;  %v1675_v6 = vpop.f32.mrb[47].mxu1 }
 0x182   : > { %2603 = vtanh.f32 %v1861_v4  ;;  %v1862_v7 = vadd.f32 %v2941_v17, %v1674_v5 }
 0x184   : > { %v2600_v8 = vpop.eup %2599  ;;  %2605 = vtanh.f32 %v1862_v7  ;;  %v1389_v9 = vpop.f32.mrb[48].mxu0 }
 0x185   : > { %1988 = vst.msk [vmem:[%s2958_s29 + $0xa0] sm:$0xff] %vm1967_vm0, %v2600_v8  ;;  %v1678_v10 = vpop.f32.mrb[48].mxu1  ;;  %v1391_v11 = vpop.f32.mrb[49].mxu0 }
 0x186   : > { %v2602_v12 = vpop.eup %2601  ;;  %v1679_v13 = vadd.f32 %v1678_v10, %v1389_v9  ;;  %v1680_v14 = vpop.f32.mrb[49].mxu1 }
 0x187   : > { %v1392_v15 = vpop.f32.mrb[50].mxu0  ;;  %1989 = vst.msk [vmem:[%s2958_s29 + $0xa8] sm:$0xff] %vm1967_vm0, %v2602_v12  ;;  %v1681_v16 = vpop.f32.mrb[50].mxu1 }
 0x188   : > { %v1394_v18 = vpop.f32.mrb[51].mxu0  ;;  %v1863_v19 = vadd.f32 %v2941_v17, %v1679_v13  ;;  %v1682_v20 = vadd.f32 %v1681_v16, %v1392_v15  ;;  %v1683_v21 = vpop.f32.mrb[51].mxu1 }
 0x18a   : > { %2607 = vtanh.f32 %v1863_v19  ;;  %v1864_v22 = vadd.f32 %v2941_v17, %v1682_v20 }
 0x18c   : > { %v2604_v23 = vpop.eup %2603  ;;  %2609 = vtanh.f32 %v1864_v22  ;;  %v1397_v24 = vpop.f32.mrb[52].mxu0 }
 0x18d   : > { %1990 = vst.msk [vmem:[%s2958_s29 + $0xb0] sm:$0xff] %vm1967_vm0, %v2604_v23  ;;  %v1686_v25 = vpop.f32.mrb[52].mxu1  ;;  %v1399_v26 = vpop.f32.mrb[53].mxu0 }
 0x18e   : > { %v2606_v27 = vpop.eup %2605  ;;  %v1687_v28 = vadd.f32 %v1686_v25, %v1397_v24  ;;  %v1688_v29 = vpop.f32.mrb[53].mxu1 }
 0x18f   : > { %v1400_v30 = vpop.f32.mrb[54].mxu0  ;;  %1991 = vst.msk [vmem:[%s2958_s29 + $0xb8] sm:$0xff] %vm1967_vm0, %v2606_v27  ;;  %v1689_v31 = vpop.f32.mrb[54].mxu1 }
 0x190   : > { %v1402_v32 = vpop.f32.mrb[55].mxu0  ;;  %v1865_v33 = vadd.f32 %v2941_v17, %v1687_v28  ;;  %v1690_v34 = vadd.f32 %v1689_v31, %v1400_v30  ;;  %v1691_v35 = vpop.f32.mrb[55].mxu1 }
 0x192   : > { %2611 = vtanh.f32 %v1865_v33  ;;  %v1866_v36 = vadd.f32 %v2941_v17, %v1690_v34 }
 0x194   : > { %v2608_v37 = vpop.eup %2607  ;;  %2613 = vtanh.f32 %v1866_v36  ;;  %v1405_v38 = vpop.f32.mrb[56].mxu0 }
 0x195   : > { %1992 = vst.msk [vmem:[%s2958_s29 + $0xc0] sm:$0xff] %vm1967_vm0, %v2608_v37  ;;  %v1694_v39 = vpop.f32.mrb[56].mxu1  ;;  %v1407_v40 = vpop.f32.mrb[57].mxu0 }
 0x196   : > { %v2610_v41 = vpop.eup %2609  ;;  %v1695_v42 = vadd.f32 %v1694_v39, %v1405_v38  ;;  %v1696_v43 = vpop.f32.mrb[57].mxu1 }
 0x197   : > { %v1408_v44 = vpop.f32.mrb[58].mxu0  ;;  %1993 = vst.msk [vmem:[%s2958_s29 + $0xc8] sm:$0xff] %vm1967_vm0, %v2610_v41  ;;  %v1697_v45 = vpop.f32.mrb[58].mxu1 }
 0x198   : > { %v1410_v46 = vpop.f32.mrb[59].mxu0  ;;  %v1867_v47 = vadd.f32 %v2941_v17, %v1695_v42  ;;  %v1698_v48 = vadd.f32 %v1697_v45, %v1408_v44  ;;  %v1699_v49 = vpop.f32.mrb[59].mxu1 }
 0x19a   : > { %2615 = vtanh.f32 %v1867_v47  ;;  %v1868_v50 = vadd.f32 %v2941_v17, %v1698_v48 }
 0x19c   : > { %v2612_v51 = vpop.eup %2611  ;;  %2617 = vtanh.f32 %v1868_v50  ;;  %v1413_v52 = vpop.f32.mrb[60].mxu0 }
 0x19d   : > { %1994 = vst.msk [vmem:[%s2958_s29 + $0xd0] sm:$0xff] %vm1967_vm0, %v2612_v51  ;;  %v1702_v53 = vpop.f32.mrb[60].mxu1  ;;  %v1415_v54 = vpop.f32.mrb[61].mxu0 }
 0x19e   : > { %v2614_v55 = vpop.eup %2613  ;;  %v1703_v56 = vadd.f32 %v1702_v53, %v1413_v52  ;;  %v1704_v57 = vpop.f32.mrb[61].mxu1 }
 0x19f   : > { %v1416_v58 = vpop.f32.mrb[62].mxu0  ;;  %1995 = vst.msk [vmem:[%s2958_s29 + $0xd8] sm:$0xff] %vm1967_vm0, %v2614_v55  ;;  %v1705_v59 = vpop.f32.mrb[62].mxu1 }
 0x1a0   : > { %v1418_v60 = vpop.f32.mrb[63].mxu0  ;;  %v1869_v61 = vadd.f32 %v2941_v17, %v1703_v56  ;;  %v1706_v62 = vadd.f32 %v1705_v59, %v1416_v58  ;;  %v1707_v63 = vpop.f32.mrb[63].mxu1 }
 0x1a2   : > { %2619 = vtanh.f32 %v1869_v61  ;;  %v1870_v0 = vadd.f32 %v2941_v17, %v1706_v62 }
 0x1a4   : > { %v2616_v1 = vpop.eup %2615  ;;  %2621 = vtanh.f32 %v1870_v0  ;;  %v1421_v2 = vpop.f32.mrb[64].mxu0 }
 0x1a5   : > { %1996 = vst.msk [vmem:[%s2958_s29 + $0xe0] sm:$0xff] %vm1967_vm0, %v2616_v1  ;;  %v1710_v3 = vpop.f32.mrb[64].mxu1  ;;  %v1423_v4 = vpop.f32.mrb[65].mxu0 }
 0x1a6   : > { %v2618_v5 = vpop.eup %2617  ;;  %v1711_v6 = vadd.f32 %v1710_v3, %v1421_v2  ;;  %v1712_v7 = vpop.f32.mrb[65].mxu1 }
 0x1a7   : > { %v1424_v8 = vpop.f32.mrb[66].mxu0  ;;  %1997 = vst.msk [vmem:[%s2958_s29 + $0xe8] sm:$0xff] %vm1967_vm0, %v2618_v5  ;;  %v1713_v9 = vpop.f32.mrb[66].mxu1 }
 0x1a8   : > { %v1426_v10 = vpop.f32.mrb[67].mxu0  ;;  %v1871_v11 = vadd.f32 %v2941_v17, %v1711_v6  ;;  %v1714_v12 = vadd.f32 %v1713_v9, %v1424_v8  ;;  %v1715_v13 = vpop.f32.mrb[67].mxu1 }
 0x1aa   : > { %2623 = vtanh.f32 %v1871_v11  ;;  %v1872_v14 = vadd.f32 %v2941_v17, %v1714_v12 }
 0x1ac   : > { %v2620_v15 = vpop.eup %2619  ;;  %2625 = vtanh.f32 %v1872_v14  ;;  %v1429_v16 = vpop.f32.mrb[68].mxu0 }
 0x1ad   : > { %1998 = vst.msk [vmem:[%s2958_s29 + $0xf0] sm:$0xff] %vm1967_vm0, %v2620_v15  ;;  %v1718_v18 = vpop.f32.mrb[68].mxu1  ;;  %v1431_v19 = vpop.f32.mrb[69].mxu0 }
 0x1ae   : > { %v2622_v20 = vpop.eup %2621  ;;  %v1719_v21 = vadd.f32 %v1718_v18, %v1429_v16  ;;  %v1720_v22 = vpop.f32.mrb[69].mxu1 }
 0x1af   : > { %v1432_v23 = vpop.f32.mrb[70].mxu0  ;;  %1999 = vst.msk [vmem:[%s2958_s29 + $0xf8] sm:$0xff] %vm1967_vm0, %v2622_v20  ;;  %v1721_v24 = vpop.f32.mrb[70].mxu1 }
 0x1b0   : > { %v1434_v25 = vpop.f32.mrb[71].mxu0  ;;  %v1873_v26 = vadd.f32 %v2941_v17, %v1719_v21  ;;  %v1722_v27 = vadd.f32 %v1721_v24, %v1432_v23  ;;  %v1723_v28 = vpop.f32.mrb[71].mxu1 }
 0x1b2   : > { %2627 = vtanh.f32 %v1873_v26  ;;  %v1874_v29 = vadd.f32 %v2941_v17, %v1722_v27 }
 0x1b4   : > { %v2624_v30 = vpop.eup %2623  ;;  %2629 = vtanh.f32 %v1874_v29  ;;  %v1437_v31 = vpop.f32.mrb[72].mxu0 }
 0x1b5   : > { %2000 = vst.msk [vmem:[%s2958_s29 + $0x100] sm:$0xff] %vm1967_vm0, %v2624_v30  ;;  %v1726_v32 = vpop.f32.mrb[72].mxu1  ;;  %v1439_v33 = vpop.f32.mrb[73].mxu0 }
 0x1b6   : > { %v2626_v34 = vpop.eup %2625  ;;  %v1727_v35 = vadd.f32 %v1726_v32, %v1437_v31  ;;  %v1728_v36 = vpop.f32.mrb[73].mxu1 }
 0x1b7   : > { %v1440_v37 = vpop.f32.mrb[74].mxu0  ;;  %2001 = vst.msk [vmem:[%s2958_s29 + $0x108] sm:$0xff] %vm1967_vm0, %v2626_v34  ;;  %v1729_v38 = vpop.f32.mrb[74].mxu1 }
 0x1b8   : > { %v1442_v39 = vpop.f32.mrb[75].mxu0  ;;  %v1875_v40 = vadd.f32 %v2941_v17, %v1727_v35  ;;  %v1730_v41 = vadd.f32 %v1729_v38, %v1440_v37  ;;  %v1731_v42 = vpop.f32.mrb[75].mxu1 }
 0x1ba   : > { %2631 = vtanh.f32 %v1875_v40  ;;  %v1876_v43 = vadd.f32 %v2941_v17, %v1730_v41 }
 0x1bc   : > { %v2628_v44 = vpop.eup %2627  ;;  %2633 = vtanh.f32 %v1876_v43  ;;  %v1445_v45 = vpop.f32.mrb[76].mxu0 }
 0x1bd   : > { %2002 = vst.msk [vmem:[%s2958_s29 + $0x110] sm:$0xff] %vm1967_vm0, %v2628_v44  ;;  %v1734_v46 = vpop.f32.mrb[76].mxu1  ;;  %v1447_v47 = vpop.f32.mrb[77].mxu0 }
 0x1be   : > { %v2630_v48 = vpop.eup %2629  ;;  %v1735_v49 = vadd.f32 %v1734_v46, %v1445_v45  ;;  %v1736_v50 = vpop.f32.mrb[77].mxu1 }
 0x1bf   : > { %v1448_v51 = vpop.f32.mrb[78].mxu0  ;;  %2003 = vst.msk [vmem:[%s2958_s29 + $0x118] sm:$0xff] %vm1967_vm0, %v2630_v48  ;;  %v1737_v52 = vpop.f32.mrb[78].mxu1 }
 0x1c0   : > { %v1450_v53 = vpop.f32.mrb[79].mxu0  ;;  %v1877_v54 = vadd.f32 %v2941_v17, %v1735_v49  ;;  %v1738_v55 = vadd.f32 %v1737_v52, %v1448_v51  ;;  %v1739_v56 = vpop.f32.mrb[79].mxu1 }
 0x1c2   : > { %2635 = vtanh.f32 %v1877_v54  ;;  %v1878_v57 = vadd.f32 %v2941_v17, %v1738_v55 }
 0x1c4   : > { %v2632_v58 = vpop.eup %2631  ;;  %2637 = vtanh.f32 %v1878_v57  ;;  %v1453_v59 = vpop.f32.mrb[80].mxu0 }
 0x1c5   : > { %2004 = vst.msk [vmem:[%s2958_s29 + $0x120] sm:$0xff] %vm1967_vm0, %v2632_v58  ;;  %v1742_v60 = vpop.f32.mrb[80].mxu1  ;;  %v1455_v61 = vpop.f32.mrb[81].mxu0 }
 0x1c6   : > { %v2634_v62 = vpop.eup %2633  ;;  %v1743_v63 = vadd.f32 %v1742_v60, %v1453_v59  ;;  %v1744_v0 = vpop.f32.mrb[81].mxu1 }
 0x1c7   : > { %v1456_v1 = vpop.f32.mrb[82].mxu0  ;;  %2005 = vst.msk [vmem:[%s2958_s29 + $0x128] sm:$0xff] %vm1967_vm0, %v2634_v62  ;;  %v1745_v2 = vpop.f32.mrb[82].mxu1 }
 0x1c8   : > { %v1458_v3 = vpop.f32.mrb[83].mxu0  ;;  %v1879_v4 = vadd.f32 %v2941_v17, %v1743_v63  ;;  %v1746_v5 = vadd.f32 %v1745_v2, %v1456_v1  ;;  %v1747_v6 = vpop.f32.mrb[83].mxu1 }
 0x1ca   : > { %2639 = vtanh.f32 %v1879_v4  ;;  %v1880_v7 = vadd.f32 %v2941_v17, %v1746_v5 }
 0x1cc   : > { %v2636_v8 = vpop.eup %2635  ;;  %2641 = vtanh.f32 %v1880_v7  ;;  %v1461_v9 = vpop.f32.mrb[84].mxu0 }
 0x1cd   : > { %2006 = vst.msk [vmem:[%s2958_s29 + $0x130] sm:$0xff] %vm1967_vm0, %v2636_v8  ;;  %v1750_v10 = vpop.f32.mrb[84].mxu1  ;;  %v1463_v11 = vpop.f32.mrb[85].mxu0 }
 0x1ce   : > { %v2638_v12 = vpop.eup %2637  ;;  %v1751_v13 = vadd.f32 %v1750_v10, %v1461_v9  ;;  %v1752_v14 = vpop.f32.mrb[85].mxu1 }
 0x1cf   : > { %v1464_v15 = vpop.f32.mrb[86].mxu0  ;;  %2007 = vst.msk [vmem:[%s2958_s29 + $0x138] sm:$0xff] %vm1967_vm0, %v2638_v12  ;;  %v1753_v16 = vpop.f32.mrb[86].mxu1 }
 0x1d0   : > { %v1466_v18 = vpop.f32.mrb[87].mxu0  ;;  %v1881_v19 = vadd.f32 %v2941_v17, %v1751_v13  ;;  %v1754_v20 = vadd.f32 %v1753_v16, %v1464_v15  ;;  %v1755_v21 = vpop.f32.mrb[87].mxu1 }
 0x1d2   : > { %2643 = vtanh.f32 %v1881_v19  ;;  %v1882_v22 = vadd.f32 %v2941_v17, %v1754_v20 }
 0x1d4   : > { %v2640_v23 = vpop.eup %2639  ;;  %2645 = vtanh.f32 %v1882_v22  ;;  %v1469_v24 = vpop.f32.mrb[88].mxu0 }
 0x1d5   : > { %2008 = vst.msk [vmem:[%s2958_s29 + $0x140] sm:$0xff] %vm1967_vm0, %v2640_v23  ;;  %v1758_v25 = vpop.f32.mrb[88].mxu1  ;;  %v1471_v26 = vpop.f32.mrb[89].mxu0 }
 0x1d6   : > { %v2642_v27 = vpop.eup %2641  ;;  %v1759_v28 = vadd.f32 %v1758_v25, %v1469_v24  ;;  %v1760_v29 = vpop.f32.mrb[89].mxu1 }
 0x1d7   : > { %v1472_v30 = vpop.f32.mrb[90].mxu0  ;;  %2009 = vst.msk [vmem:[%s2958_s29 + $0x148] sm:$0xff] %vm1967_vm0, %v2642_v27  ;;  %v1761_v31 = vpop.f32.mrb[90].mxu1 }
 0x1d8   : > { %v1474_v32 = vpop.f32.mrb[91].mxu0  ;;  %v1883_v33 = vadd.f32 %v2941_v17, %v1759_v28  ;;  %v1762_v34 = vadd.f32 %v1761_v31, %v1472_v30  ;;  %v1763_v35 = vpop.f32.mrb[91].mxu1 }
 0x1da   : > { %2647 = vtanh.f32 %v1883_v33  ;;  %v1884_v36 = vadd.f32 %v2941_v17, %v1762_v34 }
 0x1dc   : > { %v2644_v37 = vpop.eup %2643  ;;  %2649 = vtanh.f32 %v1884_v36  ;;  %v1477_v38 = vpop.f32.mrb[92].mxu0 }
 0x1dd   : > { %2010 = vst.msk [vmem:[%s2958_s29 + $0x150] sm:$0xff] %vm1967_vm0, %v2644_v37  ;;  %v1766_v39 = vpop.f32.mrb[92].mxu1  ;;  %v1479_v40 = vpop.f32.mrb[93].mxu0 }
 0x1de   : > { %v2646_v41 = vpop.eup %2645  ;;  %v1767_v42 = vadd.f32 %v1766_v39, %v1477_v38  ;;  %v1768_v43 = vpop.f32.mrb[93].mxu1 }
 0x1df   : > { %v1480_v44 = vpop.f32.mrb[94].mxu0  ;;  %2011 = vst.msk [vmem:[%s2958_s29 + $0x158] sm:$0xff] %vm1967_vm0, %v2646_v41  ;;  %v1769_v45 = vpop.f32.mrb[94].mxu1 }
 0x1e0   : > { %v1482_v46 = vpop.f32.mrb[95].mxu0  ;;  %v1885_v47 = vadd.f32 %v2941_v17, %v1767_v42  ;;  %v1770_v48 = vadd.f32 %v1769_v45, %v1480_v44  ;;  %v1771_v49 = vpop.f32.mrb[95].mxu1 }
 0x1e2   : > { %2651 = vtanh.f32 %v1885_v47  ;;  %v1886_v50 = vadd.f32 %v2941_v17, %v1770_v48 }
 0x1e4   : > { %v2648_v51 = vpop.eup %2647  ;;  %2653 = vtanh.f32 %v1886_v50  ;;  %v1485_v52 = vpop.f32.mrb[96].mxu0 }
 0x1e5   : > { %2012 = vst.msk [vmem:[%s2958_s29 + $0x160] sm:$0xff] %vm1967_vm0, %v2648_v51  ;;  %v1774_v53 = vpop.f32.mrb[96].mxu1  ;;  %v1487_v54 = vpop.f32.mrb[97].mxu0 }
 0x1e6   : > { %v2650_v55 = vpop.eup %2649  ;;  %v1775_v56 = vadd.f32 %v1774_v53, %v1485_v52  ;;  %v1776_v57 = vpop.f32.mrb[97].mxu1 }
 0x1e7   : > { %v1488_v58 = vpop.f32.mrb[98].mxu0  ;;  %2013 = vst.msk [vmem:[%s2958_s29 + $0x168] sm:$0xff] %vm1967_vm0, %v2650_v55  ;;  %v1777_v59 = vpop.f32.mrb[98].mxu1 }
 0x1e8   : > { %v1490_v60 = vpop.f32.mrb[99].mxu0  ;;  %v1887_v61 = vadd.f32 %v2941_v17, %v1775_v56  ;;  %v1778_v62 = vadd.f32 %v1777_v59, %v1488_v58  ;;  %v1779_v63 = vpop.f32.mrb[99].mxu1 }
 0x1ea   : > { %2655 = vtanh.f32 %v1887_v61  ;;  %v1888_v0 = vadd.f32 %v2941_v17, %v1778_v62 }
 0x1ec   : > { %v2652_v1 = vpop.eup %2651  ;;  %2657 = vtanh.f32 %v1888_v0  ;;  %v1493_v2 = vpop.f32.mrb[100].mxu0 }
 0x1ed   : > { %2014 = vst.msk [vmem:[%s2958_s29 + $0x170] sm:$0xff] %vm1967_vm0, %v2652_v1  ;;  %v1782_v3 = vpop.f32.mrb[100].mxu1  ;;  %v1495_v4 = vpop.f32.mrb[101].mxu0 }
 0x1ee   : > { %v2654_v5 = vpop.eup %2653  ;;  %v1783_v6 = vadd.f32 %v1782_v3, %v1493_v2  ;;  %v1784_v7 = vpop.f32.mrb[101].mxu1 }
 0x1ef   : > { %v1496_v8 = vpop.f32.mrb[102].mxu0  ;;  %2015 = vst.msk [vmem:[%s2958_s29 + $0x178] sm:$0xff] %vm1967_vm0, %v2654_v5  ;;  %v1785_v9 = vpop.f32.mrb[102].mxu1 }
 0x1f0   : > { %v1498_v10 = vpop.f32.mrb[103].mxu0  ;;  %v1889_v11 = vadd.f32 %v2941_v17, %v1783_v6  ;;  %v1786_v12 = vadd.f32 %v1785_v9, %v1496_v8  ;;  %v1787_v13 = vpop.f32.mrb[103].mxu1 }
 0x1f2   : > { %2659 = vtanh.f32 %v1889_v11  ;;  %v1890_v14 = vadd.f32 %v2941_v17, %v1786_v12 }
 0x1f4   : > { %v2656_v15 = vpop.eup %2655  ;;  %2661 = vtanh.f32 %v1890_v14  ;;  %v1501_v16 = vpop.f32.mrb[104].mxu0 }
 0x1f5   : > { %2016 = vst.msk [vmem:[%s2958_s29 + $0x180] sm:$0xff] %vm1967_vm0, %v2656_v15  ;;  %v1790_v18 = vpop.f32.mrb[104].mxu1  ;;  %v1503_v19 = vpop.f32.mrb[105].mxu0 }
 0x1f6   : > { %v2658_v20 = vpop.eup %2657  ;;  %v1791_v21 = vadd.f32 %v1790_v18, %v1501_v16  ;;  %v1792_v22 = vpop.f32.mrb[105].mxu1 }
 0x1f7   : > { %v1504_v23 = vpop.f32.mrb[106].mxu0  ;;  %2017 = vst.msk [vmem:[%s2958_s29 + $0x188] sm:$0xff] %vm1967_vm0, %v2658_v20  ;;  %v1793_v24 = vpop.f32.mrb[106].mxu1 }
 0x1f8   : > { %v1506_v25 = vpop.f32.mrb[107].mxu0  ;;  %v1891_v26 = vadd.f32 %v2941_v17, %v1791_v21  ;;  %v1794_v27 = vadd.f32 %v1793_v24, %v1504_v23  ;;  %v1795_v28 = vpop.f32.mrb[107].mxu1 }
 0x1fa   : > { %2663 = vtanh.f32 %v1891_v26  ;;  %v1892_v29 = vadd.f32 %v2941_v17, %v1794_v27 }
 0x1fc   : > { %v2660_v30 = vpop.eup %2659  ;;  %2665 = vtanh.f32 %v1892_v29  ;;  %v1509_v31 = vpop.f32.mrb[108].mxu0 }
 0x1fd   : > { %2018 = vst.msk [vmem:[%s2958_s29 + $0x190] sm:$0xff] %vm1967_vm0, %v2660_v30  ;;  %v1798_v32 = vpop.f32.mrb[108].mxu1  ;;  %v1511_v33 = vpop.f32.mrb[109].mxu0 }
 0x1fe   : > { %v2662_v34 = vpop.eup %2661  ;;  %v1799_v35 = vadd.f32 %v1798_v32, %v1509_v31  ;;  %v1800_v36 = vpop.f32.mrb[109].mxu1 }
 0x1ff   : > { %v1512_v37 = vpop.f32.mrb[110].mxu0  ;;  %2019 = vst.msk [vmem:[%s2958_s29 + $0x198] sm:$0xff] %vm1967_vm0, %v2662_v34  ;;  %v1801_v38 = vpop.f32.mrb[110].mxu1 }
 0x200   : > { %v1514_v39 = vpop.f32.mrb[111].mxu0  ;;  %v1893_v40 = vadd.f32 %v2941_v17, %v1799_v35  ;;  %v1802_v41 = vadd.f32 %v1801_v38, %v1512_v37  ;;  %v1803_v42 = vpop.f32.mrb[111].mxu1 }
 0x202   : > { %2667 = vtanh.f32 %v1893_v40  ;;  %v1894_v43 = vadd.f32 %v2941_v17, %v1802_v41 }
 0x204   : > { %v2664_v44 = vpop.eup %2663  ;;  %2669 = vtanh.f32 %v1894_v43  ;;  %v1517_v45 = vpop.f32.mrb[112].mxu0 }
 0x205   : > { %2020 = vst.msk [vmem:[%s2958_s29 + $0x1a0] sm:$0xff] %vm1967_vm0, %v2664_v44  ;;  %v1806_v46 = vpop.f32.mrb[112].mxu1  ;;  %v1519_v47 = vpop.f32.mrb[113].mxu0 }
 0x206   : > { %v2666_v48 = vpop.eup %2665  ;;  %v1807_v49 = vadd.f32 %v1806_v46, %v1517_v45  ;;  %v1808_v50 = vpop.f32.mrb[113].mxu1 }
 0x207   : > { %v1520_v51 = vpop.f32.mrb[114].mxu0  ;;  %2021 = vst.msk [vmem:[%s2958_s29 + $0x1a8] sm:$0xff] %vm1967_vm0, %v2666_v48  ;;  %v1809_v52 = vpop.f32.mrb[114].mxu1 }
 0x208   : > { %v1522_v53 = vpop.f32.mrb[115].mxu0  ;;  %v1895_v54 = vadd.f32 %v2941_v17, %v1807_v49  ;;  %v1810_v55 = vadd.f32 %v1809_v52, %v1520_v51  ;;  %v1811_v56 = vpop.f32.mrb[115].mxu1 }
 0x20a   : > { %2671 = vtanh.f32 %v1895_v54  ;;  %v1896_v57 = vadd.f32 %v2941_v17, %v1810_v55 }
 0x20c   : > { %v2668_v58 = vpop.eup %2667  ;;  %2673 = vtanh.f32 %v1896_v57  ;;  %v1525_v59 = vpop.f32.mrb[116].mxu0 }
 0x20d   : > { %2022 = vst.msk [vmem:[%s2958_s29 + $0x1b0] sm:$0xff] %vm1967_vm0, %v2668_v58  ;;  %v1814_v60 = vpop.f32.mrb[116].mxu1  ;;  %v1527_v61 = vpop.f32.mrb[117].mxu0 }
 0x20e   : > { %v2670_v62 = vpop.eup %2669  ;;  %v1815_v63 = vadd.f32 %v1814_v60, %v1525_v59  ;;  %v1816_v0 = vpop.f32.mrb[117].mxu1 }
 0x20f   : > { %v1528_v1 = vpop.f32.mrb[118].mxu0  ;;  %2023 = vst.msk [vmem:[%s2958_s29 + $0x1b8] sm:$0xff] %vm1967_vm0, %v2670_v62  ;;  %v1817_v2 = vpop.f32.mrb[118].mxu1 }
 0x210   : > { %v1530_v3 = vpop.f32.mrb[119].mxu0  ;;  %v1897_v4 = vadd.f32 %v2941_v17, %v1815_v63  ;;  %v1818_v5 = vadd.f32 %v1817_v2, %v1528_v1  ;;  %v1819_v6 = vpop.f32.mrb[119].mxu1 }
 0x212   : > { %2675 = vtanh.f32 %v1897_v4  ;;  %v1898_v7 = vadd.f32 %v2941_v17, %v1818_v5 }
 0x214   : > { %v2672_v8 = vpop.eup %2671  ;;  %2677 = vtanh.f32 %v1898_v7  ;;  %v1533_v9 = vpop.f32.mrb[120].mxu0 }
 0x215   : > { %2024 = vst.msk [vmem:[%s2958_s29 + $0x1c0] sm:$0xff] %vm1967_vm0, %v2672_v8  ;;  %v1822_v10 = vpop.f32.mrb[120].mxu1  ;;  %v1535_v11 = vpop.f32.mrb[121].mxu0 }
 0x216   : > { %v2674_v12 = vpop.eup %2673  ;;  %v1823_v13 = vadd.f32 %v1822_v10, %v1533_v9  ;;  %v1824_v14 = vpop.f32.mrb[121].mxu1 }
 0x217   : > { %v1536_v15 = vpop.f32.mrb[122].mxu0  ;;  %2025 = vst.msk [vmem:[%s2958_s29 + $0x1c8] sm:$0xff] %vm1967_vm0, %v2674_v12  ;;  %v1825_v16 = vpop.f32.mrb[122].mxu1 }
 0x218   : > { %v1538_v18 = vpop.f32.mrb[123].mxu0  ;;  %v1899_v19 = vadd.f32 %v2941_v17, %v1823_v13  ;;  %v1826_v20 = vadd.f32 %v1825_v16, %v1536_v15  ;;  %v1827_v21 = vpop.f32.mrb[123].mxu1 }
 0x21a   : > { %2679 = vtanh.f32 %v1899_v19  ;;  %v1900_v22 = vadd.f32 %v2941_v17, %v1826_v20 }
 0x21c   : > { %v2676_v23 = vpop.eup %2675  ;;  %2681 = vtanh.f32 %v1900_v22  ;;  %v1541_v24 = vpop.f32.mrb[124].mxu0 }
 0x21d   : > { %2026 = vst.msk [vmem:[%s2958_s29 + $0x1d0] sm:$0xff] %vm1967_vm0, %v2676_v23  ;;  %v1830_v25 = vpop.f32.mrb[124].mxu1  ;;  %v1543_v26 = vpop.f32.mrb[125].mxu0 }
 0x21e   : > { %v2678_v27 = vpop.eup %2677  ;;  %v1831_v28 = vadd.f32 %v1830_v25, %v1541_v24  ;;  %v1832_v29 = vpop.f32.mrb[125].mxu1 }
 0x21f   : > { %v1544_v30 = vpop.f32.mrb[126].mxu0  ;;  %2027 = vst.msk [vmem:[%s2958_s29 + $0x1d8] sm:$0xff] %vm1967_vm0, %v2678_v27  ;;  %v1833_v31 = vpop.f32.mrb[126].mxu1 }
 0x220   : > { %v1546_v32 = vpop.f32.mrb[127].mxu0  ;;  %v1901_v33 = vadd.f32 %v2941_v17, %v1831_v28  ;;  %v1834_v34 = vadd.f32 %v1833_v31, %v1544_v30  ;;  %v1835_v35 = vpop.f32.mrb[127].mxu1 }
 0x222   : > { %2683 = vtanh.f32 %v1901_v33  ;;  %v1902_v36 = vadd.f32 %v2941_v17, %v1834_v34 }
 0x224   : > { %v2680_v37 = vpop.eup %2679  ;;  %2685 = vtanh.f32 %v1902_v36 }
 0x225   : > { %2028 = vst.msk [vmem:[%s2958_s29 + $0x1e0] sm:$0xff] %vm1967_vm0, %v2680_v37 }
 0x226   : > { %v2682_v38 = vpop.eup %2681 }
 0x227   : > { %2029 = vst.msk [vmem:[%s2958_s29 + $0x1e8] sm:$0xff] %vm1967_vm0, %v2682_v38 }
 0x22c   : > { %v2684_v39 = vpop.eup %2683 }
 0x22d   : > { %2030 = vst.msk [vmem:[%s2958_s29 + $0x1f0] sm:$0xff] %vm1967_vm0, %v2684_v39 }
 0x22e   : > { %v2686_v40 = vpop.eup %2685 }
 0x22f   : > { %2031 = vst.msk [vmem:[%s2958_s29 + $0x1f8] sm:$0xff] %vm1967_vm0, %v2686_v40 }
 0x230 PF: > { %s14_s16 = sadd.s32 1, %s2709_s16   ;;  %s3172_s14 = smov %s2705_s15 }
 0x231   : > { %p11_p5 = scmp.ge.s32.totalorder %s14_s16, 6   ;;  %s3173_s15 = smov %s3175_s2 }
 0x233   :  { %13 = sbr.rel (!%p11_p5) target bundleno = 2 (0x2), region = 65 }

</bundles_post_ra>
